<compile_context>
chip_gen: v7x
topology: tpu7x:2x2x1
jax: 0.10.0
libtpu: 0.0.40
codegen_flags: <defaults>
</compile_context>

<pallas_src>
import functools

import jax
import jax.numpy as jnp
from jax import lax
from jax.experimental import pallas as pl
from jax.experimental.pallas import tpu as pltpu


def _round_up(x, m):
    return ((x + m - 1) // m) * m


def _vmem_capacity_bytes():
    try:
        return int(pltpu.get_tpu_info().vmem_capacity_bytes)
    except Exception:
        return 64 * 1024 * 1024  # conservative: v7x per-TensorCore VMEM


def _default_block_q():
    # v6e/v7x MXU is 256-wide -> bq=256; v5e (128-wide MXU) keeps bq=128.
    try:
        kind = jax.devices()[0].device_kind.lower()
    except Exception:
        return 256
    return 128 if "v5" in kind else 256


def _buffered_spec(shape, index_map, nbuf=3):
    """Streaming-fallback spec with deeper multi-buffering (best effort)."""
    try:
        return pl.BlockSpec(shape, index_map, pipeline_mode=pl.Buffered(nbuf))
    except Exception:
        return pl.BlockSpec(shape, index_map)


# ---------------------------------------------------------------------------
# Kernel 1: fused theta/phi/g projection (single x @ [wt*s | wp | wg] matmul).
# phi is written pre-transposed as (Ci, rows) so the flash kernel needs no
# per-step transpose for the score matmul.
# ---------------------------------------------------------------------------
def _proj_kernel(x_ref, wcat_ref, bcat_ref, th_ref, pht_ref, g_ref, *, ci):
    xb = x_ref[0].astype(wcat_ref.dtype)                       # (pt, C) bf16
    proj = jnp.dot(xb, wcat_ref[...],
                   preferred_element_type=jnp.float32)          # (pt, 3*ci) f32
    proj = proj + bcat_ref[...]                                 # bias (f32)
    th_ref[0] = proj[:, :ci].astype(th_ref.dtype)               # scale pre-folded
    pht_ref[0] = proj[:, ci:2 * ci].T.astype(pht_ref.dtype)     # (ci, pt)
    g_ref[0] = proj[:, 2 * ci:].astype(g_ref.dtype)


# ---------------------------------------------------------------------------
# Kernel 2: flash-style embedded-gaussian attention + conv_out + residual.
# ---------------------------------------------------------------------------
def _flash_kernel(theta_ref, phit_ref, g_ref, x_ref, wo_ref, bo_ref, o_ref,
                  m_sc, l_sc, acc_sc, *, block_k, true_len, needs_mask,
                  resident):
    ki = pl.program_id(2)
    nk = pl.num_programs(2)

    @pl.when(ki == 0)
    def _():
        m_sc[...] = jnp.full(m_sc.shape, -jnp.inf, jnp.float32)
        l_sc[...] = jnp.zeros(l_sc.shape, jnp.float32)
        acc_sc[...] = jnp.zeros(acc_sc.shape, jnp.float32)

    th = theta_ref[0]                                           # (bq, Ci) bf16
    if resident:
        # phi/g live in VMEM for the whole (q, k) loop; slice the k window.
        off = pl.multiple_of(ki * block_k, block_k)
        pht = phit_ref[0, :, pl.ds(off, block_k)]               # (Ci, bk)
        gk = g_ref[0, pl.ds(off, block_k), :]                   # (bk, Ci)
    else:
        pht = phit_ref[0]                                       # (Ci, bk)
        gk = g_ref[0]                                           # (bk, Ci)

    # Scores: plain MXU matmul, phi already transposed (no XLU per step).
    s = jnp.dot(th, pht, preferred_element_type=jnp.float32)    # (bq, bk) f32

    if needs_mask:
        # Only the last k tile contains padded keys; the iota+select is cheap
        # VALU filler under the MXU-bound regime (low priority per review).
        key_pos = ki * block_k + lax.broadcasted_iota(jnp.int32, s.shape, 1)
        s = jnp.where(key_pos < true_len, s, -1e30)

    m_prev = m_sc[...]
    m_new = jnp.maximum(m_prev, jnp.max(s, axis=-1, keepdims=True))
    alpha = jnp.exp(m_prev - m_new)
    p = jnp.exp(s - m_new)
    l_sc[...] = alpha * l_sc[...] + jnp.sum(p, axis=-1, keepdims=True)
    acc_sc[...] = alpha * acc_sc[...] + jnp.dot(
        p.astype(gk.dtype), gk, preferred_element_type=jnp.float32)
    m_sc[...] = m_new

    @pl.when(ki == nk - 1)
    def _():
        inv_l = pl.reciprocal(l_sc[...], approx=True)           # EUP, not VALU
        y = (acc_sc[...] * inv_l).astype(wo_ref.dtype)          # (bq, Ci) bf16
        out = x_ref[0] + jnp.dot(y, wo_ref[...],
                                 preferred_element_type=jnp.float32) + bo_ref[...]
        o_ref[0] = out.astype(o_ref.dtype)


# ---------------------------------------------------------------------------
# Wrapper over the two pallas_calls.
# ---------------------------------------------------------------------------
def nonlocal3d_pallas(x_flat, params, *, block_q=None, block_k=512):
    """x_flat: (B, L, C) float32, channels last.  Returns (B, L, C) float32."""
    B, L, C = x_flat.shape
    Ci = params["wo"].shape[0]
    Ci_pad = _round_up(max(Ci, 1), 128)          # lane-dense theta/phi/g

    if block_q is None:
        block_q = _default_block_q()

    # Tile sizes: multiples of 128 (shrunk for tiny L), bk a multiple of bq.
    bq = _round_up(min(block_q, _round_up(L, 128)), 128)
    bk = _round_up(min(block_k, _round_up(L, bq)), bq)
    Lpad = _round_up(L, bk)
    needs_mask = Lpad != L                       # Lpad - L < bk always holds
    nq = Lpad // bq
    nk = Lpad // bk

    # Projection row tile decoupled from bk (only needs to keep the MXU busy).
    pt = min(Lpad, 512)
    if Lpad % pt != 0:
        pt = bq
    nproj = Lpad // pt

    # Generation-aware VMEM budget: 96 MiB on v5e/v6e (128 MiB physical),
    # 48 MiB on v7x (64 MiB physical).  Residency check for phi_t + g.
    vmem_cap = _vmem_capacity_bytes()
    vmem_limit = int(min(vmem_cap * 3 // 4, 96 * 1024 * 1024))
    resident_bytes = 2 * 2 * Lpad * Ci_pad * 2   # 2 arrays x 2 buffers x bf16
    resident = resident_bytes <= vmem_limit // 3

    # Host-side (one-time) weight prep: fold 1/sqrt(Ci) into theta, zero-pad
    # Ci -> Ci_pad (exact: padded columns contribute 0), fuse projections,
    # cast matmul operands to bf16.
    scale = 1.0 / (float(Ci) ** 0.5)

    def _pad_ci(w, b):
        if Ci_pad == Ci:
            return w, b
        pad = Ci_pad - Ci
        return (jnp.pad(w, ((0, 0), (0, pad))),
                jnp.pad(b, ((0, 0), (0, pad))))

    wt, bt = _pad_ci(params["wt"] * scale, params["bt"] * scale)
    wp, bp = _pad_ci(params["wp"], params["bp"])
    wg, bg = _pad_ci(params["wg"], params["bg"])
    wcat_bf = jnp.concatenate([wt, wp, wg], axis=1).astype(jnp.bfloat16)  # (C, 3Cip)
    bcat_f32 = jnp.concatenate([bt, bp, bg], axis=1).astype(jnp.float32)  # (1, 3Cip)

    wo = params["wo"]
    if Ci_pad != Ci:
        wo = jnp.pad(wo, ((0, Ci_pad - Ci), (0, 0)))
    wo_bf = wo.astype(jnp.bfloat16)                                       # (Cip, C)
    bo_f32 = params["bo"].astype(jnp.float32)                             # (1, C)

    x_pad = x_flat if Lpad == L else jnp.pad(
        x_flat, ((0, 0), (0, Lpad - L), (0, 0)))

    # ---- projection pass: x -> theta (B,Lp,Cip), phi^T (B,Cip,Lp), g (B,Lp,Cip)
    proj_cost = pl.CostEstimate(
        flops=int(2 * B * Lpad * C * 3 * Ci_pad),
        transcendentals=0,
        bytes_accessed=int(B * Lpad * C * 4 + 3 * B * Lpad * Ci_pad * 2),
    )
    theta, phi_t, g = pl.pallas_call(
        functools.partial(_proj_kernel, ci=Ci_pad),
        out_shape=(
            jax.ShapeDtypeStruct((B, Lpad, Ci_pad), jnp.bfloat16),
            jax.ShapeDtypeStruct((B, Ci_pad, Lpad), jnp.bfloat16),
            jax.ShapeDtypeStruct((B, Lpad, Ci_pad), jnp.bfloat16),
        ),
        grid_spec=pltpu.PrefetchScalarGridSpec(
            num_scalar_prefetch=0,
            grid=(B, nproj),
            in_specs=[
                pl.BlockSpec((1, pt, C), lambda b, i: (b, i, 0)),       # x tile
                pl.BlockSpec((C, 3 * Ci_pad), lambda b, i: (0, 0)),     # fused W
                pl.BlockSpec((1, 3 * Ci_pad), lambda b, i: (0, 0)),     # fused b
            ],
            out_specs=(
                pl.BlockSpec((1, pt, Ci_pad), lambda b, i: (b, i, 0)),
                pl.BlockSpec((1, Ci_pad, pt), lambda b, i: (b, 0, i)),  # phi^T
                pl.BlockSpec((1, pt, Ci_pad), lambda b, i: (b, i, 0)),
            ),
        ),
        compiler_params=pltpu.CompilerParams(
            dimension_semantics=("parallel", "parallel"),
            vmem_limit_bytes=vmem_limit),
        cost_estimate=proj_cost,
    )(x_pad, wcat_bf, bcat_f32)

    # ---- flash attention + conv_out + residual ----
    if resident:
        # One DMA per batch; held in VMEM across all (q, k) steps.
        phi_spec = pl.BlockSpec((1, Ci_pad, Lpad), lambda b, q, k: (b, 0, 0))
        g_spec = pl.BlockSpec((1, Lpad, Ci_pad), lambda b, q, k: (b, 0, 0))
    else:
        # Streaming fallback (huge L / v7x VMEM): triple-buffered k blocks.
        phi_spec = _buffered_spec((1, Ci_pad, bk), lambda b, q, k: (b, 0, k))
        g_spec = _buffered_spec((1, bk, Ci_pad), lambda b, q, k: (b, k, 0))

    pg_reads = 1 if resident else nq
    flash_cost = pl.CostEstimate(
        flops=int(B * (4 * Lpad * Lpad * Ci_pad + 2 * Lpad * Ci_pad * C)),
        transcendentals=int(B * Lpad * Lpad),
        bytes_accessed=int(B * Lpad * Ci_pad * 2 * (1 + 2 * pg_reads)
                           + 2 * B * Lpad * C * 4),
    )
    out = pl.pallas_call(
        functools.partial(_flash_kernel, block_k=bk, true_len=L,
                          needs_mask=needs_mask, resident=resident),
        out_shape=jax.ShapeDtypeStruct((B, Lpad, C), x_flat.dtype),
        grid_spec=pltpu.PrefetchScalarGridSpec(
            num_scalar_prefetch=0,
            grid=(B, nq, nk),
            in_specs=[
                pl.BlockSpec((1, bq, Ci_pad), lambda b, q, k: (b, q, 0)),  # theta
                phi_spec,                                                   # phi^T
                g_spec,                                                     # g
                pl.BlockSpec((1, bq, C), lambda b, q, k: (b, q, 0)),        # x (residual)
                pl.BlockSpec((Ci_pad, C), lambda b, q, k: (0, 0)),          # wo
                pl.BlockSpec((1, C), lambda b, q, k: (0, 0)),               # bo
            ],
            out_specs=pl.BlockSpec((1, bq, C), lambda b, q, k: (b, q, 0)),
            scratch_shapes=[
                pltpu.VMEM((bq, 1), jnp.float32),       # running max
                pltpu.VMEM((bq, 1), jnp.float32),       # running sum
                pltpu.VMEM((bq, Ci_pad), jnp.float32),  # output accumulator
            ],
        ),
        compiler_params=pltpu.CompilerParams(
            dimension_semantics=("parallel", "parallel", "arbitrary"),
            vmem_limit_bytes=vmem_limit),
        cost_estimate=flash_cost,
        input_output_aliases={3: 0},   # reuse x_pad's HBM buffer for the output
    )(theta, phi_t, g, x_pad, wo_bf, bo_f32)

    if needs_mask:
        out = out[:, :L, :]
    return out


# ---------------------------------------------------------------------------
# NL3DWrapper forward (host-side layout: one transpose each way).
# ---------------------------------------------------------------------------
def nl3d_wrapper_forward(x, params, num_segments, *, block_q=None, block_k=512):
    """Forward of NL3DWrapper.  x: (N, C, H, W), N = batch * num_segments."""
    # TODO(synk): self.block (ResNet bottleneck) treated as identity here.
    N, C, H, W = x.shape
    B = N // num_segments
    T = num_segments
    L = T * H * W

    # (N,C,H,W) -> (B,T,C,H,W) -> channels-last (B,T,H,W,C) -> (B, L=T*H*W, C)
    x_flat = x.reshape(B, T, C, H, W).transpose(0, 1, 3, 4, 2).reshape(B, L, C)

    out_flat = nonlocal3d_pallas(x_flat, params,
                                 block_q=block_q, block_k=block_k)

    out = (out_flat.reshape(B, T, H, W, C)
           .transpose(0, 1, 4, 2, 3)
           .reshape(N, C, H, W))
    return out


def nl3d_wrapper_reference(x, params, num_segments):
    """Pure-JAX f32 reference with identical math, for the correctness check."""
    N, C, H, W = x.shape
    B = N // num_segments
    T = num_segments
    L = T * H * W
    Ci = params["wg"].shape[1]

    xf = x.reshape(B, T, C, H, W).transpose(0, 1, 3, 4, 2).reshape(B, L, C)

    g_x = xf @ params["wg"] + params["bg"]
    theta = xf @ params["wt"] + params["bt"]
    phi = xf @ params["wp"] + params["bp"]
    attn = jnp.einsum("blc,bmc->blm", theta, phi) / (Ci ** 0.5)
    attn = jax.nn.softmax(attn, axis=-1)
    y = jnp.einsum("blm,bmc->blc", attn, g_x)
    outf = xf + y @ params["wo"] + params["bo"]

    return (outf.reshape(B, T, H, W, C)
            .transpose(0, 1, 4, 2, 3)
            .reshape(N, C, H, W))


def init_params(key, in_channels, reduction=2, std=0.01):
    """Deterministic synthetic init.  Conv3d 1x1x1 weight (Cout, Cin, 1,1,1) is
    stored transposed as (Cin, Cout) so the kernel computes x @ W."""
    Ci = max(in_channels // reduction, 1)
    kg, kt, kp, ko = jax.random.split(key, 4)
    f32 = jnp.float32
    return {
        "wg": (std * jax.random.normal(kg, (in_channels, Ci))).astype(f32),
        "bg": jnp.zeros((1, Ci), f32),
        "wt": (std * jax.random.normal(kt, (in_channels, Ci))).astype(f32),
        "bt": jnp.zeros((1, Ci), f32),
        "wp": (std * jax.random.normal(kp, (in_channels, Ci))).astype(f32),
        "bp": jnp.zeros((1, Ci), f32),
        # conv_out: zeros_init=True would zero this; use small normal instead
        # so the non-local branch actually contributes (deterministic).
        "wo": (std * jax.random.normal(ko, (Ci, in_channels))).astype(f32),
        "bo": jnp.zeros((1, in_channels), f32),
    }


if __name__ == "__main__":
    key = jax.random.PRNGKey(0)
    k_x, k_p = jax.random.split(key)

    batch = 2
    num_segments = 8
    C, H, W = 16, 7, 7
    N = batch * num_segments                       # 16
    x = jax.random.normal(k_x, (N, C, H, W), dtype=jnp.float32)

    params = init_params(k_p, in_channels=C, reduction=2)

    # Small tiles so the demo (L = 8*7*7 = 392, padded to 512) exercises the
    # multi-k-tile online softmax, the padded-key masking path and the
    # VMEM-resident phi/g path.
    fwd = jax.jit(functools.partial(nl3d_wrapper_forward,
                                    num_segments=num_segments,
                                    block_q=128, block_k=128))
    out = fwd(x, params)
    out = jax.block_until_ready(out)

    ref = nl3d_wrapper_reference(x, params, num_segments)
    assert out.shape == (N, C, H, W)
    # bf16 MXU operands + approx reciprocal (f32 accumulation / softmax /
    # residual) -> looser tolerance vs the f32 reference.
    assert jnp.allclose(out, ref, atol=1e-2, rtol=1e-2), "mismatch vs reference"

    print("KERNEL_OK")
</pallas_src>

<mosaic_0001>
module attributes {stable_mosaic.version = 11 : i64} {
  func.func @_proj_kernel(%arg0: i32, %arg1: i32, %arg2: memref<1x512x16xf32, #tpu.memory_space<vmem>>, %arg3: memref<16x384xbf16, #tpu.memory_space<vmem>>, %arg4: memref<1x384xf32, #tpu.memory_space<vmem>>, %arg5: memref<1x512x128xbf16, #tpu.memory_space<vmem>>, %arg6: memref<1x128x512xbf16, #tpu.memory_space<vmem>>, %arg7: memref<1x512x128xbf16, #tpu.memory_space<vmem>>) attributes {dimension_semantics = [#tpu.dimension_semantics<parallel>, #tpu.dimension_semantics<parallel>], iteration_bounds = array<i64: 2, 1>, scalar_prefetch = 0 : i64, scratch_operands = 0 : i64, tpu.core_type = #tpu.core_type<tc>, window_params = [{transform_indices = @transform_0, window_bounds = array<i64: 1, 512, 16>}, {pipeline_mode = #tpu.pipeline_mode<synchronous>, transform_indices = @transform_1, window_bounds = array<i64: 16, 384>}, {pipeline_mode = #tpu.pipeline_mode<synchronous>, transform_indices = @transform_2, window_bounds = array<i64: 1, 384>}, {transform_indices = @transform_3, window_bounds = array<i64: 1, 512, 128>}, {transform_indices = @transform_4, window_bounds = array<i64: 1, 128, 512>}, {transform_indices = @transform_5, window_bounds = array<i64: 1, 512, 128>}]} {
    %c0 = arith.constant 0 : index
    %c0_0 = arith.constant 0 : index
    %c0_1 = arith.constant 0 : index
    %0 = vector.load %arg2[%c0, %c0_0, %c0_1] : memref<1x512x16xf32, #tpu.memory_space<vmem>>, vector<1x512x16xf32>
    %1 = vector.shape_cast %0 : vector<1x512x16xf32> to vector<512x16xf32>
    %2 = arith.truncf %1 : vector<512x16xf32> to vector<512x16xbf16>
    %c0_2 = arith.constant 0 : index
    %c0_3 = arith.constant 0 : index
    %3 = vector.load %arg3[%c0_2, %c0_3] : memref<16x384xbf16, #tpu.memory_space<vmem>>, vector<16x384xbf16>
    %cst = arith.constant dense<0.000000e+00> : vector<512x384xf32>
    %4 = tpu.matmul %2, %3, %cst {dimension_numbers = #tpu.dot_dimension_numbers<[1], [0], [0], [1], [0, 0, 1, 1], [], []>} : vector<512x16xbf16>, vector<16x384xbf16>, vector<512x384xf32> -> vector<512x384xf32>
    %c0_4 = arith.constant 0 : index
    %c0_5 = arith.constant 0 : index
    %5 = vector.load %arg4[%c0_4, %c0_5] : memref<1x384xf32, #tpu.memory_space<vmem>>, vector<1x384xf32>
    %6 = vector.broadcast %5 : vector<1x384xf32> to vector<512x384xf32>
    %7 = arith.addf %4, %6 : vector<512x384xf32>
    %8 = vector.extract_strided_slice %7 {offsets = [0, 0], sizes = [512, 128], strides = [1, 1]} : vector<512x384xf32> to vector<512x128xf32>
    %9 = arith.truncf %8 : vector<512x128xf32> to vector<512x128xbf16>
    %c0_6 = arith.constant 0 : index
    %c0_7 = arith.constant 0 : index
    %c0_8 = arith.constant 0 : index
    %10 = vector.load %arg5[%c0_6, %c0_7, %c0_8] : memref<1x512x128xbf16, #tpu.memory_space<vmem>>, vector<1x512x128xbf16>
    %11 = vector.shape_cast %10 : vector<1x512x128xbf16> to vector<512x128xbf16>
    %12 = vector.shape_cast %9 : vector<512x128xbf16> to vector<1x512x128xbf16>
    tpu.vector_store %arg5[%c0_6, %c0_7, %c0_8], %12 {strides = array<i32>} : memref<1x512x128xbf16, #tpu.memory_space<vmem>>, vector<1x512x128xbf16>,
    %13 = vector.extract_strided_slice %7 {offsets = [0, 128], sizes = [512, 128], strides = [1, 1]} : vector<512x384xf32> to vector<512x128xf32>
    %14 = tpu.transpose %13, [1, 0] : vector<512x128xf32> -> vector<128x512xf32>
    %15 = arith.truncf %14 : vector<128x512xf32> to vector<128x512xbf16>
    %c0_9 = arith.constant 0 : index
    %c0_10 = arith.constant 0 : index
    %c0_11 = arith.constant 0 : index
    %16 = vector.load %arg6[%c0_9, %c0_10, %c0_11] : memref<1x128x512xbf16, #tpu.memory_space<vmem>>, vector<1x128x512xbf16>
    %17 = vector.shape_cast %16 : vector<1x128x512xbf16> to vector<128x512xbf16>
    %18 = vector.shape_cast %15 : vector<128x512xbf16> to vector<1x128x512xbf16>
    tpu.vector_store %arg6[%c0_9, %c0_10, %c0_11], %18 {strides = array<i32>} : memref<1x128x512xbf16, #tpu.memory_space<vmem>>, vector<1x128x512xbf16>,
    %19 = vector.extract_strided_slice %7 {offsets = [0, 256], sizes = [512, 128], strides = [1, 1]} : vector<512x384xf32> to vector<512x128xf32>
    %20 = arith.truncf %19 : vector<512x128xf32> to vector<512x128xbf16>
    %c0_12 = arith.constant 0 : index
    %c0_13 = arith.constant 0 : index
    %c0_14 = arith.constant 0 : index
    %21 = vector.load %arg7[%c0_12, %c0_13, %c0_14] : memref<1x512x128xbf16, #tpu.memory_space<vmem>>, vector<1x512x128xbf16>
    %22 = vector.shape_cast %21 : vector<1x512x128xbf16> to vector<512x128xbf16>
    %23 = vector.shape_cast %20 : vector<512x128xbf16> to vector<1x512x128xbf16>
    tpu.vector_store %arg7[%c0_12, %c0_13, %c0_14], %23 {strides = array<i32>} : memref<1x512x128xbf16, #tpu.memory_space<vmem>>, vector<1x512x128xbf16>,
    return
  }
  func.func @transform_0(%arg0: i32, %arg1: i32) -> (i32, i32, i32) {
    %c0_i32 = arith.constant 0 : i32
    %c0_i32_0 = arith.constant 0 : i32
    return %arg0, %arg1, %c0_i32 : i32, i32, i32
  }
  func.func @transform_1(%arg0: i32, %arg1: i32) -> (i32, i32) {
    %c0_i32 = arith.constant 0 : i32
    %c0_i32_0 = arith.constant 0 : i32
    %c0_i32_1 = arith.constant 0 : i32
    return %c0_i32, %c0_i32_0 : i32, i32
  }
  func.func @transform_2(%arg0: i32, %arg1: i32) -> (i32, i32) {
    %c0_i32 = arith.constant 0 : i32
    %c0_i32_0 = arith.constant 0 : i32
    %c0_i32_1 = arith.constant 0 : i32
    return %c0_i32, %c0_i32_0 : i32, i32
  }
  func.func @transform_3(%arg0: i32, %arg1: i32) -> (i32, i32, i32) {
    %c0_i32 = arith.constant 0 : i32
    %c0_i32_0 = arith.constant 0 : i32
    return %arg0, %arg1, %c0_i32 : i32, i32, i32
  }
  func.func @transform_4(%arg0: i32, %arg1: i32) -> (i32, i32, i32) {
    %c0_i32 = arith.constant 0 : i32
    %c0_i32_0 = arith.constant 0 : i32
    return %arg0, %c0_i32, %arg1 : i32, i32, i32
  }
  func.func @transform_5(%arg0: i32, %arg1: i32) -> (i32, i32, i32) {
    %c0_i32 = arith.constant 0 : i32
    %c0_i32_0 = arith.constant 0 : i32
    return %arg0, %arg1, %c0_i32 : i32, i32, i32
  }
}

module attributes {stable_mosaic.version = 11 : i64} {
  func.func @_flash_kernel(%arg0: i32, %arg1: i32, %arg2: i32, %arg3: memref<1x128x128xbf16, #tpu.memory_space<vmem>>, %arg4: memref<1x128x512xbf16, #tpu.memory_space<vmem>>, %arg5: memref<1x512x128xbf16, #tpu.memory_space<vmem>>, %arg6: memref<1x128x16xf32, #tpu.memory_space<vmem>>, %arg7: memref<128x16xbf16, #tpu.memory_space<vmem>>, %arg8: memref<1x16xf32, #tpu.memory_space<vmem>>, %arg9: memref<1x128x16xf32, #tpu.memory_space<vmem>>, %arg10: memref<128x1xf32, #tpu.memory_space<vmem>>, %arg11: memref<128x1xf32, #tpu.memory_space<vmem>>, %arg12: memref<128x128xf32, #tpu.memory_space<vmem>>) attributes {dimension_semantics = [#tpu.dimension_semantics<parallel>, #tpu.dimension_semantics<parallel>, #tpu.dimension_semantics<arbitrary>], iteration_bounds = array<i64: 2, 4, 4>, scalar_prefetch = 0 : i64, scratch_operands = 3 : i64, tpu.core_type = #tpu.core_type<tc>, window_params = [{transform_indices = @transform_0, window_bounds = array<i64: 1, 128, 128>}, {transform_indices = @transform_1, window_bounds = array<i64: 1, 128, 512>}, {transform_indices = @transform_2, window_bounds = array<i64: 1, 512, 128>}, {transform_indices = @transform_3, window_bounds = array<i64: 1, 128, 16>}, {pipeline_mode = #tpu.pipeline_mode<synchronous>, transform_indices = @transform_4, window_bounds = array<i64: 128, 16>}, {pipeline_mode = #tpu.pipeline_mode<synchronous>, transform_indices = @transform_5, window_bounds = array<i64: 1, 16>}, {transform_indices = @transform_6, window_bounds = array<i64: 1, 128, 16>}]} {
    %c0_i32 = arith.constant 0 : i32
    %0 = arith.cmpi eq, %arg2, %c0_i32 : i32
    %1 = arith.extui %0 : i1 to i32
    %c0_i32_0 = arith.constant 0 : i32
    %2 = arith.cmpi ne, %1, %c0_i32_0 : i32
    scf.if %2 {
      %cst_25 = arith.constant 0xFF800000 : f32
      %48 = vector.broadcast %cst_25 : f32 to vector<128x1xf32>
      %c0_26 = arith.constant 0 : index
      %c0_27 = arith.constant 0 : index
      %49 = vector.load %arg10[%c0_26, %c0_27] : memref<128x1xf32, #tpu.memory_space<vmem>>, vector<128x1xf32>
      tpu.vector_store %arg10[%c0_26, %c0_27], %48 {strides = array<i32>} : memref<128x1xf32, #tpu.memory_space<vmem>>, vector<128x1xf32>,
      %cst_28 = arith.constant 0.000000e+00 : f32
      %50 = vector.broadcast %cst_28 : f32 to vector<128x1xf32>
      %c0_29 = arith.constant 0 : index
      %c0_30 = arith.constant 0 : index
      %51 = vector.load %arg11[%c0_29, %c0_30] : memref<128x1xf32, #tpu.memory_space<vmem>>, vector<128x1xf32>
      tpu.vector_store %arg11[%c0_29, %c0_30], %50 {strides = array<i32>} : memref<128x1xf32, #tpu.memory_space<vmem>>, vector<128x1xf32>,
      %cst_31 = arith.constant 0.000000e+00 : f32
      %52 = vector.broadcast %cst_31 : f32 to vector<128x128xf32>
      %c0_32 = arith.constant 0 : index
      %c0_33 = arith.constant 0 : index
      %53 = vector.load %arg12[%c0_32, %c0_33] : memref<128x128xf32, #tpu.memory_space<vmem>>, vector<128x128xf32>
      tpu.vector_store %arg12[%c0_32, %c0_33], %52 {strides = array<i32>} : memref<128x128xf32, #tpu.memory_space<vmem>>, vector<128x128xf32>,
    } else {
    }
    %c0 = arith.constant 0 : index
    %c0_1 = arith.constant 0 : index
    %c0_2 = arith.constant 0 : index
    %3 = vector.load %arg3[%c0, %c0_1, %c0_2] : memref<1x128x128xbf16, #tpu.memory_space<vmem>>, vector<1x128x128xbf16>
    %4 = vector.shape_cast %3 : vector<1x128x128xbf16> to vector<128x128xbf16>
    %c128_i32 = arith.constant 128 : i32
    %5 = arith.muli %arg2, %c128_i32 : i32
    %6 = tpu.assume_multiple %5, 128 : i32
    %c0_3 = arith.constant 0 : index
    %c0_4 = arith.constant 0 : index
    %7 = arith.index_cast %6 : i32 to index
    %8 = vector.load %arg4[%c0_3, %c0_4, %7] : memref<1x128x512xbf16, #tpu.memory_space<vmem>>, vector<1x128x128xbf16>
    %9 = vector.shape_cast %8 : vector<1x128x128xbf16> to vector<128x128xbf16>
    %c0_5 = arith.constant 0 : index
    %10 = arith.index_cast %6 : i32 to index
    %c0_6 = arith.constant 0 : index
    %11 = vector.load %arg5[%c0_5, %10, %c0_6] : memref<1x512x128xbf16, #tpu.memory_space<vmem>>, vector<1x128x128xbf16>
    %12 = vector.shape_cast %11 : vector<1x128x128xbf16> to vector<128x128xbf16>
    %cst = arith.constant dense<0.000000e+00> : vector<128x128xf32>
    %13 = tpu.matmul %4, %9, %cst {dimension_numbers = #tpu.dot_dimension_numbers<[1], [0], [0], [1], [0, 0, 1, 1], [], []>} : vector<128x128xbf16>, vector<128x128xbf16>, vector<128x128xf32> -> vector<128x128xf32>
    %c128_i32_7 = arith.constant 128 : i32
    %14 = arith.muli %arg2, %c128_i32_7 : i32
    %15 = tpu.iota {dimensions = array<i32: 1>} : vector<128x128xi32>
    %16 = vector.broadcast %14 : i32 to vector<128x128xi32>
    %17 = arith.addi %16, %15 : vector<128x128xi32>
    %c392_i32 = arith.constant 392 : i32
    %18 = vector.broadcast %c392_i32 : i32 to vector<128x128xi32>
    %19 = arith.cmpi slt, %17, %18 : vector<128x128xi32>
    %cst_8 = arith.constant -1.000000e+30 : f32
    %20 = vector.broadcast %cst_8 : f32 to vector<128x128xf32>
    %21 = arith.select %19, %13, %20 : vector<128x128xi1>, vector<128x128xf32>
    %c0_9 = arith.constant 0 : index
    %c0_10 = arith.constant 0 : index
    %22 = vector.load %arg10[%c0_9, %c0_10] : memref<128x1xf32, #tpu.memory_space<vmem>>, vector<128x1xf32>
    %cst_11 = arith.constant dense<0xFF800000> : vector<128xf32>
    %23 = vector.multi_reduction <maximumf>, %21, %cst_11 [1] : vector<128x128xf32> to vector<128xf32>
    %24 = vector.shape_cast %23 : vector<128xf32> to vector<128x1xf32>
    %25 = arith.maximumf %22, %24 : vector<128x1xf32>
    %26 = arith.subf %22, %25 : vector<128x1xf32>
    %27 = math.exp %26 : vector<128x1xf32>
    %28 = vector.broadcast %25 : vector<128x1xf32> to vector<128x128xf32>
    %29 = arith.subf %21, %28 : vector<128x128xf32>
    %30 = math.exp %29 : vector<128x128xf32>
    %c0_12 = arith.constant 0 : index
    %c0_13 = arith.constant 0 : index
    %31 = vector.load %arg11[%c0_12, %c0_13] : memref<128x1xf32, #tpu.memory_space<vmem>>, vector<128x1xf32>
    %32 = arith.mulf %27, %31 : vector<128x1xf32>
    %cst_14 = arith.constant dense<0.000000e+00> : vector<128xf32>
    %33 = vector.multi_reduction <add>, %30, %cst_14 [1] : vector<128x128xf32> to vector<128xf32>
    %34 = vector.shape_cast %33 : vector<128xf32> to vector<128x1xf32>
    %35 = arith.addf %32, %34 : vector<128x1xf32>
    %c0_15 = arith.constant 0 : index
    %c0_16 = arith.constant 0 : index
    %36 = vector.load %arg11[%c0_15, %c0_16] : memref<128x1xf32, #tpu.memory_space<vmem>>, vector<128x1xf32>
    tpu.vector_store %arg11[%c0_15, %c0_16], %35 {strides = array<i32>} : memref<128x1xf32, #tpu.memory_space<vmem>>, vector<128x1xf32>,
    %c0_17 = arith.constant 0 : index
    %c0_18 = arith.constant 0 : index
    %37 = vector.load %arg12[%c0_17, %c0_18] : memref<128x128xf32, #tpu.memory_space<vmem>>, vector<128x128xf32>
    %38 = vector.broadcast %27 : vector<128x1xf32> to vector<128x128xf32>
    %39 = arith.mulf %38, %37 : vector<128x128xf32>
    %40 = arith.truncf %30 : vector<128x128xf32> to vector<128x128xbf16>
    %cst_19 = arith.constant dense<0.000000e+00> : vector<128x128xf32>
    %41 = tpu.matmul %40, %12, %cst_19 {dimension_numbers = #tpu.dot_dimension_numbers<[1], [0], [0], [1], [0, 0, 1, 1], [], []>} : vector<128x128xbf16>, vector<128x128xbf16>, vector<128x128xf32> -> vector<128x128xf32>
    %42 = arith.addf %39, %41 : vector<128x128xf32>
    %c0_20 = arith.constant 0 : index
    %c0_21 = arith.constant 0 : index
    %43 = vector.load %arg12[%c0_20, %c0_21] : memref<128x128xf32, #tpu.memory_space<vmem>>, vector<128x128xf32>
    tpu.vector_store %arg12[%c0_20, %c0_21], %42 {strides = array<i32>} : memref<128x128xf32, #tpu.memory_space<vmem>>, vector<128x128xf32>,
    %c0_22 = arith.constant 0 : index
    %c0_23 = arith.constant 0 : index
    %44 = vector.load %arg10[%c0_22, %c0_23] : memref<128x1xf32, #tpu.memory_space<vmem>>, vector<128x1xf32>
    tpu.vector_store %arg10[%c0_22, %c0_23], %25 {strides = array<i32>} : memref<128x1xf32, #tpu.memory_space<vmem>>, vector<128x1xf32>,
    %c3_i32 = arith.constant 3 : i32
    %45 = arith.cmpi eq, %arg2, %c3_i32 : i32
    %46 = arith.extui %45 : i1 to i32
    %c0_i32_24 = arith.constant 0 : i32
    %47 = arith.cmpi ne, %46, %c0_i32_24 : i32
    scf.if %47 {
      %c0_25 = arith.constant 0 : index
      %c0_26 = arith.constant 0 : index
      %48 = vector.load %arg11[%c0_25, %c0_26] : memref<128x1xf32, #tpu.memory_space<vmem>>, vector<128x1xf32>
      %49 = tpu.reciprocal %48 {approx = true} : vector<128x1xf32> -> vector<128x1xf32>
      %c0_27 = arith.constant 0 : index
      %c0_28 = arith.constant 0 : index
      %50 = vector.load %arg12[%c0_27, %c0_28] : memref<128x128xf32, #tpu.memory_space<vmem>>, vector<128x128xf32>
      %51 = vector.broadcast %49 : vector<128x1xf32> to vector<128x128xf32>
      %52 = arith.mulf %50, %51 : vector<128x128xf32>
      %53 = arith.truncf %52 : vector<128x128xf32> to vector<128x128xbf16>
      %c0_29 = arith.constant 0 : index
      %c0_30 = arith.constant 0 : index
      %c0_31 = arith.constant 0 : index
      %54 = vector.load %arg6[%c0_29, %c0_30, %c0_31] : memref<1x128x16xf32, #tpu.memory_space<vmem>>, vector<1x128x16xf32>
      %55 = vector.shape_cast %54 : vector<1x128x16xf32> to vector<128x16xf32>
      %c0_32 = arith.constant 0 : index
      %c0_33 = arith.constant 0 : index
      %56 = vector.load %arg7[%c0_32, %c0_33] : memref<128x16xbf16, #tpu.memory_space<vmem>>, vector<128x16xbf16>
      %cst_34 = arith.constant dense<0.000000e+00> : vector<128x16xf32>
      %57 = tpu.matmul %53, %56, %cst_34 {dimension_numbers = #tpu.dot_dimension_numbers<[1], [0], [0], [1], [0, 0, 1, 1], [], []>} : vector<128x128xbf16>, vector<128x16xbf16>, vector<128x16xf32> -> vector<128x16xf32>
      %58 = arith.addf %55, %57 : vector<128x16xf32>
      %c0_35 = arith.constant 0 : index
      %c0_36 = arith.constant 0 : index
      %59 = vector.load %arg8[%c0_35, %c0_36] : memref<1x16xf32, #tpu.memory_space<vmem>>, vector<1x16xf32>
      %60 = vector.broadcast %59 : vector<1x16xf32> to vector<128x16xf32>
      %61 = arith.addf %58, %60 : vector<128x16xf32>
      %c0_37 = arith.constant 0 : index
      %c0_38 = arith.constant 0 : index
      %c0_39 = arith.constant 0 : index
      %62 = vector.load %arg9[%c0_37, %c0_38, %c0_39] : memref<1x128x16xf32, #tpu.memory_space<vmem>>, vector<1x128x16xf32>
      %63 = vector.shape_cast %62 : vector<1x128x16xf32> to vector<128x16xf32>
      %64 = vector.shape_cast %61 : vector<128x16xf32> to vector<1x128x16xf32>
      tpu.vector_store %arg9[%c0_37, %c0_38, %c0_39], %64 {strides = array<i32>} : memref<1x128x16xf32, #tpu.memory_space<vmem>>, vector<1x128x16xf32>,
    } else {
    }
    return
  }
  func.func @transform_0(%arg0: i32, %arg1: i32, %arg2: i32) -> (i32, i32, i32) {
    %c0_i32 = arith.constant 0 : i32
    %c0_i32_0 = arith.constant 0 : i32
    return %arg0, %arg1, %c0_i32 : i32, i32, i32
  }
  func.func @transform_1(%arg0: i32, %arg1: i32, %arg2: i32) -> (i32, i32, i32) {
    %c0_i32 = arith.constant 0 : i32
    %c0_i32_0 = arith.constant 0 : i32
    %c0_i32_1 = arith.constant 0 : i32
    return %arg0, %c0_i32, %c0_i32_0 : i32, i32, i32
  }
  func.func @transform_2(%arg0: i32, %arg1: i32, %arg2: i32) -> (i32, i32, i32) {
    %c0_i32 = arith.constant 0 : i32
    %c0_i32_0 = arith.constant 0 : i32
    %c0_i32_1 = arith.constant 0 : i32
    return %arg0, %c0_i32, %c0_i32_0 : i32, i32, i32
  }
  func.func @transform_3(%arg0: i32, %arg1: i32, %arg2: i32) -> (i32, i32, i32) {
    %c0_i32 = arith.constant 0 : i32
    %c0_i32_0 = arith.constant 0 : i32
    return %arg0, %arg1, %c0_i32 : i32, i32, i32
  }
  func.func @transform_4(%arg0: i32, %arg1: i32, %arg2: i32) -> (i32, i32) {
    %c0_i32 = arith.constant 0 : i32
    %c0_i32_0 = arith.constant 0 : i32
    %c0_i32_1 = arith.constant 0 : i32
    return %c0_i32, %c0_i32_0 : i32, i32
  }
  func.func @transform_5(%arg0: i32, %arg1: i32, %arg2: i32) -> (i32, i32) {
    %c0_i32 = arith.constant 0 : i32
    %c0_i32_0 = arith.constant 0 : i32
    %c0_i32_1 = arith.constant 0 : i32
    return %c0_i32, %c0_i32_0 : i32, i32
  }
  func.func @transform_6(%arg0: i32, %arg1: i32, %arg2: i32) -> (i32, i32, i32) {
    %c0_i32 = arith.constant 0 : i32
    %c0_i32_0 = arith.constant 0 : i32
    return %arg0, %arg1, %c0_i32 : i32, i32, i32
  }
}

</mosaic_0001>

<bundles_post_ra>
// kernel: nl3d_wrapper_forward.3
= control target key start
LH: loop header
LB: loop body
LE: loop exit
PB: predicated region body
PF: predicated region fallthrough
CT: control target
= control target key end

     0   :  { %s2387_s21 = smov 0   ;;  %s2389_s22 = smov 0   ;;  %s2989_s0 = inlined_call_operand.vmem [shape: bf16[2,512,128], index: 0, kind: input, shape index: {}]   ;;  %s2990_s1 = inlined_call_operand.vmem [shape: bf16[2,128,512], index: 1, kind: input, shape index: {}]   ;;  %s2991_s2 = inlined_call_operand.vmem [shape: bf16[2,512,128], index: 2, kind: input, shape index: {}]   ;;  %s2992_s3 = inlined_call_operand.vmem [shape: f32[2,512,16], index: 3, kind: input, shape index: {}, may-alias: {3,6}]   ;;  %s2993_s4 = inlined_call_operand.vmem [shape: bf16[128,16], index: 4, kind: input, shape index: {}]   ;;  %s2994_s5 = inlined_call_operand.vmem [shape: f32[1,16], index: 5, kind: input, shape index: {}]   ;;  %s2995_s6 = inlined_call_operand.vmem [shape: f32[2,512,16], index: 6, kind: output, shape index: {}, may-alias: {3,6}]  }
   0x1   :  { %s2391_s23 = smov 0   ;;  %s2393_s24 = smov 0  }
   0x2   :  { %s2395_s25 = smov 0   ;;  %s2397_s26 = smov 0  }
   0x3   :  { %s2399_s27 = smov 0  }
   0x4 LB: > { %s28_s28 = sadd.s32 1, %s2334_s24  ;;  %s31_s29 = sadd.s32 1, %s2338_s25  ;;  %s2346_s27 = sphi %s2399_s27, %s16_s27   ;;  %s2342_s26 = sphi %s2397_s26, %s3003_s26   ;;  %s2338_s25 = sphi %s2395_s25, %s3002_s25   ;;  %s2334_s24 = sphi %s2393_s24, %s3001_s24   ;;  %s2330_s23 = sphi %s2391_s23, %s3000_s23   ;;  %s2326_s22 = sphi %s2389_s22, %s2999_s22   ;;  %s2322_s21 = sphi %s2387_s21, %s2998_s21  }
   0x5   : > { %p29_p0 = scmp.ge.s32.totalorder %s28_s28, 4  ;;  %p1884_p1 = scmp.ge.s32.totalorder %s2346_s27, 1 }
   0x6   : > { %p277_p2 = scmp.lt.s32.totalorder %s2346_s27, 33  ;;  %s35_s30 = sadd.s32 1, %s2342_s26 }
   0x7   : > { %s3005_s28 = smov (%p29_p0, %s28_s28), 0  ;;  %s3007_s29 = smov (!%p29_p0, %s31_s29), %s2338_s25 }
   0x8   : > { %p278_p3 = pnand %p1884_p1, %p277_p2  ;;  %p33_p4 = scmp.ge.s32.totalorder %s3007_s29, 4 }
   0x9   : > { %s1885_s7 = sshll.u32 (!%p278_p3), %s2326_s22, 4  ;;  %p335_p6 = scmp.lt.s32.totalorder (!%p278_p3), %s2330_s23, 1 }
   0xa   : > { %s3009_s29 = smov (%p33_p4, %s3007_s29), 0  ;;  %s3011_s30 = smov (!%p33_p4, %s35_s30), %s2342_s26 }
   0xb   : > { %p37_p5 = scmp.ge.s32.totalorder %s3011_s30, 2  ;;  %281 = sbr.rel (%p278_p3) target bundleno = 1197 (0x4ad), region = 44 }
   0xc   : > { %p337_p7 = scmp.lt.s32.totalorder (!%p278_p3), %s1885_s7, 63  ;;  %p1898_p8 = scmp.ne.s32.totalorder (!%p278_p3), %s2322_s21, 0 }
   0xd   : > { %s3013_s30 = smov (%p37_p5, %s3011_s30), 0 }
   0xe   : > { %2996 = sst [smem:[#allocation5_spill]] %s3013_s30 }
  0x12   : > { %s3015_s23 = smov (!%p335_p6, %s2330_s23), 1  ;;  %s3017_s7 = smov (!%p337_p7, %s1885_s7), 63 }
  0x13   : > { %s1886_s8 = sshll.u32 %s3015_s23, 6  ;;  %s1938_s9 = sshll.u32 %s3015_s23, 8  ;;  %vm379_vm0 = vcmask (!%p1898_p8), 7168   ;;  %v2348_v0 = vmov (!%p1898_p8), -inf   ;;  %v2349_v1 = vmov (!%p1898_p8), 0.0  }
  0x14   : > { %s340_s10 = sadd.s32 %s1886_s8, %s3017_s7  ;;  %s2434_s13 = scalar_lea.vmem %s2990_s1, %s1938_s9  ;;  %380 = vst.msk [vmem:[#allocation2] sm:$0xff] (!%p1898_p8), %vm379_vm0, %v2348_v0  ;;  %381 = vst.msk [vmem:[#allocation2 + $0x8] sm:$0xff] (!%p1898_p8), %vm379_vm0, %v2348_v0 }
  0x15   : > { %s1887_s14 = sshll.u32 %s340_s10, 2  ;;  %s2439_s17 = scalar_lea.vmem %s2991_s2, %s1938_s9  ;;  %382 = vst.msk [vmem:[#allocation2 + $0x10] sm:$0xff] (!%p1898_p8), %vm379_vm0, %v2348_v0  ;;  %383 = vst.msk [vmem:[#allocation2 + $0x18] sm:$0xff] (!%p1898_p8), %vm379_vm0, %v2348_v0 }
  0x16   : > { %s2444_s20 = scalar_lea.vmem %s2989_s0, %s1887_s14  ;;  %s1894_s22 = sshll.u32 %s340_s10, 3  ;;  %384 = vst.msk [vmem:[#allocation2 + $0x20] sm:$0xff] (!%p1898_p8), %vm379_vm0, %v2348_v0  ;;  %385 = vst.msk [vmem:[#allocation2 + $0x28] sm:$0xff] (!%p1898_p8), %vm379_vm0, %v2348_v0 }
  0x17   : > { %s2449_s7 = scalar_lea.vmem %s2992_s3, %s1894_s22  ;;  %s2454_s12 = scalar_lea.vmem %s2995_s6, %s1894_s22  ;;  %386 = vst.msk [vmem:[#allocation2 + $0x30] sm:$0xff] (!%p1898_p8), %vm379_vm0, %v2348_v0  ;;  %387 = vst.msk [vmem:[#allocation2 + $0x38] sm:$0xff] (!%p1898_p8), %vm379_vm0, %v2348_v0 }
  0x18   : > { %378 = sbr.rel (%p1898_p8) target bundleno = 44 (0x2c), region = 48  ;;  %388 = vst.msk [vmem:[#allocation2 + $0x40] sm:$0xff] (!%p1898_p8), %vm379_vm0, %v2348_v0  ;;  %389 = vst.msk [vmem:[#allocation2 + $0x48] sm:$0xff] (!%p1898_p8), %vm379_vm0, %v2348_v0 }
  0x19   : > { %390 = vst.msk [vmem:[#allocation2 + $0x50] sm:$0xff] (!%p1898_p8), %vm379_vm0, %v2348_v0  ;;  %391 = vst.msk [vmem:[#allocation2 + $0x58] sm:$0xff] (!%p1898_p8), %vm379_vm0, %v2348_v0 }
  0x1a   : > { %392 = vst.msk [vmem:[#allocation2 + $0x60] sm:$0xff] (!%p1898_p8), %vm379_vm0, %v2348_v0  ;;  %393 = vst.msk [vmem:[#allocation2 + $0x68] sm:$0xff] (!%p1898_p8), %vm379_vm0, %v2348_v0 }
  0x1b   : > { %394 = vst.msk [vmem:[#allocation2 + $0x70] sm:$0xff] (!%p1898_p8), %vm379_vm0, %v2348_v0  ;;  %395 = vst.msk [vmem:[#allocation2 + $0x78] sm:$0xff] (!%p1898_p8), %vm379_vm0, %v2348_v0 }
  0x1c   : > { %396 = vst.msk [vmem:[#allocation3] sm:$0xff] (!%p1898_p8), %vm379_vm0, %v2349_v1  ;;  %397 = vst.msk [vmem:[#allocation3 + $0x8] sm:$0xff] (!%p1898_p8), %vm379_vm0, %v2349_v1 }
  0x1d   : > { %398 = vst.msk [vmem:[#allocation3 + $0x10] sm:$0xff] (!%p1898_p8), %vm379_vm0, %v2349_v1  ;;  %399 = vst.msk [vmem:[#allocation3 + $0x18] sm:$0xff] (!%p1898_p8), %vm379_vm0, %v2349_v1 }
  0x1e   : > { %400 = vst.msk [vmem:[#allocation3 + $0x20] sm:$0xff] (!%p1898_p8), %vm379_vm0, %v2349_v1  ;;  %401 = vst.msk [vmem:[#allocation3 + $0x28] sm:$0xff] (!%p1898_p8), %vm379_vm0, %v2349_v1 }
  0x1f   : > { %402 = vst.msk [vmem:[#allocation3 + $0x30] sm:$0xff] %vm379_vm0, %v2349_v1  ;;  %403 = vst.msk [vmem:[#allocation3 + $0x38] sm:$0xff] %vm379_vm0, %v2349_v1 }
  0x20   : > { %404 = vst.msk [vmem:[#allocation3 + $0x40] sm:$0xff] %vm379_vm0, %v2349_v1  ;;  %405 = vst.msk [vmem:[#allocation3 + $0x48] sm:$0xff] %vm379_vm0, %v2349_v1 }
  0x21   : > { %406 = vst.msk [vmem:[#allocation3 + $0x50] sm:$0xff] %vm379_vm0, %v2349_v1  ;;  %407 = vst.msk [vmem:[#allocation3 + $0x58] sm:$0xff] %vm379_vm0, %v2349_v1 }
  0x22   : > { %408 = vst.msk [vmem:[#allocation3 + $0x60] sm:$0xff] %vm379_vm0, %v2349_v1  ;;  %409 = vst.msk [vmem:[#allocation3 + $0x68] sm:$0xff] %vm379_vm0, %v2349_v1 }
  0x23   : > { %410 = vst.msk [vmem:[#allocation3 + $0x70] sm:$0xff] %vm379_vm0, %v2349_v1  ;;  %411 = vst.msk [vmem:[#allocation3 + $0x78] sm:$0xff] %vm379_vm0, %v2349_v1 }
  0x24   : > { %412 = vst [vmem:[#allocation4] sm:$0xff] %v2349_v1  ;;  %413 = vst [vmem:[#allocation4 + $0x8] sm:$0xff] %v2349_v1 }
  0x25   : > { %414 = vst [vmem:[#allocation4 + $0x10] sm:$0xff] %v2349_v1  ;;  %415 = vst [vmem:[#allocation4 + $0x18] sm:$0xff] %v2349_v1 }
  0x26   : > { %416 = vst [vmem:[#allocation4 + $0x20] sm:$0xff] %v2349_v1  ;;  %417 = vst [vmem:[#allocation4 + $0x28] sm:$0xff] %v2349_v1 }
  0x27   : > { %418 = vst [vmem:[#allocation4 + $0x30] sm:$0xff] %v2349_v1  ;;  %419 = vst [vmem:[#allocation4 + $0x38] sm:$0xff] %v2349_v1 }
  0x28   : > { %420 = vst [vmem:[#allocation4 + $0x40] sm:$0xff] %v2349_v1  ;;  %421 = vst [vmem:[#allocation4 + $0x48] sm:$0xff] %v2349_v1 }
  0x29   : > { %422 = vst [vmem:[#allocation4 + $0x50] sm:$0xff] %v2349_v1  ;;  %423 = vst [vmem:[#allocation4 + $0x58] sm:$0xff] %v2349_v1 }
  0x2a   : > { %424 = vst [vmem:[#allocation4 + $0x60] sm:$0xff] %v2349_v1  ;;  %425 = vst [vmem:[#allocation4 + $0x68] sm:$0xff] %v2349_v1 }
  0x2b   : > { %426 = vst [vmem:[#allocation4 + $0x70] sm:$0xff] %v2349_v1  ;;  %427 = vst [vmem:[#allocation4 + $0x78] sm:$0xff] %v2349_v1 }
  0x2c PF: > { %s2490_s30 = sshll.u32 %s2322_s21, 7  ;;  %v2170_v2 = vld [vmem:[%s2444_s20] sm:$0xff]   ;;  %v2171_v11 = vld [vmem:[%s2444_s20 + $0x8] sm:$0xff]   ;;  %v2172_v12 = vld [vmem:[%s2444_s20 + $0x10] sm:$0xff]   ;;  %v678_v18 = vlaneseq  ;;  %v2350_v40 = vmov 0   ;;  %vm1019_vm2 = vcmask 7168  }
  0x2d   : > { %s445_s9 = sshra.s32 %s2490_s30, 7  ;;  %2004 = vmatprep.mubr.bf16.mxu0 %v2170_v2  ;;  %v2173_v13 = vld [vmem:[%s2444_s20 + $0x18] sm:$0xff]   ;;  %v2174_v14 = vld [vmem:[%s2444_s20 + $0x20] sm:$0xff]   ;;  %v2175_v15 = vld [vmem:[%s2444_s20 + $0x28] sm:$0xff]   ;;  %v680_v20 = vstv %s2490_s30  ;;  %2161 = vset.pattern.permute.xlu1 %v2350_v40  ;;  %p1926_p9 = scmp.ne.s32.totalorder %s2322_s21, 3 }
  0x2e   : > { %s1900_s10 = sshll.u32 %s445_s9, 2  ;;  %v2176_v16 = vld [vmem:[%s2444_s20 + $0x30] sm:$0xff]   ;;  %v2177_v17 = vld [vmem:[%s2444_s20 + $0x38] sm:$0xff]   ;;  %v679_v19 = vand.u32 127, %v678_v18  ;;  %2160 = vset.pattern.permute.xlu0 %v2350_v40  ;;  %v2575_v58 = vld [vmem:[#allocation2] sm:$0xff]  ;;  %vm1721_vm3 = vcmask (!%p1926_p9), 130048  }
  0x2f   : > { %s448_s14 = scalar_lea.vmem %s2434_s13, %s1900_s10  ;;  %s465_s13 = sshra.s32 %s2490_s30, 3  ;;  %v2573_v57 = vld [vmem:[#allocation2 + $0x10] sm:$0xff]  ;;  %v2583_v63 = vld [vmem:[#allocation2 + $0x18] sm:$0xff]  ;;  %v2588_v0 = vld [vmem:[#allocation2 + $0x8] sm:$0xff] }
  0x30   : > { %v2162_v3 = vld [vmem:[%s448_s14] ss:$16 sps:$4 sm:$0xff]   ;;  %v681_v21 = vadd.s32 %v680_v20, %v679_v19  ;;  %s1901_s15 = sshll.u32 %s465_s13, 2 }
  0x31   : > { %v2163_v4 = vld [vmem:[%s448_s14 + $0x20] ss:$16 sps:$4 sm:$0xff]   ;;  %1988 = vmatprep.subr.bf16.mxu0 %v2162_v3  ;;  %s2569_s16 = scalar_lea.vmem %s2439_s17, %s1901_s15 }
  0x32   : > { %1989 = vmatpush3.bf16.msra.mxu0 %v2162_v3  ;;  %v2164_v5 = vld [vmem:[%s448_s14 + $0x40] ss:$16 sps:$4 sm:$0xff]   ;;  %vm682_vm1 = vcmp.lt.s32.totalorder %v681_v21, 392  ;;  %v2179_v56 = vld [vmem:[%s2569_s16 + $0x8] sm:$0xff]  }
  0x33   : > { %1990 = vmatprep.subr.bf16.mxu0 %v2163_v4  ;;  %v2165_v6 = vld [vmem:[%s448_s14 + $0x60] ss:$16 sps:$4 sm:$0xff]   ;;  %v2183_v21 = vld [vmem:[%s2569_s16 + $0x28] sm:$0xff]  }
  0x34   : > { %v2166_v7 = vld [vmem:[%s448_s14 + $0x80] ss:$16 sps:$4 sm:$0xff]  }
  0x35   : > { %v2167_v8 = vld [vmem:[%s448_s14 + $0xa0] ss:$16 sps:$4 sm:$0xff]  }
  0x36   : > { %1991 = vmatpush3.bf16.msra.mxu0 %v2163_v4  ;;  %v2168_v9 = vld [vmem:[%s448_s14 + $0xc0] ss:$16 sps:$4 sm:$0xff]  }
  0x37   : > { %1992 = vmatprep.subr.bf16.mxu0 %v2164_v5  ;;  %v2169_v10 = vld [vmem:[%s448_s14 + $0xe0] ss:$16 sps:$4 sm:$0xff]  }
  0x38   : > { %v2178_v55 = vld [vmem:[%s2569_s16] sm:$0xff]   ;;  %v2180_v1 = vld [vmem:[%s2569_s16 + $0x10] sm:$0xff]  }
  0x39   : > { %2020 = vmatprep.subr.bf16.mxu1 %v2178_v55  ;;  %v2632_v20 = vld [vmem:[#allocation2 + $0x40] sm:$0xff] }
  0x3a   : > { %1993 = vmatpush3.bf16.msra.mxu0 %v2164_v5  ;;  %2021 = vmatpush3.bf16.msra.mxu1 %v2178_v55 }
  0x3b   : > { %1994 = vmatprep.subr.bf16.mxu0 %v2165_v6  ;;  %2022 = vmatprep.subr.bf16.mxu1 %v2179_v56 }
  0x3e   : > { %1995 = vmatpush3.bf16.msra.mxu0 %v2165_v6  ;;  %2023 = vmatpush3.bf16.msra.mxu1 %v2179_v56  ;;  %v2603_v6 = vld [vmem:[#allocation2 + $0x20] sm:$0xff] }
  0x3f   : > { %1996 = vmatprep.subr.bf16.mxu0 %v2166_v7  ;;  %2024 = vmatprep.subr.bf16.mxu1 %v2180_v1 }
  0x42   : > { %1997 = vmatpush3.bf16.msra.mxu0 %v2166_v7  ;;  %2025 = vmatpush3.bf16.msra.mxu1 %v2180_v1  ;;  %v2181_v7 = vld [vmem:[%s2569_s16 + $0x18] sm:$0xff]   ;;  %v712_v1 = vld [vmem:[#allocation2 + $0x68] sm:$0xff] }
  0x43   : > { %1998 = vmatprep.subr.bf16.mxu0 %v2167_v8  ;;  %2026 = vmatprep.subr.bf16.mxu1 %v2181_v7 }
  0x46   : > { %1999 = vmatpush3.bf16.msra.mxu0 %v2167_v8  ;;  %v2608_v8 = vld [vmem:[#allocation2 + $0x38] sm:$0xff]  ;;  %2027 = vmatpush3.bf16.msra.mxu1 %v2181_v7 }
  0x47   : > { %2000 = vmatprep.subr.bf16.mxu0 %v2168_v9 }
  0x4a   : > { %2001 = vmatpush3.bf16.msra.mxu0 %v2168_v9 }
  0x4b   : > { %2002 = vmatprep.subr.bf16.mxu0 %v2169_v10 }
  0x4e   : > { %2003 = vmatpush3.bf16.msra.mxu0 %v2169_v10 }
  0x51   : > { %2005 = vmatmul.mubr.bf16.vlgmr.msra.gmra.mrb[0].mxu0 %v2171_v11 }
  0x52   : > { %2008 = vmatprep.mubr.bf16.mxu0 %v2172_v12 }
  0x59   : > { %2009 = vmatmul.mubr.bf16.gmra.mrb[4].mxu0 %v2173_v13  ;;  %v2617_v13 = vld [vmem:[#allocation2 + $0x30] sm:$0xff] }
  0x5a   : > { %2012 = vmatprep.mubr.bf16.mxu0 %v2174_v14  ;;  %v2182_v14 = vld [vmem:[%s2569_s16 + $0x20] sm:$0xff]  }
  0x5b   : > { %2028 = vmatprep.subr.bf16.mxu1 %v2182_v14 }
  0x5c   : > { %2029 = vmatpush3.bf16.msra.mxu1 %v2182_v14 }
  0x5d   : > { %2030 = vmatprep.subr.bf16.mxu1 %v2183_v21 }
  0x60   : > { %2031 = vmatpush3.bf16.msra.mxu1 %v2183_v21 }
  0x61   : > { %2013 = vmatmul.mubr.bf16.gmra.mrb[8].mxu0 %v2175_v15  ;;  %v2622_v15 = vld [vmem:[#allocation2 + $0x28] sm:$0xff] }
  0x62   : > { %2016 = vmatprep.mubr.bf16.mxu0 %v2176_v16 }
  0x69   : > { %2017 = vmatmul.mubr.bf16.gmra.mrb[12].mxu0 %v2177_v17 }
 0x124   : > { %v2006_v22 = vpop.f32.mrb[0].mxu0 }
 0x125   : > { %v615_v23 = vpop.f32.mrb[1].mxu0  ;;  %v2504_v24 = vsel %vm682_vm1, %v2006_v22, -1e+30  ;;  %v2638_v22 = vld [vmem:[#allocation2 + $0x58] sm:$0xff] }
 0x126   : > { %719 = vmax.xlane.f32.xlu1 %v2504_v24  ;;  %v2007_v25 = vpop.f32.mrb[2].mxu0  ;;  %v2508_v26 = vsel %vm682_vm1, %v615_v23, -1e+30 }
 0x127   : > { %715 = vmax.xlane.f32.xlu0 %v2508_v26  ;;  %v618_v27 = vpop.f32.mrb[3].mxu0  ;;  %v2512_v28 = vsel %vm682_vm1, %v2007_v25, -1e+30 }
 0x128   : > { %v2516_v29 = vsel %vm682_vm1, %v618_v27, -1e+30 }
 0x12a   : > { %721 = vmax.xlane.f32.xlu1 %v2512_v28 }
 0x12b   : > { %717 = vmax.xlane.f32.xlu0 %v2516_v29 }
 0x12c   : > { %v2010_v30 = vpop.f32.mrb[4].mxu0 }
 0x12d   : > { %v631_v31 = vpop.f32.mrb[5].mxu0  ;;  %v2528_v36 = vsel %vm682_vm1, %v2010_v30, -1e+30 }
 0x12e   : > { %v2011_v32 = vpop.f32.mrb[6].mxu0  ;;  %v2520_v33 = vsel %vm682_vm1, %v631_v31, -1e+30  ;;  %v2648_v31 = vld [vmem:[#allocation2 + $0x50] sm:$0xff] }
 0x12f   : > { %723 = vmax.xlane.f32.xlu0 %v2520_v33  ;;  %v634_v34 = vpop.f32.mrb[7].mxu0  ;;  %v2524_v35 = vsel %vm682_vm1, %v2011_v32, -1e+30  ;;  %v2184_v32 = vld [vmem:[%s2569_s16 + $0x30] sm:$0xff]  }
 0x130   : > { %729 = vmax.xlane.f32.xlu1 %v2524_v35  ;;  %v2532_v37 = vsel %vm682_vm1, %v634_v34, -1e+30  ;;  %v2654_v34 = vld [vmem:[#allocation2 + $0x48] sm:$0xff]  ;;  %2032 = vmatprep.subr.bf16.mxu1 %v2184_v32 }
 0x131   : > { %2033 = vmatpush3.bf16.msra.mxu1 %v2184_v32 }
 0x133   : > { %727 = vmax.xlane.f32.xlu0 %v2528_v36 }
 0x134   : > { %725 = vmax.xlane.f32.xlu1 %v2532_v37  ;;  %v2014_v38 = vpop.f32.mrb[8].mxu0 }
 0x135   : > { %v647_v39 = vpop.f32.mrb[9].mxu0  ;;  %v2544_v45 = vsel %vm682_vm1, %v2014_v38, -1e+30 }
 0x136   : > { %v2015_v41 = vpop.f32.mrb[10].mxu0  ;;  %v2536_v42 = vsel %vm682_vm1, %v647_v39, -1e+30 }
 0x137   : > { %v2539_v43 = vsel %vm682_vm1, %v2015_v41, -1e+30  ;;  %731 = vmax.xlane.f32.xlu0 %v2536_v42  ;;  %v650_v44 = vpop.f32.mrb[11].mxu0 }
 0x138   : > { %737 = vmax.xlane.f32.xlu1 %v2539_v43  ;;  %v2547_v46 = vsel %vm682_vm1, %v650_v44, -1e+30 }
 0x13b   : > { %735 = vmax.xlane.f32.xlu0 %v2544_v45 }
 0x13c   : > { %733 = vmax.xlane.f32.xlu1 %v2547_v46  ;;  %v2018_v47 = vpop.f32.mrb[12].mxu0 }
 0x13d   : > { %v663_v48 = vpop.f32.mrb[13].mxu0  ;;  %v2560_v53 = vsel %vm682_vm1, %v2018_v47, -1e+30  ;;  %v2666_v47 = vld [vmem:[#allocation2 + $0x60] sm:$0xff] }
 0x13e   : > { %v2019_v49 = vpop.f32.mrb[14].mxu0  ;;  %v2552_v50 = vsel %vm682_vm1, %v663_v48, -1e+30  ;;  %v2185_v48 = vld [vmem:[%s2569_s16 + $0x38] sm:$0xff]  }
 0x13f   : > { %v2555_v51 = vsel %vm682_vm1, %v2019_v49, -1e+30  ;;  %739 = vmax.xlane.f32.xlu0 %v2552_v50  ;;  %v666_v52 = vpop.f32.mrb[15].mxu0  ;;  %v2672_v49 = vld [vmem:[#allocation2 + $0x78] sm:$0xff]  ;;  %2034 = vmatprep.subr.bf16.mxu1 %v2185_v48 }
 0x140   : > { %745 = vmax.xlane.f32.xlu1 %v2555_v51  ;;  %v2563_v54 = vsel %vm682_vm1, %v666_v52, -1e+30  ;;  %2035 = vmatpush3.bf16.msra.mxu1 %v2185_v48 }
 0x143   : > { %743 = vmax.xlane.f32.xlu0 %v2560_v53 }
 0x144   : > { %741 = vmax.xlane.f32.xlu1 %v2563_v54 }
 0x1b3   : > { %v720_v59 = vpop.xlane.xlu1 %719 }
 0x1b4   : > { %v2578_v60 = vmax.f32 %v2573_v57, %v720_v59  ;;  %v716_v61 = vpop.xlane.xlu0 %715 }
 0x1b5   : > { %v2581_v62 = vmax.f32 %v2575_v58, %v716_v61 }
 0x1b6   : > { %1335 = vst.msk [vmem:[#allocation2 + $0x10] sm:$0xff] %vm1019_vm2, %v2578_v60  ;;  %823 = vperm.xlu1 %2161, %v2578_v60  }
 0x1b7   : > { %1333 = vst.msk [vmem:[#allocation2] sm:$0xff] %vm1019_vm2, %v2581_v62  ;;  %v722_v2 = vpop.xlane.xlu1 %721  ;;  %813 = vperm.xlu0 %2160, %v2581_v62   ;;  %v763_v39 = vsub.f32 %v2575_v58, %v2581_v62  ;;  %v2685_v62 = vld [vmem:[#allocation2 + $0x70] sm:$0xff] }
 0x1b8   : > { %v2595_v3 = vmax.f32 %v2583_v63, %v722_v2  ;;  %v718_v4 = vpop.xlane.xlu0 %717 }
 0x1b9   : > { %v2598_v5 = vmax.f32 %v2588_v0, %v718_v4  ;;  %v779_v55 = vmul.f32 1.442695, %v763_v39 }
 0x1ba   : > { %1336 = vst.msk [vmem:[#allocation2 + $0x18] sm:$0xff] %vm1019_vm2, %v2595_v3  ;;  %828 = vperm.xlu1 %2161, %v2595_v3   ;;  %v766_v56 = vsub.f32 %v2583_v63, %v2595_v3 }
 0x1bb   : > { %1334 = vst.msk [vmem:[#allocation2 + $0x8] sm:$0xff] %vm1019_vm2, %v2598_v5  ;;  %v764_v2 = vsub.f32 %v2588_v0, %v2598_v5  ;;  %2186 = vpow2.f32 %v779_v55 }
 0x1bc   : > { %v724_v9 = vpop.xlane.xlu0 %723  ;;  %v785_v4 = vmul.f32 1.442695, %v766_v56 }
 0x1bd   : > { %v2611_v10 = vmax.f32 %v2603_v6, %v724_v9  ;;  %v730_v11 = vpop.xlane.xlu1 %729 }
 0x1be   : > { %v2614_v12 = vmax.f32 %v2608_v8, %v730_v11  ;;  %818 = vperm.xlu1 %2161, %v2598_v5   ;;  %v765_v5 = vsub.f32 %v2573_v57, %v2578_v60  ;;  %2188 = vpow2.f32 %v785_v4 }
 0x1bf   : > { %1337 = vst.msk [vmem:[#allocation2 + $0x20] sm:$0xff] %vm1019_vm2, %v2611_v10  ;;  %v767_v21 = vsub.f32 %v2603_v6, %v2611_v10 }
 0x1c0   : > { %1340 = vst.msk [vmem:[#allocation2 + $0x38] sm:$0xff] %vm1019_vm2, %v2614_v12  ;;  %v728_v16 = vpop.xlane.xlu0 %727 }
 0x1c1   : > { %v2627_v17 = vmax.f32 %v2617_v13, %v728_v16  ;;  %v726_v18 = vpop.xlane.xlu1 %725  ;;  %v781_v16 = vmul.f32 1.442695, %v764_v2 }
 0x1c2   : > { %v2630_v19 = vmax.f32 %v2622_v15, %v726_v18 }
 0x1c3   : > { %1339 = vst.msk [vmem:[#allocation2 + $0x30] sm:$0xff] %vm1019_vm2, %v2627_v17  ;;  %843 = vperm.xlu1 %2161, %v2627_v17   ;;  %2190 = vpow2.f32 %v781_v16 }
 0x1c4   : > { %1338 = vst.msk [vmem:[#allocation2 + $0x28] sm:$0xff] %vm1019_vm2, %v2630_v19  ;;  %v732_v23 = vpop.xlane.xlu0 %731  ;;  %v768_v7 = vsub.f32 %v2622_v15, %v2630_v19  ;;  %v770_v15 = vsub.f32 %v2608_v8, %v2614_v12  ;;  %v787_v8 = vmul.f32 1.442695, %v767_v21 }
 0x1c5   : > { %v738_v25 = vpop.xlane.xlu1 %737  ;;  %v2643_v27 = vmax.f32 %v2632_v20, %v732_v23  ;;  %v2718_v60 = vpop.eup %2186 }
 0x1c6   : > { %v2646_v30 = vmax.f32 %v2638_v22, %v738_v25  ;;  %v789_v18 = vmul.f32 1.442695, %v768_v7  ;;  %v793_v23 = vmul.f32 1.442695, %v770_v15 }
 0x1c7   : > { %1341 = vst.msk [vmem:[#allocation2 + $0x40] sm:$0xff] %vm1019_vm2, %v2643_v27  ;;  %833 = vperm.xlu1 %2161, %v2611_v10  }
 0x1c8   : > { %1344 = vst.msk [vmem:[#allocation2 + $0x58] sm:$0xff] %vm1019_vm2, %v2646_v30  ;;  %v736_v38 = vpop.xlane.xlu0 %735  ;;  %2192 = vpow2.f32 %v789_v18  ;;  %v774_v57 = vsub.f32 %v2638_v22, %v2646_v30  ;;  %v2726_v25 = vpop.eup %2188 }
 0x1c9   : > { %v734_v40 = vpop.xlane.xlu1 %733  ;;  %v2661_v41 = vmax.f32 %v2648_v31, %v736_v38 }
 0x1ca   : > { %v2664_v44 = vmax.f32 %v2654_v34, %v734_v40  ;;  %v801_v6 = vmul.f32 1.442695, %v774_v57 }
 0x1cb   : > { %1343 = vst.msk [vmem:[#allocation2 + $0x50] sm:$0xff] %vm1019_vm2, %v2661_v41  ;;  %838 = vperm.xlu1 %2161, %v2630_v19   ;;  %v783_v19 = vmul.f32 1.442695, %v765_v5 }
 0x1cc   : > { %1342 = vst.msk [vmem:[#allocation2 + $0x48] sm:$0xff] %vm1019_vm2, %v2664_v44  ;;  %858 = vperm.xlu0 %2160, %v2664_v44   ;;  %v740_v52 = vpop.xlane.xlu0 %739  ;;  %v772_v10 = vsub.f32 %v2654_v34, %v2664_v44  ;;  %v771_v34 = vsub.f32 %v2632_v20, %v2643_v27 }
 0x1cd   : > { %v746_v58 = vpop.xlane.xlu1 %745  ;;  %v2680_v59 = vmax.f32 %v2666_v47, %v740_v52  ;;  %2194 = vpow2.f32 %v783_v19  ;;  %v2732_v32 = vpop.eup %2190 }
 0x1ce   : > { %v2683_v61 = vmax.f32 %v2672_v49, %v746_v58  ;;  %2196 = vpow2.f32 %v793_v23  ;;  %v795_v44 = vmul.f32 1.442695, %v771_v34 }
 0x1cf   : > { %1345 = vst.msk [vmem:[#allocation2 + $0x60] sm:$0xff] %vm1019_vm2, %v2680_v59  ;;  %848 = vperm.xlu1 %2161, %v2614_v12   ;;  %v769_v12 = vsub.f32 %v2617_v13, %v2627_v17  ;;  %2198 = vpow2.f32 %v787_v8  ;;  %v797_v13 = vmul.f32 1.442695, %v772_v10  ;;  %v775_v48 = vsub.f32 %v2666_v47, %v2680_v59 }
 0x1d0   : > { %v778_v63 = vsub.f32 %v2672_v49, %v2683_v61  ;;  %1348 = vst.msk [vmem:[#allocation2 + $0x78] sm:$0xff] %vm1019_vm2, %v2683_v61  ;;  %868 = vperm.xlu0 %2160, %v2646_v30   ;;  %v744_v3 = vpop.xlane.xlu0 %743  ;;  %v773_v30 = vsub.f32 %v2648_v31, %v2661_v41  ;;  %2200 = vpow2.f32 %v801_v6 }
 0x1d1   : > { %v742_v9 = vpop.xlane.xlu1 %741  ;;  %v2700_v11 = vmax.f32 %v2685_v62, %v744_v3  ;;  %v791_v22 = vmul.f32 1.442695, %v769_v12  ;;  %v803_v52 = vmul.f32 1.442695, %v775_v48 }
 0x1d2   : > { %v760_v14 = vmax.f32 %v712_v1, %v742_v9  ;;  %v2734_v38 = vpop.eup %2192  ;;  %v799_v39 = vmul.f32 1.442695, %v773_v30 }
 0x1d3   : > { %v777_v0 = vsub.f32 %v2685_v62, %v2700_v11  ;;  %1347 = vst.msk [vmem:[#allocation2 + $0x70] sm:$0xff] %vm1019_vm2, %v2700_v11  ;;  %853 = vperm.xlu1 %2161, %v2643_v27   ;;  %2202 = vpow2.f32 %v791_v22 }
 0x1d4   : > { %1346 = vst.msk [vmem:[#allocation2 + $0x68] sm:$0xff] %vm1019_vm2, %v760_v14  ;;  %878 = vperm.xlu0 %2160, %v760_v14   ;;  %v776_v17 = vsub.f32 %v712_v1, %v760_v14  ;;  %2204 = vpow2.f32 %v797_v13 }
 0x1d5   : > { %2206 = vpow2.f32 %v799_v39 }
 0x1d6   : > { %v805_v31 = vmul.f32 1.442695, %v776_v17 }
 0x1d7   : > { %863 = vperm.xlu1 %2161, %v2661_v41   ;;  %v2740_v40 = vpop.eup %2194 }
 0x1d8   : > { %888 = vperm.xlu0 %2160, %v2683_v61   ;;  %v2742_v41 = vpop.eup %2196  ;;  %2208 = vpow2.f32 %v805_v31 }
 0x1d9   : > { %v2748_v20 = vpop.eup %2198  ;;  %2210 = vpow2.f32 %v795_v44 }
 0x1da   : > { %v2750_v27 = vpop.eup %2200  ;;  %2212 = vpow2.f32 %v803_v52 }
 0x1db   : > { %873 = vperm.xlu1 %2161, %v2680_v59  }
 0x1dc   : > { %1054 = vperm.xlu0 %2160, %v2718_v60  }
 0x1dd   : > { %v2754_v55 = vpop.eup %2202 }
 0x1de   : > { %v2756_v56 = vpop.eup %2204 }
 0x1df   : > { %883 = vperm.xlu1 %2161, %v2700_v11   ;;  %v2760_v47 = vpop.eup %2206 }
 0x1e0   : > { %1069 = vperm.xlu0 %2160, %v2726_v25  }
 0x1e2   : > { %v2762_v58 = vpop.eup %2208 }
 0x1e3   : > { %1059 = vperm.xlu1 %2161, %v2732_v32   ;;  %v2766_v59 = vpop.eup %2210 }
 0x1e4   : > { %1079 = vperm.xlu0 %2160, %v2734_v38   ;;  %v2769_v1 = vpop.eup %2212 }
 0x1e7   : > { %1064 = vperm.xlu1 %2161, %v2740_v40  }
 0x1e8   : > { %1089 = vperm.xlu0 %2160, %v2742_v41  }
 0x1eb   : > { %1074 = vperm.xlu1 %2161, %v2748_v20  }
 0x1ec   : > { %1109 = vperm.xlu0 %2160, %v2750_v27  }
 0x1ef   : > { %1084 = vperm.xlu1 %2161, %v2754_v55  }
 0x1f0   : > { %1099 = vperm.xlu0 %2160, %v2756_v56  }
 0x1f3   : > { %1104 = vperm.xlu1 %2161, %v2760_v47  }
 0x1f4   : > { %1119 = vperm.xlu0 %2160, %v2762_v58  }
 0x1f7   : > { %1094 = vperm.xlu1 %2161, %v2766_v59  }
 0x1fb   : > { %1114 = vperm.xlu1 %2161, %v2769_v1  }
 0x235   : > { %v824_v2 = vpop.permute.xlu1 %823 }
 0x236   : > { %v893_v3 = vsub.f32 %v2504_v24, %v824_v2  ;;  %v814_v4 = vpop.permute.xlu0 %813 }
 0x237   : > { %v891_v7 = vsub.f32 %v2508_v26, %v814_v4 }
 0x238   : > { %v911_v9 = vmul.f32 1.442695, %v893_v3 }
 0x239   : > { %v907_v14 = vmul.f32 1.442695, %v891_v7  ;;  %v829_v5 = vpop.permute.xlu1 %828 }
 0x23a   : > { %2214 = vpow2.f32 %v911_v9  ;;  %v894_v16 = vsub.f32 %v2512_v28, %v829_v5 }
 0x23b   : > { %2216 = vpow2.f32 %v907_v14 }
 0x23c   : > { %v913_v15 = vmul.f32 1.442695, %v894_v16 }
 0x23d   : > { %v819_v18 = vpop.permute.xlu1 %818 }
 0x23e   : > { %2218 = vpow2.f32 %v913_v15  ;;  %v892_v19 = vsub.f32 %v2516_v29, %v819_v18 }
 0x240   : > { %v909_v21 = vmul.f32 1.442695, %v892_v19 }
 0x242   : > { %2220 = vpow2.f32 %v909_v21  ;;  %v844_v23 = vpop.permute.xlu1 %843 }
 0x243   : > { %v897_v24 = vsub.f32 %v2528_v36, %v844_v23 }
 0x244   : > { %v2215_v57 = vpop.eup %2214 }
 0x245   : > { %v2217_v8 = vpop.eup %2216  ;;  %v919_v26 = vmul.f32 1.442695, %v897_v24  ;;  %975 = vadd.xlane.f32.xlu0 %v2215_v57 }
 0x246   : > { %971 = vadd.xlane.f32.xlu1 %v2217_v8  ;;  %v834_v12 = vpop.permute.xlu1 %833 }
 0x247   : > { %2222 = vpow2.f32 %v919_v26  ;;  %v895_v28 = vsub.f32 %v2520_v33, %v834_v12 }
 0x248   : > { %v2219_v6 = vpop.eup %2218 }
 0x249   : > { %v915_v10 = vmul.f32 1.442695, %v895_v28  ;;  %v1149_v31 = vpack.c.bf16 %v2219_v6, %v2215_v57 }
 0x24a   : > { %977 = vadd.xlane.f32.xlu1 %v2219_v6  ;;  %v839_v22 = vpop.permute.xlu1 %838 }
 0x24b   : > { %2224 = vpow2.f32 %v915_v10  ;;  %v896_v29 = vsub.f32 %v2532_v37, %v839_v22  ;;  %v859_v30 = vpop.permute.xlu0 %858 }
 0x24c   : > { %v2221_v13 = vpop.eup %2220  ;;  %v900_v34 = vsub.f32 %v2547_v46, %v859_v30 }
 0x24d   : > { %v917_v17 = vmul.f32 1.442695, %v896_v29  ;;  %973 = vadd.xlane.f32.xlu0 %v2221_v13  ;;  %v1148_v36 = vpack.c.bf16 %v2221_v13, %v2217_v8 }
 0x24e   : > { %v849_v39 = vpop.permute.xlu1 %848  ;;  %v925_v2 = vmul.f32 1.442695, %v900_v34 }
 0x24f   : > { %2226 = vpow2.f32 %v917_v17  ;;  %v898_v44 = vsub.f32 %v2524_v35, %v849_v39  ;;  %v869_v33 = vpop.permute.xlu0 %868  ;;  %2036 = vmatprep.mubr.bf16.mxu1 %v1148_v36  ;;  %v807_v39 = vmul.f32 1.442695, %v777_v0 }
 0x250   : > { %2037 = vmatmul.mubr.bf16.vlgmr.msra.gmra.mrb[0].mxu1 %v1149_v31  ;;  %v902_v37 = vsub.f32 %v2539_v43, %v869_v33  ;;  %v809_v31 = vmul.f32 1.442695, %v778_v63 }
 0x251   : > { %v2223_v48 = vpop.eup %2222  ;;  %v921_v52 = vmul.f32 1.442695, %v898_v44 }
 0x252   : > { %983 = vadd.xlane.f32.xlu0 %v2223_v48  ;;  %v854_v3 = vpop.permute.xlu1 %853  ;;  %v929_v14 = vmul.f32 1.442695, %v902_v37 }
 0x253   : > { %2228 = vpow2.f32 %v921_v52  ;;  %v899_v4 = vsub.f32 %v2536_v42, %v854_v3  ;;  %v879_v7 = vpop.permute.xlu0 %878 }
 0x254   : > { %2230 = vpow2.f32 %v925_v2  ;;  %v904_v35 = vsub.f32 %v2563_v54, %v879_v7 }
 0x255   : > { %v2225_v46 = vpop.eup %2224  ;;  %v923_v9 = vmul.f32 1.442695, %v899_v4 }
 0x256   : > { %979 = vadd.xlane.f32.xlu0 %v2225_v46  ;;  %v864_v5 = vpop.permute.xlu1 %863  ;;  %v933_v19 = vmul.f32 1.442695, %v904_v35 }
 0x257   : > { %2232 = vpow2.f32 %v923_v9  ;;  %v901_v16 = vsub.f32 %v2544_v45, %v864_v5  ;;  %v889_v15 = vpop.permute.xlu0 %888 }
 0x258   : > { %2234 = vpow2.f32 %v929_v14  ;;  %v906_v21 = vsub.f32 %v2555_v51, %v889_v15  ;;  %v939_v14 = vld [vmem:[#allocation3] sm:$0xff] }
 0x259   : > { %v2227_v18 = vpop.eup %2226  ;;  %v927_v43 = vmul.f32 1.442695, %v901_v16  ;;  %v955_v16 = vmul.f32 %v2718_v60, %v939_v14  ;;  %v945_v60 = vld [vmem:[#allocation3 + $0x30] sm:$0xff] }
 0x25a   : > { %v874_v42 = vpop.permute.xlu1 %873  ;;  %v1150_v23 = vpack.c.bf16 %v2227_v18, %v2225_v46  ;;  %v937_v8 = vmul.f32 1.442695, %v906_v21  ;;  %v941_v46 = vld [vmem:[#allocation3 + $0x10] sm:$0xff] }
 0x25b   : > { %2236 = vpow2.f32 %v927_v43  ;;  %v903_v24 = vsub.f32 %v2552_v50, %v874_v42  ;;  %v957_v35 = vmul.f32 %v2740_v40, %v941_v46  ;;  %v942_v43 = vld [vmem:[#allocation3 + $0x18] sm:$0xff]  ;;  %v940_v42 = vld [vmem:[#allocation3 + $0x8] sm:$0xff] }
 0x25c   : > { %2040 = vmatprep.mubr.bf16.mxu1 %v1150_v23  ;;  %2238 = vpow2.f32 %v933_v19  ;;  %v958_v21 = vmul.f32 %v2726_v25, %v942_v43 }
 0x25d   : > { %v2229_v57 = vpop.eup %2228  ;;  %v931_v54 = vmul.f32 1.442695, %v903_v24 }
 0x25e   : > { %985 = vadd.xlane.f32.xlu1 %v2229_v57  ;;  %v884_v26 = vpop.permute.xlu1 %883  ;;  %v1151_v45 = vpack.c.bf16 %v2229_v57, %v2223_v48  ;;  %v2231_v28 = vpop.eup %2230  ;;  %v956_v57 = vmul.f32 %v2732_v32, %v940_v42  ;;  %v946_v32 = vld [vmem:[#allocation3 + $0x38] sm:$0xff]  ;;  %v951_v42 = vld [vmem:[#allocation3 + $0x60] sm:$0xff] }
 0x25f   : > { %2240 = vpow2.f32 %v931_v54  ;;  %v905_v12 = vsub.f32 %v2560_v53, %v884_v26  ;;  %v2800_v48 = vpop.permute.xlu0 %1054 }
 0x260   : > { %2041 = vmatmul.mubr.bf16.gmra.mrb[4].mxu1 %v1151_v45  ;;  %2242 = vpow2.f32 %v937_v8  ;;  %v961_v8 = vmul.f32 %v2754_v55, %v945_v60  ;;  %v943_v45 = vld [vmem:[#allocation3 + $0x20] sm:$0xff] }
 0x261   : > { %v2233_v6 = vpop.eup %2232  ;;  %v935_v51 = vmul.f32 1.442695, %v905_v12  ;;  %v959_v25 = vmul.f32 %v2748_v20, %v943_v45  ;;  %v1037_v45 = vld [vmem:[#allocation4 + $0x8] sm:$0xff] }
 0x262   : > { %981 = vadd.xlane.f32.xlu1 %v2227_v18  ;;  %v1152_v10 = vpack.c.bf16 %v2231_v28, %v2233_v6  ;;  %v2235_v50 = vpop.eup %2234  ;;  %v2802_v52 = vpop.permute.xlu1 %1059 }
 0x263   : > { %2244 = vpow2.f32 %v935_v51  ;;  %v2804_v62 = vpop.permute.xlu0 %1069  ;;  %v962_v51 = vmul.f32 %v2742_v41, %v946_v32  ;;  %v947_v41 = vld [vmem:[#allocation3 + $0x40] sm:$0xff]  ;;  %v1133_v32 = vmul.f32 %v2802_v52, %v1037_v45 }
 0x264   : > { %2044 = vmatprep.mubr.bf16.mxu1 %v1152_v10  ;;  %2246 = vpow2.f32 %v807_v39  ;;  %v948_v39 = vld [vmem:[#allocation3 + $0x48] sm:$0xff] }
 0x265   : > { %v2237_v22 = vpop.eup %2236  ;;  %2248 = vpow2.f32 %v809_v31  ;;  %v964_v14 = vmul.f32 %v2756_v56, %v948_v39 }
 0x266   : > { %993 = vadd.xlane.f32.xlu1 %v2235_v50  ;;  %991 = vadd.xlane.f32.xlu0 %v2237_v22  ;;  %v1153_v29 = vpack.c.bf16 %v2235_v50, %v2237_v22  ;;  %v2239_v30 = vpop.eup %2238  ;;  %v2806_v11 = vpop.permute.xlu1 %1064  ;;  %v944_v50 = vld [vmem:[#allocation3 + $0x28] sm:$0xff] }
 0x267   : > { %v2808_v0 = vpop.permute.xlu0 %1079  ;;  %v960_v55 = vmul.f32 %v2734_v38, %v944_v50  ;;  %v963_v38 = vmul.f32 %v2766_v59, %v947_v41  ;;  %v952_v59 = vld [vmem:[#allocation3 + $0x68] sm:$0xff] }
 0x268   : > { %2045 = vmatmul.mubr.bf16.gmra.mrb[8].mxu1 %v1153_v29 }
 0x269   : > { %v2241_v13 = vpop.eup %2240 }
 0x26a   : > { %989 = vadd.xlane.f32.xlu1 %v2231_v28  ;;  %987 = vadd.xlane.f32.xlu0 %v2233_v6  ;;  %v1154_v53 = vpack.c.bf16 %v2239_v30, %v2241_v13  ;;  %v2243_v17 = vpop.eup %2242  ;;  %v2810_v49 = vpop.permute.xlu1 %1074 }
 0x26b   : > { %v2812_v61 = vpop.permute.xlu0 %1089 }
 0x26c   : > { %2048 = vmatprep.mubr.bf16.mxu1 %v1154_v53 }
 0x26d   : > { %v2245_v36 = vpop.eup %2244 }
 0x26e   : > { %1001 = vadd.xlane.f32.xlu1 %v2243_v17  ;;  %999 = vadd.xlane.f32.xlu0 %v2245_v36  ;;  %v1155_v34 = vpack.c.bf16 %v2243_v17, %v2245_v36  ;;  %v2794_v44 = vpop.eup %2246  ;;  %v2814_v63 = vpop.permute.xlu1 %1084 }
 0x26f   : > { %v2797_v33 = vpop.eup %2248  ;;  %v2816_v2 = vpop.permute.xlu0 %1109 }
 0x270   : > { %2049 = vmatmul.mubr.bf16.gmra.mrb[12].mxu1 %v1155_v34 }
 0x272   : > { %997 = vadd.xlane.f32.xlu1 %v2239_v30  ;;  %995 = vadd.xlane.f32.xlu0 %v2241_v13  ;;  %v2818_v37 = vpop.permute.xlu1 %1104  ;;  %v949_v30 = vld [vmem:[#allocation3 + $0x50] sm:$0xff]  ;;  %v950_v13 = vld [vmem:[#allocation3 + $0x58] sm:$0xff] }
 0x273   : > { %v2820_v3 = vpop.permute.xlu0 %1099  ;;  %v965_v20 = vmul.f32 %v2760_v47, %v949_v30  ;;  %v966_v17 = vmul.f32 %v2750_v27, %v950_v13  ;;  %v954_v47 = vld [vmem:[#allocation3 + $0x78] sm:$0xff] }
 0x274   : > { %v970_v43 = vmul.f32 %v2797_v33, %v954_v47  ;;  %v1043_v30 = vld [vmem:[#allocation4 + $0x38] sm:$0xff] }
 0x275   : > { %v1139_v52 = vmul.f32 %v2812_v61, %v1043_v30 }
 0x276   : > { %v2822_v4 = vpop.permute.xlu1 %1094 }
 0x277   : > { %v2824_v7 = vpop.permute.xlu0 %1119 }
 0x27a   : > { %v2826_v9 = vpop.permute.xlu1 %1114 }
 0x283   : > { %1124 = vperm.xlu1 %2161, %v2794_v44  }
 0x288   : > { %1129 = vperm.xlu0 %2160, %v2797_v33   ;;  %v1038_v33 = vld [vmem:[#allocation4 + $0x10] sm:$0xff] }
 0x2d2   : > { %v976_v5 = vpop.xlane.xlu0 %975 }
 0x2d3   : > { %v1005_v15 = vadd.f32 %v976_v5, %v957_v35  ;;  %v972_v18 = vpop.xlane.xlu1 %971 }
 0x2d4   : > { %v1003_v19 = vadd.f32 %v972_v18, %v955_v16  ;;  %v953_v16 = vld [vmem:[#allocation3 + $0x70] sm:$0xff] }
 0x2d5   : > { %1022 = vst.msk [vmem:[#allocation3 + $0x10] sm:$0xff] %vm1019_vm2, %v1005_v15  ;;  %v969_v18 = vmul.f32 %v2794_v44, %v953_v16 }
 0x2d6   : > { %1020 = vst.msk [vmem:[#allocation3] sm:$0xff] %vm1019_vm2, %v1003_v19 }
 0x2d7   : > { %v978_v23 = vpop.xlane.xlu1 %977 }
 0x2d8   : > { %v1006_v24 = vadd.f32 %v978_v23, %v958_v21 }
 0x2da   : > { %1023 = vst.msk [vmem:[#allocation3 + $0x18] sm:$0xff] %vm1019_vm2, %v1006_v24  ;;  %v974_v40 = vpop.xlane.xlu0 %973  ;;  %v967_v24 = vmul.f32 %v2769_v1, %v951_v42 }
 0x2db   : > { %v1004_v54 = vadd.f32 %v974_v40, %v956_v57  ;;  %v968_v57 = vmul.f32 %v2762_v58, %v952_v59 }
 0x2dd   : > { %1021 = vst.msk [vmem:[#allocation3 + $0x8] sm:$0xff] %vm1019_vm2, %v1004_v54 }
 0x2df   : > { %v984_v26 = vpop.xlane.xlu0 %983 }
 0x2e0   : > { %v1009_v12 = vadd.f32 %v984_v26, %v961_v8  ;;  %v1036_v8 = vld [vmem:[#allocation4] sm:$0xff]  ;;  %v1039_v26 = vld [vmem:[#allocation4 + $0x18] sm:$0xff] }
 0x2e1   : > { %v1135_v1 = vmul.f32 %v2804_v62, %v1039_v26 }
 0x2e2   : > { %1026 = vst.msk [vmem:[#allocation3 + $0x30] sm:$0xff] %vm1019_vm2, %v1009_v12  ;;  %v1134_v12 = vmul.f32 %v2806_v11, %v1038_v33  ;;  %v1040_v11 = vld [vmem:[#allocation4 + $0x20] sm:$0xff] }
 0x2e3   : > { %v980_v28 = vpop.xlane.xlu0 %979  ;;  %v1136_v62 = vmul.f32 %v2810_v49, %v1040_v11  ;;  %v1045_v49 = vld [vmem:[#allocation4 + $0x48] sm:$0xff] }
 0x2e4   : > { %v1007_v6 = vadd.f32 %v980_v28, %v959_v25  ;;  %v1132_v25 = vmul.f32 %v2800_v48, %v1036_v8  ;;  %v1041_v48 = vld [vmem:[#allocation4 + $0x28] sm:$0xff] }
 0x2e6   : > { %1024 = vst.msk [vmem:[#allocation3 + $0x20] sm:$0xff] %vm1019_vm2, %v1007_v6 }
 0x2eb   : > { %v986_v10 = vpop.xlane.xlu1 %985 }
 0x2ec   : > { %v1010_v22 = vadd.f32 %v986_v10, %v962_v51 }
 0x2ed   : > { %v1357_v30 = vld [vmem:[#allocation3 + $0x20] sm:$0xff] (!%p1926_p9) }
 0x2ee   : > { %1027 = vst.msk [vmem:[#allocation3 + $0x38] sm:$0xff] %vm1019_vm2, %v1010_v22 }
 0x2ef   : > { %v982_v29 = vpop.xlane.xlu1 %981 }
 0x2f0   : > { %v1008_v53 = vadd.f32 %v982_v29, %v960_v55  ;;  %v1042_v29 = vld [vmem:[#allocation4 + $0x30] sm:$0xff] }
 0x2f1   : > { %v1138_v13 = vmul.f32 %v2814_v63, %v1042_v29  ;;  %v1047_v63 = vld [vmem:[#allocation4 + $0x58] sm:$0xff] }
 0x2f2   : > { %1025 = vst.msk [vmem:[#allocation3 + $0x28] sm:$0xff] %vm1019_vm2, %v1008_v53 }
 0x2f3   : > { %v992_v36 = vpop.xlane.xlu0 %991  ;;  %v994_v34 = vpop.xlane.xlu1 %993 }
 0x2f4   : > { %v1013_v31 = vadd.f32 %v992_v36, %v965_v20  ;;  %v1014_v46 = vadd.f32 %v994_v34, %v966_v17  ;;  %v1137_v36 = vmul.f32 %v2808_v0, %v1041_v48  ;;  %v1143_v0 = vmul.f32 %v2816_v2, %v1047_v63 }
 0x2f6   : > { %1030 = vst.msk [vmem:[#allocation3 + $0x50] sm:$0xff] %vm1019_vm2, %v1013_v31  ;;  %1031 = vst.msk [vmem:[#allocation3 + $0x58] sm:$0xff] %vm1019_vm2, %v1014_v46  ;;  %v1046_v46 = vld [vmem:[#allocation4 + $0x50] sm:$0xff] }
 0x2f7   : > { %v988_v35 = vpop.xlane.xlu0 %987  ;;  %v990_v5 = vpop.xlane.xlu1 %989 }
 0x2f8   : > { %v1011_v15 = vadd.f32 %v988_v35, %v963_v38  ;;  %v1012_v27 = vadd.f32 %v990_v5, %v964_v14  ;;  %v1044_v14 = vld [vmem:[#allocation4 + $0x40] sm:$0xff]  ;;  %v1142_v35 = vmul.f32 %v2818_v37, %v1046_v46  ;;  %v1051_v37 = vld [vmem:[#allocation4 + $0x78] sm:$0xff] }
 0x2f9   : > { %v1140_v61 = vmul.f32 %v2822_v4, %v1044_v14  ;;  %v1358_v29 = vld [vmem:[#allocation3 + $0x28] sm:$0xff] (!%p1926_p9) }
 0x2fa   : > { %1028 = vst.msk [vmem:[#allocation3 + $0x40] sm:$0xff] %vm1019_vm2, %v1011_v15  ;;  %1029 = vst.msk [vmem:[#allocation3 + $0x48] sm:$0xff] %vm1019_vm2, %v1012_v27  ;;  %v1141_v15 = vmul.f32 %v2820_v3, %v1045_v49  ;;  %v2258_v49 = vld [vmem:[%s2993_s4 + $0x30] sm:$0xff] (!%p1926_p9)  }
 0x2fb   : > { %v1000_v19 = vpop.xlane.xlu0 %999  ;;  %v1002_v21 = vpop.xlane.xlu1 %1001 }
 0x2fc   : > { %v1017_v23 = vadd.f32 %v1000_v19, %v969_v18  ;;  %v1018_v56 = vadd.f32 %v1002_v21, %v970_v43  ;;  %v1050_v21 = vld [vmem:[#allocation4 + $0x70] sm:$0xff] }
 0x2fe   : > { %1034 = vst.msk [vmem:[#allocation3 + $0x70] sm:$0xff] %vm1019_vm2, %v1017_v23  ;;  %1035 = vst.msk [vmem:[#allocation3 + $0x78] sm:$0xff] %vm1019_vm2, %v1018_v56  ;;  %v1048_v23 = vld [vmem:[#allocation4 + $0x60] sm:$0xff]  ;;  %v1049_v56 = vld [vmem:[#allocation4 + $0x68] sm:$0xff] }
 0x2ff   : > { %v996_v40 = vpop.xlane.xlu0 %995  ;;  %v998_v54 = vpop.xlane.xlu1 %997 }
 0x300   : > { %v1015_v60 = vadd.f32 %v996_v40, %v967_v24  ;;  %v1016_v44 = vadd.f32 %v998_v54, %v968_v57  ;;  %v1144_v24 = vmul.f32 %v2826_v9, %v1048_v23  ;;  %v1353_v9 = vld [vmem:[#allocation3] sm:$0xff] (!%p1926_p9) }
 0x302   : > { %1032 = vst.msk [vmem:[#allocation3 + $0x60] sm:$0xff] %vm1019_vm2, %v1015_v60  ;;  %1033 = vst.msk [vmem:[#allocation3 + $0x68] sm:$0xff] %vm1019_vm2, %v1016_v44  ;;  %v1145_v60 = vmul.f32 %v2824_v7, %v1049_v56  ;;  %v1354_v7 = vld [vmem:[#allocation3 + $0x8] sm:$0xff] (!%p1926_p9) }
 0x303   : > { %v1125_v42 = vpop.permute.xlu1 %1124 }
 0x304   : > { %v1146_v2 = vmul.f32 %v1125_v42, %v1050_v21 }
 0x305   : > { %v1368_v46 = vld [vmem:[#allocation3 + $0x78] sm:$0xff] (!%p1926_p9)  ;;  %v1367_v14 = vld [vmem:[#allocation3 + $0x70] sm:$0xff] (!%p1926_p9) }
 0x307   : > { %v1130_v4 = vpop.permute.xlu0 %1129 }
 0x308   : > { %v1147_v3 = vmul.f32 %v1130_v4, %v1051_v37 }
 0x323   : > { %v2038_v28 = vpop.f32.mrb[0].mxu1 }
 0x324   : > { %v1303_v58 = vadd.f32 %v2038_v28, %v1134_v12  ;;  %v1238_v6 = vpop.f32.mrb[1].mxu1  ;;  %v1361_v12 = vld [vmem:[#allocation3 + $0x40] sm:$0xff] (!%p1926_p9)  ;;  %v2351_v28 = vmov (!%p1926_p9), 0  }
 0x325   : > { %v1301_v51 = vadd.f32 %v1238_v6, %v1132_v25  ;;  %v2039_v10 = vpop.f32.mrb[2].mxu1  ;;  %v1362_v25 = vld [vmem:[#allocation3 + $0x48] sm:$0xff] (!%p1926_p9)  ;;  %2251 = vset.pattern.permute.xlu1 (!%p1926_p9), %v2351_v28  ;;  %2250 = vset.pattern.permute.xlu0 (!%p1926_p9), %v2351_v28  ;;  %2260 = vrcp.f32 (!%p1926_p9), %v1361_v12  ;;  %v2252_v6 = vld [vmem:[%s2993_s4] sm:$0xff] (!%p1926_p9)  }
 0x326   : > { %1319 = vst [vmem:[#allocation4 + $0x10] sm:$0xff] %v1303_v58  ;;  %v1304_v50 = vadd.f32 %v2039_v10, %v1135_v1  ;;  %v1241_v22 = vpop.f32.mrb[3].mxu1  ;;  %2262 = vrcp.f32 (!%p1926_p9), %v1353_v9  ;;  %v1356_v1 = vld [vmem:[#allocation3 + $0x18] sm:$0xff] (!%p1926_p9)  ;;  %v1355_v58 = vld [vmem:[#allocation3 + $0x10] sm:$0xff] (!%p1926_p9)  ;;  %2052 = vmatprep.subr.bf16.mxu0 (!%p1926_p9), %v2252_v6  ;;  %2084 = vmatprep.subr.bf16.mxu1 (!%p1926_p9), %v2252_v6 }
 0x327   : > { %1317 = vst [vmem:[#allocation4] sm:$0xff] %v1301_v51  ;;  %v1302_v55 = vadd.f32 %v1241_v22, %v1133_v32  ;;  %2264 = vrcp.f32 (!%p1926_p9), %v1362_v25  ;;  %v2253_v32 = vld [vmem:[%s2993_s4 + $0x8] sm:$0xff] (!%p1926_p9)   ;;  %v1364_v51 = vld [vmem:[#allocation3 + $0x58] sm:$0xff] (!%p1926_p9)  ;;  %v1363_v10 = vld [vmem:[#allocation3 + $0x50] sm:$0xff] (!%p1926_p9)  ;;  %2053 = vmatpush3.bf16.msra.mxu0 (!%p1926_p9), %v2252_v6  ;;  %2092 = vmatpush3.bf16.msra.mxu1 (!%p1926_p9), %v2252_v6 }
 0x328   : > { %1320 = vst [vmem:[#allocation4 + $0x18] sm:$0xff] %v1304_v50  ;;  %2266 = vrcp.f32 (!%p1926_p9), %v1354_v7  ;;  %2054 = vmatprep.subr.bf16.mxu0 (!%p1926_p9), %v2253_v32  ;;  %2085 = vmatprep.subr.bf16.mxu1 (!%p1926_p9), %v2253_v32  ;;  %v2254_v50 = vld [vmem:[%s2993_s4 + $0x10] sm:$0xff] (!%p1926_p9)  }
 0x329   : > { %1318 = vst [vmem:[#allocation4 + $0x8] sm:$0xff] %v1302_v55  ;;  %2268 = vrcp.f32 (!%p1926_p9), %v1356_v1 }
 0x32a   : > { %2270 = vrcp.f32 (!%p1926_p9), %v1355_v58 }
 0x32b   : > { %2272 = vrcp.f32 (!%p1926_p9), %v1364_v51  ;;  %2055 = vmatpush3.bf16.msra.mxu0 (!%p1926_p9), %v2253_v32  ;;  %2093 = vmatpush3.bf16.msra.mxu1 (!%p1926_p9), %v2253_v32 }
 0x32c   : > { %2274 = vrcp.f32 (!%p1926_p9), %v1363_v10  ;;  %2056 = vmatprep.subr.bf16.mxu0 (!%p1926_p9), %v2254_v50  ;;  %2086 = vmatprep.subr.bf16.mxu1 (!%p1926_p9), %v2254_v50 }
 0x32d   : > { %2276 = vrcp.f32 (!%p1926_p9), %v1358_v29 }
 0x32e   : > { %2278 = vrcp.f32 (!%p1926_p9), %v1357_v30  ;;  %v1385_v21 = vld [vmem:[#allocation4] sm:$0xff] (!%p1926_p9) }
 0x32f   : > { %v2261_v22 = vpop.eup (!%p1926_p9), %2260  ;;  %2057 = vmatpush3.bf16.msra.mxu0 (!%p1926_p9), %v2254_v50  ;;  %2094 = vmatpush3.bf16.msra.mxu1 (!%p1926_p9), %v2254_v50 }
 0x330   : > { %v2263_v55 = vpop.eup (!%p1926_p9), %2262  ;;  %1443 = vperm.xlu1 (!%p1926_p9), %2251, %v2261_v22   ;;  %v1386_v42 = vld [vmem:[#allocation4 + $0x8] sm:$0xff] (!%p1926_p9) }
 0x331   : > { %v2265_v11 = vpop.eup (!%p1926_p9), %2264  ;;  %1403 = vperm.xlu0 (!%p1926_p9), %2250, %v2263_v55  }
 0x332   : > { %v2267_v48 = vpop.eup (!%p1926_p9), %2266 }
 0x333   : > { %v2042_v53 = vpop.f32.mrb[4].mxu1 }
 0x334   : > { %v1307_v20 = vadd.f32 %v2042_v53, %v1138_v13  ;;  %v1254_v17 = vpop.f32.mrb[5].mxu1  ;;  %v2255_v13 = vld [vmem:[%s2993_s4 + $0x18] sm:$0xff] (!%p1926_p9)   ;;  %1448 = vperm.xlu1 (!%p1926_p9), %2251, %v2265_v11   ;;  %v2269_v53 = vpop.eup (!%p1926_p9), %2268 }
 0x335   : > { %v1305_v34 = vadd.f32 %v1254_v17, %v1136_v62  ;;  %v2043_v41 = vpop.f32.mrb[6].mxu1  ;;  %v1366_v62 = vld [vmem:[#allocation3 + $0x68] sm:$0xff] (!%p1926_p9)  ;;  %1408 = vperm.xlu0 (!%p1926_p9), %2250, %v2267_v48   ;;  %2058 = vmatprep.subr.bf16.mxu0 (!%p1926_p9), %v2255_v13  ;;  %v2256_v17 = vld [vmem:[%s2993_s4 + $0x20] sm:$0xff] (!%p1926_p9)  }
 0x336   : > { %1323 = vst [vmem:[#allocation4 + $0x30] sm:$0xff] %v1307_v20  ;;  %v1308_v39 = vadd.f32 %v2043_v41, %v1139_v52  ;;  %v1257_v31 = vpop.f32.mrb[7].mxu1  ;;  %v1365_v52 = vld [vmem:[#allocation3 + $0x60] sm:$0xff] (!%p1926_p9)  ;;  %v2271_v20 = vpop.eup (!%p1926_p9), %2270  ;;  %2280 = vrcp.f32 (!%p1926_p9), %v1366_v62  ;;  %2087 = vmatprep.subr.bf16.mxu1 (!%p1926_p9), %v2255_v13  ;;  %v1359_v41 = vld [vmem:[#allocation3 + $0x30] sm:$0xff] (!%p1926_p9)  ;;  %2059 = vmatpush3.bf16.msra.mxu0 (!%p1926_p9), %v2255_v13 }
 0x337   : > { %1321 = vst [vmem:[#allocation4 + $0x20] sm:$0xff] %v1305_v34  ;;  %v1306_v38 = vadd.f32 %v1257_v31, %v1137_v36  ;;  %2282 = vrcp.f32 (!%p1926_p9), %v1365_v52  ;;  %v1360_v36 = vld [vmem:[#allocation3 + $0x38] sm:$0xff] (!%p1926_p9)  ;;  %v2273_v34 = vpop.eup (!%p1926_p9), %2272  ;;  %2060 = vmatprep.subr.bf16.mxu0 (!%p1926_p9), %v2256_v17  ;;  %2095 = vmatpush3.bf16.msra.mxu1 (!%p1926_p9), %v2255_v13  ;;  %v2257_v31 = vld [vmem:[%s2993_s4 + $0x28] sm:$0xff] (!%p1926_p9)  }
 0x338   : > { %1324 = vst [vmem:[#allocation4 + $0x38] sm:$0xff] %v1308_v39  ;;  %1418 = vperm.xlu1 (!%p1926_p9), %2251, %v2269_v53   ;;  %v2275_v39 = vpop.eup (!%p1926_p9), %2274  ;;  %2284 = vrcp.f32 (!%p1926_p9), %v1360_v36  ;;  %2088 = vmatprep.subr.bf16.mxu1 (!%p1926_p9), %v2256_v17 }
 0x339   : > { %1322 = vst [vmem:[#allocation4 + $0x28] sm:$0xff] %v1306_v38  ;;  %1413 = vperm.xlu0 (!%p1926_p9), %2250, %v2271_v20   ;;  %2286 = vrcp.f32 (!%p1926_p9), %v1359_v41  ;;  %v2277_v38 = vpop.eup (!%p1926_p9), %2276 }
 0x33a   : > { %2061 = vmatpush3.bf16.msra.mxu0 (!%p1926_p9), %v2256_v17  ;;  %v2279_v63 = vpop.eup (!%p1926_p9), %2278  ;;  %2288 = vrcp.f32 (!%p1926_p9), %v1368_v46 }
 0x33b   : > { %v2046_v5 = vpop.f32.mrb[8].mxu1  ;;  %2062 = vmatprep.subr.bf16.mxu0 (!%p1926_p9), %v2257_v31  ;;  %2096 = vmatpush3.bf16.msra.mxu1 (!%p1926_p9), %v2256_v17  ;;  %2290 = vrcp.f32 (!%p1926_p9), %v1367_v14 }
 0x33c   : > { %v1311_v16 = vadd.f32 %v2046_v5, %v1142_v35  ;;  %v1270_v47 = vpop.f32.mrb[9].mxu1  ;;  %1458 = vperm.xlu1 (!%p1926_p9), %2251, %v2273_v34   ;;  %2089 = vmatprep.subr.bf16.mxu1 (!%p1926_p9), %v2257_v31  ;;  %v2259_v5 = vld [vmem:[%s2993_s4 + $0x38] sm:$0xff] (!%p1926_p9)  }
 0x33d   : > { %v1309_v27 = vadd.f32 %v1270_v47, %v1140_v61  ;;  %v2047_v18 = vpop.f32.mrb[10].mxu1  ;;  %1453 = vperm.xlu0 (!%p1926_p9), %2250, %v2275_v39   ;;  %v1391_v62 = vld [vmem:[#allocation4 + $0x30] sm:$0xff] (!%p1926_p9) }
 0x33e   : > { %1327 = vst [vmem:[#allocation4 + $0x50] sm:$0xff] %v1311_v16  ;;  %v1312_v43 = vadd.f32 %v2047_v18, %v1143_v0  ;;  %v1273_v19 = vpop.f32.mrb[11].mxu1  ;;  %2063 = vmatpush3.bf16.msra.mxu0 (!%p1926_p9), %v2257_v31  ;;  %v1389_v1 = vld [vmem:[#allocation4 + $0x20] sm:$0xff] (!%p1926_p9) }
 0x33f   : > { %1325 = vst [vmem:[#allocation4 + $0x40] sm:$0xff] %v1309_v27  ;;  %v1310_v59 = vadd.f32 %v1273_v19, %v1141_v15  ;;  %2064 = vmatprep.subr.bf16.mxu0 (!%p1926_p9), %v2258_v49  ;;  %2097 = vmatpush3.bf16.msra.mxu1 (!%p1926_p9), %v2257_v31  ;;  %v1392_v13 = vld [vmem:[#allocation4 + $0x38] sm:$0xff] (!%p1926_p9) }
 0x340   : > { %1328 = vst [vmem:[#allocation4 + $0x58] sm:$0xff] %v1312_v43  ;;  %1428 = vperm.xlu1 (!%p1926_p9), %2251, %v2277_v38   ;;  %v2281_v35 = vpop.eup (!%p1926_p9), %2280  ;;  %2090 = vmatprep.subr.bf16.mxu1 (!%p1926_p9), %v2258_v49  ;;  %v1390_v7 = vld [vmem:[#allocation4 + $0x28] sm:$0xff] (!%p1926_p9) }
 0x341   : > { %1326 = vst [vmem:[#allocation4 + $0x48] sm:$0xff] %v1310_v59  ;;  %1423 = vperm.xlu0 (!%p1926_p9), %2250, %v2279_v63   ;;  %v2283_v61 = vpop.eup (!%p1926_p9), %2282 }
 0x342   : > { %v2285_v0 = vpop.eup (!%p1926_p9), %2284  ;;  %2065 = vmatpush3.bf16.msra.mxu0 (!%p1926_p9), %v2258_v49 }
 0x343   : > { %v2050_v57 = vpop.f32.mrb[12].mxu1  ;;  %1352 = sbr.rel (%p1926_p9) target bundleno = 1197 (0x4ad), region = 52  ;;  %v2287_v16 = vpop.eup (!%p1926_p9), %2286  ;;  %2066 = vmatprep.subr.bf16.mxu0 (!%p1926_p9), %v2259_v5  ;;  %2098 = vmatpush3.bf16.msra.mxu1 (!%p1926_p9), %v2258_v49  ;;  %v1507_v49 = vld [vmem:[%s2449_s7 + $0x10] sm:$0xff] (!%p1926_p9) }
 0x344   : > { %v1315_v40 = vadd.f32 %v2050_v57, %v1146_v2  ;;  %v1286_v54 = vpop.f32.mrb[13].mxu1  ;;  %1468 = vperm.xlu1 (!%p1926_p9), %2251, %v2281_v35   ;;  %2091 = vmatprep.subr.bf16.mxu1 (!%p1926_p9), %v2259_v5  ;;  %v2289_v47 = vpop.eup (!%p1926_p9), %2288  ;;  %v1387_v57 = vld [vmem:[#allocation4 + $0x10] sm:$0xff] (!%p1926_p9)  ;;  %v2903_v35 = vld [vmem:[%s2994_s5] ss:$0 sm:$0xff] (!%p1926_p9) }
 0x345   : > { %v1313_v44 = vadd.f32 %v1286_v54, %v1144_v24  ;;  %v2051_v33 = vpop.f32.mrb[14].mxu1  ;;  %1463 = vperm.xlu0 (!%p1926_p9), %2250, %v2283_v61   ;;  %v2291_v15 = vpop.eup (!%p1926_p9), %2290  ;;  %v1388_v24 = vld [vmem:[#allocation4 + $0x18] sm:$0xff] (!%p1926_p9)  ;;  %v1505_v61 = vld [vmem:[%s2449_s7] sm:$0xff] (!%p1926_p9) }
 0x346   : > { %1331 = vst [vmem:[#allocation4 + $0x70] sm:$0xff] %v1315_v40  ;;  %v1316_v8 = vadd.f32 %v2051_v33, %v1147_v3  ;;  %v1289_v26 = vpop.f32.mrb[15].mxu1  ;;  %2067 = vmatpush3.bf16.msra.mxu0 (!%p1926_p9), %v2259_v5  ;;  %v1393_v43 = vld [vmem:[#allocation4 + $0x40] sm:$0xff] (!%p1926_p9) }
 0x347   : > { %1329 = vst [vmem:[#allocation4 + $0x60] sm:$0xff] %v1313_v44  ;;  %v1314_v45 = vadd.f32 %v1289_v26, %v1145_v60  ;;  %2099 = vmatpush3.bf16.msra.mxu1 (!%p1926_p9), %v2259_v5  ;;  %v1395_v26 = vld [vmem:[#allocation4 + $0x50] sm:$0xff] (!%p1926_p9)  ;;  %v1508_v5 = vld [vmem:[%s2449_s7 + $0x18] sm:$0xff] (!%p1926_p9) }
 0x348   : > { %1332 = vst [vmem:[#allocation4 + $0x78] sm:$0xff] %v1316_v8  ;;  %1438 = vperm.xlu1 (!%p1926_p9), %2251, %v2285_v0   ;;  %v1394_v19 = vld [vmem:[#allocation4 + $0x48] sm:$0xff] (!%p1926_p9)  ;;  %v1396_v8 = vld [vmem:[#allocation4 + $0x58] sm:$0xff] (!%p1926_p9) }
 0x349   : > { %1330 = vst [vmem:[#allocation4 + $0x68] sm:$0xff] %v1314_v45  ;;  %1433 = vperm.xlu0 (!%p1926_p9), %2250, %v2287_v16   ;;  %v1506_v0 = vld [vmem:[%s2449_s7 + $0x8] sm:$0xff] (!%p1926_p9) }
 0x34c   : > { %1478 = vperm.xlu1 %2251, %v2289_v47   ;;  %v1515_v47 = vld [vmem:[%s2449_s7 + $0x50] sm:$0xff] }
 0x34d   : > { %1473 = vperm.xlu0 %2250, %v2291_v15   ;;  %v1399_v41 = vld [vmem:[#allocation4 + $0x70] sm:$0xff]  ;;  %v1513_v15 = vld [vmem:[%s2449_s7 + $0x40] sm:$0xff] }
 0x34e   : > { %v1397_v22 = vld [vmem:[#allocation4 + $0x60] sm:$0xff] }
 0x34f   : > { %v1400_v34 = vld [vmem:[#allocation4 + $0x78] sm:$0xff] }
 0x350   : > { %v1398_v50 = vld [vmem:[#allocation4 + $0x68] sm:$0xff] }
 0x3af   : > { %v1444_v27 = vpop.permute.xlu1 %1443 }
 0x3b0   : > { %v1404_v18 = vpop.permute.xlu0 %1403  ;;  %v1489_v23 = vmul.f32 %v1444_v27, %v1393_v43  ;;  %v1516_v27 = vld [vmem:[%s2449_s7 + $0x58] sm:$0xff]  ;;  %v1511_v43 = vld [vmem:[%s2449_s7 + $0x30] sm:$0xff] }
 0x3b1   : > { %v1481_v56 = vmul.f32 %v1404_v18, %v1385_v21  ;;  %v1514_v18 = vld [vmem:[%s2449_s7 + $0x48] sm:$0xff] }
 0x3b3   : > { %v1449_v59 = vpop.permute.xlu1 %1448 }
 0x3b4   : > { %v1490_v37 = vmul.f32 %v1449_v59, %v1394_v19  ;;  %v1409_v4 = vpop.permute.xlu0 %1408  ;;  %v1509_v19 = vld [vmem:[%s2449_s7 + $0x20] sm:$0xff]  ;;  %v1512_v59 = vld [vmem:[%s2449_s7 + $0x38] sm:$0xff] }
 0x3b5   : > { %v1482_v2 = vmul.f32 %v1409_v4, %v1386_v42 }
 0x3b6   : > { %v1501_v3 = vpack.c.bf16 %v1490_v37, %v1489_v23  ;;  %v1510_v23 = vld [vmem:[%s2449_s7 + $0x28] sm:$0xff]  ;;  %v1519_v37 = vld [vmem:[%s2449_s7 + $0x70] sm:$0xff] }
 0x3b7   : > { %v1419_v40 = vpop.permute.xlu1 %1418  ;;  %v1497_v54 = vpack.c.bf16 %v1482_v2, %v1481_v56  ;;  %v1517_v2 = vld [vmem:[%s2449_s7 + $0x60] sm:$0xff] }
 0x3b8   : > { %v1484_v60 = vmul.f32 %v1419_v40, %v1388_v24  ;;  %v1414_v44 = vpop.permute.xlu0 %1413  ;;  %2076 = vmatprep.mubr.bf16.mxu1 %v1501_v3  ;;  %v1520_v24 = vld [vmem:[%s2449_s7 + $0x78] sm:$0xff] }
 0x3b9   : > { %v1483_v33 = vmul.f32 %v1414_v44, %v1387_v57  ;;  %2068 = vmatprep.mubr.bf16.mxu0 %v1497_v54  ;;  %v1518_v57 = vld [vmem:[%s2449_s7 + $0x68] sm:$0xff] }
 0x3bb   : > { %v1498_v45 = vpack.c.bf16 %v1484_v60, %v1483_v33  ;;  %v1459_v12 = vpop.permute.xlu1 %1458 }
 0x3bc   : > { %v1492_v9 = vmul.f32 %v1459_v12, %v1396_v8  ;;  %v1454_v25 = vpop.permute.xlu0 %1453 }
 0x3bd   : > { %v1491_v28 = vmul.f32 %v1454_v25, %v1395_v26  ;;  %2069 = vmatmul.mubr.bf16.vlgmr.msra.gmra.mrb[0].mxu0 %v1498_v45 }
 0x3bf   : > { %v1502_v58 = vpack.c.bf16 %v1492_v9, %v1491_v28  ;;  %v1429_v6 = vpop.permute.xlu1 %1428 }
 0x3c0   : > { %v1486_v32 = vmul.f32 %v1429_v6, %v1390_v7  ;;  %v1424_v51 = vpop.permute.xlu0 %1423 }
 0x3c1   : > { %v1485_v10 = vmul.f32 %v1424_v51, %v1389_v1  ;;  %2077 = vmatmul.mubr.bf16.vlgmr.msra.gmra.mrb[0].mxu1 %v1502_v58 }
 0x3c3   : > { %v1499_v55 = vpack.c.bf16 %v1486_v32, %v1485_v10  ;;  %v1469_v29 = vpop.permute.xlu1 %1468 }
 0x3c4   : > { %v1494_v11 = vmul.f32 %v1469_v29, %v1398_v50  ;;  %v1464_v30 = vpop.permute.xlu0 %1463 }
 0x3c5   : > { %v1493_v48 = vmul.f32 %v1464_v30, %v1397_v22  ;;  %2072 = vmatprep.mubr.bf16.mxu0 %v1499_v55 }
 0x3c7   : > { %v1503_v53 = vpack.c.bf16 %v1494_v11, %v1493_v48  ;;  %v1439_v52 = vpop.permute.xlu1 %1438 }
 0x3c8   : > { %v1488_v20 = vmul.f32 %v1439_v52, %v1392_v13  ;;  %v1434_v17 = vpop.permute.xlu0 %1433 }
 0x3c9   : > { %v1487_v36 = vmul.f32 %v1434_v17, %v1391_v62  ;;  %2080 = vmatprep.mubr.bf16.mxu1 %v1503_v53 }
 0x3cb   : > { %v1500_v39 = vpack.c.bf16 %v1488_v20, %v1487_v36  ;;  %v1479_v31 = vpop.permute.xlu1 %1478 }
 0x3cc   : > { %v1496_v46 = vmul.f32 %v1479_v31, %v1400_v34  ;;  %v1474_v38 = vpop.permute.xlu0 %1473 }
 0x3cd   : > { %v1495_v14 = vmul.f32 %v1474_v38, %v1399_v41  ;;  %2073 = vmatmul.mubr.bf16.gmra.mrb[4].mxu0 %v1500_v39 }
 0x3cf   : > { %v1504_v63 = vpack.c.bf16 %v1496_v46, %v1495_v14 }
 0x3d1   : > { %2081 = vmatmul.mubr.bf16.gmra.mrb[4].mxu1 %v1504_v63 }
 0x490   : > { %v2070_v16 = vpop.f32.mrb[0].mxu0 }
 0x491   : > { %v1684_v21 = vadd.f32 %v2070_v16, %v1507_v49  ;;  %v1619_v42 = vpop.f32.mrb[1].mxu0 }
 0x492   : > { %v1682_v4 = vadd.f32 %v1619_v42, %v1505_v61  ;;  %v2071_v56 = vpop.f32.mrb[2].mxu0 }
 0x493   : > { %v1707_v3 = vadd.f32 %v2903_v35, %v1684_v21  ;;  %v1685_v40 = vadd.f32 %v2071_v56, %v1508_v5  ;;  %v1622_v54 = vpop.f32.mrb[3].mxu0 }
 0x494   : > { %v1705_v60 = vadd.f32 %v2903_v35, %v1682_v4  ;;  %v1683_v44 = vadd.f32 %v1622_v54, %v1506_v0  ;;  %v2078_v33 = vpop.f32.mrb[0].mxu1 }
 0x495   : > { %v1708_v8 = vadd.f32 %v2903_v35, %v1685_v40  ;;  %v1692_v26 = vadd.f32 %v2078_v33, %v1515_v47  ;;  %v1651_v45 = vpop.f32.mrb[1].mxu1  ;;  %1724 = vst.msk [vmem:[%s2454_s12 + $0x10] sm:$0xff] %vm1721_vm3, %v1707_v3 }
 0x496   : > { %v1706_v12 = vadd.f32 %v2903_v35, %v1683_v44  ;;  %v1690_v9 = vadd.f32 %v1651_v45, %v1513_v15  ;;  %v2079_v25 = vpop.f32.mrb[2].mxu1  ;;  %1722 = vst.msk [vmem:[%s2454_s12] sm:$0xff] %vm1721_vm3, %v1705_v60 }
 0x497   : > { %v1715_v28 = vadd.f32 %v2903_v35, %v1692_v26  ;;  %v1693_v7 = vadd.f32 %v2079_v25, %v1516_v27  ;;  %v1654_v1 = vpop.f32.mrb[3].mxu1  ;;  %1725 = vst.msk [vmem:[%s2454_s12 + $0x18] sm:$0xff] %vm1721_vm3, %v1708_v8 }
 0x498   : > { %v1713_v58 = vadd.f32 %v2903_v35, %v1690_v9  ;;  %v1691_v6 = vadd.f32 %v1654_v1, %v1514_v18  ;;  %1723 = vst.msk [vmem:[%s2454_s12 + $0x8] sm:$0xff] %vm1721_vm3, %v1706_v12 }
 0x499   : > { %v1716_v32 = vadd.f32 %v2903_v35, %v1693_v7  ;;  %1732 = vst.msk [vmem:[%s2454_s12 + $0x50] sm:$0xff] %vm1721_vm3, %v1715_v28 }
 0x49a   : > { %v1714_v51 = vadd.f32 %v2903_v35, %v1691_v6  ;;  %1730 = vst.msk [vmem:[%s2454_s12 + $0x40] sm:$0xff] %vm1721_vm3, %v1713_v58 }
 0x49b   : > { %1733 = vst.msk [vmem:[%s2454_s12 + $0x58] sm:$0xff] %vm1721_vm3, %v1716_v32 }
 0x49c   : > { %1731 = vst.msk [vmem:[%s2454_s12 + $0x48] sm:$0xff] %vm1721_vm3, %v1714_v51 }
 0x4a0   : > { %v2074_v10 = vpop.f32.mrb[4].mxu0 }
 0x4a1   : > { %v1688_v50 = vadd.f32 %v2074_v10, %v1511_v43  ;;  %v1635_v22 = vpop.f32.mrb[5].mxu0 }
 0x4a2   : > { %v1686_v55 = vadd.f32 %v1635_v22, %v1509_v19  ;;  %v2075_v29 = vpop.f32.mrb[6].mxu0 }
 0x4a3   : > { %v1711_v11 = vadd.f32 %v2903_v35, %v1688_v50  ;;  %v1689_v30 = vadd.f32 %v2075_v29, %v1512_v59  ;;  %v1638_v48 = vpop.f32.mrb[7].mxu0 }
 0x4a4   : > { %v1709_v13 = vadd.f32 %v2903_v35, %v1686_v55  ;;  %v1687_v62 = vadd.f32 %v1638_v48, %v1510_v23  ;;  %v2082_v53 = vpop.f32.mrb[4].mxu1 }
 0x4a5   : > { %v1712_v52 = vadd.f32 %v2903_v35, %v1689_v30  ;;  %v1696_v20 = vadd.f32 %v2082_v53, %v1519_v37  ;;  %v1667_v17 = vpop.f32.mrb[5].mxu1  ;;  %1728 = vst.msk [vmem:[%s2454_s12 + $0x30] sm:$0xff] %vm1721_vm3, %v1711_v11 }
 0x4a6   : > { %v1710_v36 = vadd.f32 %v2903_v35, %v1687_v62  ;;  %v1694_v34 = vadd.f32 %v1667_v17, %v1517_v2  ;;  %v2083_v41 = vpop.f32.mrb[6].mxu1  ;;  %1726 = vst.msk [vmem:[%s2454_s12 + $0x20] sm:$0xff] %vm1721_vm3, %v1709_v13 }
 0x4a7   : > { %v1719_v39 = vadd.f32 %v2903_v35, %v1696_v20  ;;  %v1697_v31 = vadd.f32 %v2083_v41, %v1520_v24  ;;  %v1670_v46 = vpop.f32.mrb[7].mxu1  ;;  %1729 = vst.msk [vmem:[%s2454_s12 + $0x38] sm:$0xff] %vm1721_vm3, %v1712_v52 }
 0x4a8   : > { %v1717_v38 = vadd.f32 %v2903_v35, %v1694_v34  ;;  %v1695_v14 = vadd.f32 %v1670_v46, %v1518_v57  ;;  %1727 = vst.msk [vmem:[%s2454_s12 + $0x28] sm:$0xff] %vm1721_vm3, %v1710_v36 }
 0x4a9   : > { %v1720_v63 = vadd.f32 %v2903_v35, %v1697_v31  ;;  %1736 = vst.msk [vmem:[%s2454_s12 + $0x70] sm:$0xff] %vm1721_vm3, %v1719_v39 }
 0x4aa   : > { %v1718_v49 = vadd.f32 %v2903_v35, %v1695_v14  ;;  %1734 = vst.msk [vmem:[%s2454_s12 + $0x60] sm:$0xff] %vm1721_vm3, %v1717_v38 }
 0x4ab   : > { %1737 = vst.msk [vmem:[%s2454_s12 + $0x78] sm:$0xff] %vm1721_vm3, %v1720_v63 }
 0x4ac   : > { %1735 = vst.msk [vmem:[%s2454_s12 + $0x68] sm:$0xff] %vm1721_vm3, %v1718_v49 }
 0x4ad PF: > { %s16_s27 = sadd.s32 1, %s2346_s27   ;;  %s2997_s7 = sld [smem:[#allocation5_spill]] }
 0x4ae   : > { %p13_p10 = scmp.ge.s32.totalorder %s16_s27, 34   ;;  %s2998_s21 = smov %s2334_s24 }
 0x4af   : > { %s2999_s22 = smov %s2338_s25  ;;  %s3000_s23 = smov %s2342_s26 }
 0x4b0   : > { %s3001_s24 = smov %s3005_s28  ;;  %s3002_s25 = smov %s3009_s29 }
 0x4b1   :  { %15 = sbr.rel (!%p13_p10) target bundleno = 4 (0x4), region = 93 }
 0x4b3   : > { %s3003_s26 = smov %s2997_s7 }

// kernel: nl3d_wrapper_forward.2
= control target key start
LH: loop header
LB: loop body
LE: loop exit
PB: predicated region body
PF: predicated region fallthrough
CT: control target
= control target key end

     0   :  { %s3560_s18 = smov 0   ;;  %s3562_s19 = smov 0   ;;  %s4240_s0 = inlined_call_operand.vmem [shape: f32[2,512,16], index: 0, kind: input, shape index: {}]   ;;  %s4241_s1 = inlined_call_operand.vmem [shape: bf16[16,384], index: 1, kind: input, shape index: {}]   ;;  %s4242_s2 = inlined_call_operand.vmem [shape: f32[1,384], index: 2, kind: input, shape index: {}]   ;;  %s4243_s3 = inlined_call_operand.vmem [shape: bf16[2,512,128], index: 3, kind: output, shape index: {0}]   ;;  %s4244_s4 = inlined_call_operand.vmem [shape: bf16[2,128,512], index: 4, kind: output, shape index: {1}]   ;;  %s4245_s5 = inlined_call_operand.vmem [shape: bf16[2,512,128], index: 5, kind: output, shape index: {2}]  }
   0x1   :  { %s3564_s20 = smov 0  }
   0x2 LB: > { %s28_s21 = sadd.s32 1, %s3523_s19  ;;  %p2367_p0 = scmp.ge.s32.totalorder %s3527_s20, 1  ;;  %s3527_s20 = sphi %s3564_s20, %s16_s20   ;;  %s3523_s19 = sphi %s3562_s19, %s4247_s19   ;;  %s3519_s18 = sphi %s3560_s18, %s4246_s18  }
   0x3   : > { %p30_p1 = scmp.ge.s32.totalorder %s28_s21, 2  ;;  %p217_p2 = scmp.lt.s32.totalorder %s3527_s20, 3 }
   0x5   : > { %s4249_s21 = smov (%p30_p1, %s28_s21), 0  ;;  %p218_p3 = pnand %p2367_p0, %p217_p2 }
   0x6   : > { %v3501_v0 = vld [vmem:[%s4241_s1 + $0x4] ss:$12 sps:$4 sm:$0xff] (!%p218_p3)   ;;  %p272_p4 = scmp.lt.s32.totalorder (!%p218_p3), %s3519_s18, 1  ;;  %v3503_v1 = vld [vmem:[%s4241_s1] ss:$12 sps:$4 sm:$0xff] (!%p218_p3)   ;;  %v3529_v2 = vmov (!%p218_p3), 0  }
   0x7   : > { %221 = sbr.rel (%p218_p3) target bundleno = 559 (0x22f), region = 32  ;;  %574 = vmatprep.mubr.bf16.mxu0 (!%p218_p3), %v3529_v2  ;;  %814 = vmatprep.mubr.bf16.mxu1 (!%p218_p3), %v3529_v2  ;;  %vm445_vm0 = vcmask (!%p218_p3), 130048   ;;  %v3504_v14 = vld [vmem:[%s4241_s1 + $0x8] ss:$12 sps:$4 sm:$0xff] (!%p218_p3)  }
   0x8   : > { %542 = vmatprep.subr.bf16.mxu0 (!%p218_p3), %v3501_v0  ;;  %3250 = vmatprep.subr.bf16.mxu1 (!%p218_p3), %v3501_v0 }
   0x9   : > { %543 = vmatpush1.bf16.msra.mxu0 (!%p218_p3), %v3503_v1  ;;  %3251 = vmatpush1.bf16.msra.mxu1 (!%p218_p3), %v3503_v1 }
   0xa   : > { %3184 = vmatprep.subr.bf16.mxu1 (!%p218_p3), %v3504_v14 }
   0xe   : > { %s4251_s18 = smov (!%p272_p4, %s3519_s18), 1 }
   0xf   : > { %s2605_s26 = sshll.u32 %s4251_s18, 9  ;;  %s3821_s9 = sshll.u32 %s4251_s18, 8 }
  0x10   : > { %s3592_s29 = scalar_lea.vmem %s4240_s0, %s2605_s26  ;;  %s3831_s12 = scalar_lea.vmem %s4243_s3, %s3821_s9 }
  0x11   : > { %v312_v3 = vld [vmem:[%s3592_s29] sm:$0xff]  ;;  %v313_v4 = vld [vmem:[%s3592_s29 + $0x8] sm:$0xff]  ;;  %v314_v6 = vld [vmem:[%s3592_s29 + $0x10] sm:$0xff]  ;;  %s3972_s15 = scalar_lea.vmem %s4245_s5, %s3821_s9  ;;  %s4194_s18 = scalar_lea.vmem %s4244_s4, %s3821_s9 }
  0x12   : > { %v3596_v5 = vpack.c.bf16 %v313_v4, %v312_v3  ;;  %v315_v7 = vld [vmem:[%s3592_s29 + $0x18] sm:$0xff]  ;;  %v360_v9 = vld [vmem:[%s3592_s29 + $0x180] sm:$0xff]  ;;  %v361_v10 = vld [vmem:[%s3592_s29 + $0x188] sm:$0xff] }
  0x13   : > { %v3603_v8 = vpack.c.bf16 %v315_v7, %v314_v6  ;;  %v316_v11 = vld [vmem:[%s3592_s29 + $0x20] sm:$0xff]  ;;  %v317_v12 = vld [vmem:[%s3592_s29 + $0x28] sm:$0xff]  ;;  %v3612_v13 = vpack.c.bf16 %v361_v10, %v360_v9  ;;  %v362_v16 = vld [vmem:[%s3592_s29 + $0x190] sm:$0xff] }
  0x14   : > { %2379 = vmatmul.mubr.msk.bf16.vlgmr.msra.gmra.mrb[0].mxu0 %vm445_vm0, %v3596_v5  ;;  %v3619_v15 = vpack.c.bf16 %v317_v12, %v316_v11  ;;  %v363_v17 = vld [vmem:[%s3592_s29 + $0x198] sm:$0xff]  ;;  %v318_v19 = vld [vmem:[%s3592_s29 + $0x30] sm:$0xff]  ;;  %v364_v22 = vld [vmem:[%s3592_s29 + $0x1a0] sm:$0xff] }
  0x15   : > { %584 = vmatprep.mubr.bf16.mxu0 %v3529_v2  ;;  %2403 = vmatmul.mubr.msk.bf16.vlgmr.msra.gmra.mrb[0].mxu1 %vm445_vm0, %v3612_v13  ;;  %v3624_v18 = vpack.c.bf16 %v363_v17, %v362_v16  ;;  %v319_v20 = vld [vmem:[%s3592_s29 + $0x38] sm:$0xff]  ;;  %v365_v23 = vld [vmem:[%s3592_s29 + $0x1a8] sm:$0xff]  ;;  %v320_v25 = vld [vmem:[%s3592_s29 + $0x40] sm:$0xff] }
  0x16   : > { %824 = vmatprep.mubr.bf16.mxu1 %v3529_v2  ;;  %3185 = vmatpush3.bf16.msra.mxu1 %v3504_v14  ;;  %v3633_v21 = vpack.c.bf16 %v319_v20, %v318_v19  ;;  %v3638_v24 = vpack.c.bf16 %v365_v23, %v364_v22  ;;  %v321_v26 = vld [vmem:[%s3592_s29 + $0x48] sm:$0xff]  ;;  %v366_v28 = vld [vmem:[%s3592_s29 + $0x1b0] sm:$0xff]  ;;  %v367_v29 = vld [vmem:[%s3592_s29 + $0x1b8] sm:$0xff] }
  0x17   : > { %v3647_v27 = vpack.c.bf16 %v321_v26, %v320_v25  ;;  %v3652_v30 = vpack.c.bf16 %v367_v29, %v366_v28  ;;  %v322_v31 = vld [vmem:[%s3592_s29 + $0x50] sm:$0xff]  ;;  %v323_v32 = vld [vmem:[%s3592_s29 + $0x58] sm:$0xff]  ;;  %v368_v34 = vld [vmem:[%s3592_s29 + $0x1c0] sm:$0xff] }
  0x18   : > { %v381_v33 = vpack.c.bf16 %v323_v32, %v322_v31  ;;  %v369_v35 = vld [vmem:[%s3592_s29 + $0x1c8] sm:$0xff]  ;;  %v324_v37 = vld [vmem:[%s3592_s29 + $0x60] sm:$0xff]  ;;  %v370_v40 = vld [vmem:[%s3592_s29 + $0x1d0] sm:$0xff] }
  0x19   : > { %v3664_v36 = vpack.c.bf16 %v369_v35, %v368_v34  ;;  %v325_v38 = vld [vmem:[%s3592_s29 + $0x68] sm:$0xff]  ;;  %v371_v41 = vld [vmem:[%s3592_s29 + $0x1d8] sm:$0xff]  ;;  %v326_v43 = vld [vmem:[%s3592_s29 + $0x70] sm:$0xff] }
  0x1a   : > { %v382_v39 = vpack.c.bf16 %v325_v38, %v324_v37  ;;  %v3675_v42 = vpack.c.bf16 %v371_v41, %v370_v40  ;;  %v327_v44 = vld [vmem:[%s3592_s29 + $0x78] sm:$0xff]  ;;  %v372_v46 = vld [vmem:[%s3592_s29 + $0x1e0] sm:$0xff]  ;;  %v373_v47 = vld [vmem:[%s3592_s29 + $0x1e8] sm:$0xff] }
  0x1b   : > { %v383_v45 = vpack.c.bf16 %v327_v44, %v326_v43  ;;  %v3686_v48 = vpack.c.bf16 %v373_v47, %v372_v46  ;;  %v328_v49 = vld [vmem:[%s3592_s29 + $0x80] sm:$0xff]  ;;  %v329_v50 = vld [vmem:[%s3592_s29 + $0x88] sm:$0xff]  ;;  %v374_v52 = vld [vmem:[%s3592_s29 + $0x1f0] sm:$0xff] }
  0x1c   : > { %2380 = vmatmul.mubr.msk.bf16.gmra.mrb[4].mxu0 %vm445_vm0, %v3603_v8  ;;  %v384_v51 = vpack.c.bf16 %v329_v50, %v328_v49  ;;  %v375_v53 = vld [vmem:[%s3592_s29 + $0x1f8] sm:$0xff]  ;;  %v330_v55 = vld [vmem:[%s3592_s29 + $0x90] sm:$0xff]  ;;  %v332_v58 = vld [vmem:[%s3592_s29 + $0xa0] sm:$0xff] }
  0x1d   : > { %594 = vmatprep.mubr.bf16.mxu0 %v3529_v2  ;;  %2404 = vmatmul.mubr.msk.bf16.gmra.mrb[4].mxu1 %vm445_vm0, %v3624_v18  ;;  %v3697_v54 = vpack.c.bf16 %v375_v53, %v374_v52  ;;  %v331_v56 = vld [vmem:[%s3592_s29 + $0x98] sm:$0xff]  ;;  %v333_v59 = vld [vmem:[%s3592_s29 + $0xa8] sm:$0xff]  ;;  %v334_v61 = vld [vmem:[%s3592_s29 + $0xb0] sm:$0xff] }
  0x1e   : > { %834 = vmatprep.mubr.bf16.mxu1 %v3529_v2  ;;  %v385_v57 = vpack.c.bf16 %v331_v56, %v330_v55  ;;  %v386_v60 = vpack.c.bf16 %v333_v59, %v332_v58  ;;  %v335_v62 = vld [vmem:[%s3592_s29 + $0xb8] sm:$0xff]  ;;  %v336_v0 = vld [vmem:[%s3592_s29 + $0xc0] sm:$0xff]  ;;  %v337_v1 = vld [vmem:[%s3592_s29 + $0xc8] sm:$0xff] }
  0x1f   : > { %v387_v63 = vpack.c.bf16 %v335_v62, %v334_v61  ;;  %v388_v3 = vpack.c.bf16 %v337_v1, %v336_v0  ;;  %v338_v4 = vld [vmem:[%s3592_s29 + $0xd0] sm:$0xff]  ;;  %v340_v7 = vld [vmem:[%s3592_s29 + $0xe0] sm:$0xff]  ;;  %v343_v11 = vld [vmem:[%s3592_s29 + $0xf8] sm:$0xff] }
  0x20   : > { %v342_v10 = vld [vmem:[%s3592_s29 + $0xf0] sm:$0xff]  ;;  %v344_v14 = vld [vmem:[%s3592_s29 + $0x100] sm:$0xff]  ;;  %v347_v19 = vld [vmem:[%s3592_s29 + $0x118] sm:$0xff] }
  0x21   : > { %v391_v12 = vpack.c.bf16 %v343_v11, %v342_v10  ;;  %v346_v17 = vld [vmem:[%s3592_s29 + $0x110] sm:$0xff]  ;;  %v349_v22 = vld [vmem:[%s3592_s29 + $0x128] sm:$0xff]  ;;  %v351_v26 = vld [vmem:[%s3592_s29 + $0x138] sm:$0xff] }
  0x22   : > { %v393_v20 = vpack.c.bf16 %v347_v19, %v346_v17  ;;  %v350_v25 = vld [vmem:[%s3592_s29 + $0x130] sm:$0xff]  ;;  %v353_v28 = vld [vmem:[%s3592_s29 + $0x148] sm:$0xff]  ;;  %v356_v34 = vld [vmem:[%s3592_s29 + $0x160] sm:$0xff] }
  0x23   : > { %v395_v29 = vpack.c.bf16 %v351_v26, %v350_v25  ;;  %v354_v32 = vld [vmem:[%s3592_s29 + $0x150] sm:$0xff]  ;;  %v357_v35 = vld [vmem:[%s3592_s29 + $0x168] sm:$0xff]  ;;  %v359_v40 = vld [vmem:[%s3592_s29 + $0x178] sm:$0xff] }
  0x24   : > { %2381 = vmatmul.mubr.msk.bf16.gmra.mrb[8].mxu0 %vm445_vm0, %v3619_v15  ;;  %v398_v38 = vpack.c.bf16 %v357_v35, %v356_v34 }
  0x25   : > { %604 = vmatprep.mubr.bf16.mxu0 %v3529_v2  ;;  %2405 = vmatmul.mubr.msk.bf16.gmra.mrb[8].mxu1 %vm445_vm0, %v3638_v24 }
  0x26   : > { %844 = vmatprep.mubr.bf16.mxu1 %v3529_v2 }
  0x2c   : > { %2382 = vmatmul.mubr.msk.bf16.gmra.mrb[12].mxu0 %vm445_vm0, %v3633_v21 }
  0x2d   : > { %614 = vmatprep.mubr.bf16.mxu0 %v3529_v2  ;;  %2406 = vmatmul.mubr.msk.bf16.gmra.mrb[12].mxu1 %vm445_vm0, %v3652_v30 }
  0x2e   : > { %854 = vmatprep.mubr.bf16.mxu1 %v3529_v2 }
  0x34   : > { %2383 = vmatmul.mubr.msk.bf16.gmra.mrb[16].mxu0 %vm445_vm0, %v3647_v27 }
  0x35   : > { %624 = vmatprep.mubr.bf16.mxu0 %v3529_v2  ;;  %2407 = vmatmul.mubr.msk.bf16.gmra.mrb[16].mxu1 %vm445_vm0, %v3664_v36 }
  0x36   : > { %864 = vmatprep.mubr.bf16.mxu1 %v3529_v2 }
  0x3c   : > { %2384 = vmatmul.mubr.msk.bf16.gmra.mrb[20].mxu0 %vm445_vm0, %v381_v33 }
  0x3d   : > { %634 = vmatprep.mubr.bf16.mxu0 %v3529_v2  ;;  %2408 = vmatmul.mubr.msk.bf16.gmra.mrb[20].mxu1 %vm445_vm0, %v3675_v42 }
  0x3e   : > { %874 = vmatprep.mubr.bf16.mxu1 %v3529_v2 }
  0x44   : > { %2385 = vmatmul.mubr.msk.bf16.gmra.mrb[24].mxu0 %vm445_vm0, %v382_v39 }
  0x45   : > { %644 = vmatprep.mubr.bf16.mxu0 %v3529_v2  ;;  %2409 = vmatmul.mubr.msk.bf16.gmra.mrb[24].mxu1 %vm445_vm0, %v3686_v48 }
  0x46   : > { %884 = vmatprep.mubr.bf16.mxu1 %v3529_v2 }
  0x4c   : > { %2386 = vmatmul.mubr.msk.bf16.gmra.mrb[28].mxu0 %vm445_vm0, %v383_v45 }
  0x4d   : > { %654 = vmatprep.mubr.bf16.mxu0 %v3529_v2  ;;  %2410 = vmatmul.mubr.msk.bf16.gmra.mrb[28].mxu1 %vm445_vm0, %v3697_v54 }
  0x4e   : > { %3186 = vmatprep.mubr.msk.bf16.mxu1 %vm445_vm0, %v3596_v5  ;;  %v339_v5 = vld [vmem:[%s3592_s29 + $0xd8] sm:$0xff] }
  0x4f   : > { %v389_v6 = vpack.c.bf16 %v339_v5, %v338_v4 }
  0x54   : > { %2387 = vmatmul.mubr.msk.bf16.gmra.mrb[32].mxu0 %vm445_vm0, %v384_v51 }
  0x55   : > { %664 = vmatprep.mubr.bf16.mxu0 %v3529_v2  ;;  %3187 = vmatmul.mubr.msk.bf16.vlgmr.msra.gmra.mrb[32].mxu1 %vm445_vm0, %v3603_v8  ;;  %v341_v8 = vld [vmem:[%s3592_s29 + $0xe8] sm:$0xff] }
  0x56   : > { %3190 = vmatprep.mubr.msk.bf16.mxu1 %vm445_vm0, %v3619_v15  ;;  %v390_v9 = vpack.c.bf16 %v341_v8, %v340_v7  ;;  %v345_v15 = vld [vmem:[%s3592_s29 + $0x108] sm:$0xff] }
  0x57   : > { %v392_v16 = vpack.c.bf16 %v345_v15, %v344_v14 }
  0x5c   : > { %2388 = vmatmul.mubr.msk.bf16.gmra.mrb[36].mxu0 %vm445_vm0, %v385_v57 }
  0x5d   : > { %674 = vmatprep.mubr.bf16.mxu0 %v3529_v2  ;;  %3191 = vmatmul.mubr.msk.bf16.gmra.mrb[36].mxu1 %vm445_vm0, %v3633_v21  ;;  %v348_v21 = vld [vmem:[%s3592_s29 + $0x120] sm:$0xff] }
  0x5e   : > { %3194 = vmatprep.mubr.msk.bf16.mxu1 %vm445_vm0, %v3647_v27  ;;  %v394_v23 = vpack.c.bf16 %v349_v22, %v348_v21  ;;  %v352_v27 = vld [vmem:[%s3592_s29 + $0x140] sm:$0xff] }
  0x5f   : > { %v396_v31 = vpack.c.bf16 %v353_v28, %v352_v27 }
  0x64   : > { %2389 = vmatmul.mubr.msk.bf16.gmra.mrb[40].mxu0 %vm445_vm0, %v386_v60 }
  0x65   : > { %684 = vmatprep.mubr.bf16.mxu0 %v3529_v2  ;;  %3195 = vmatmul.mubr.msk.bf16.gmra.mrb[40].mxu1 %vm445_vm0, %v381_v33  ;;  %v355_v33 = vld [vmem:[%s3592_s29 + $0x158] sm:$0xff] }
  0x66   : > { %3198 = vmatprep.mubr.msk.bf16.mxu1 %vm445_vm0, %v382_v39  ;;  %v397_v37 = vpack.c.bf16 %v355_v33, %v354_v32  ;;  %v358_v39 = vld [vmem:[%s3592_s29 + $0x170] sm:$0xff] }
  0x67   : > { %v399_v41 = vpack.c.bf16 %v359_v40, %v358_v39 }
  0x6c   : > { %2390 = vmatmul.mubr.msk.bf16.gmra.mrb[44].mxu0 %vm445_vm0, %v387_v63 }
  0x6d   : > { %694 = vmatprep.mubr.bf16.mxu0 %v3529_v2  ;;  %3199 = vmatmul.mubr.msk.bf16.gmra.mrb[44].mxu1 %vm445_vm0, %v383_v45 }
  0x6e   : > { %3202 = vmatprep.mubr.msk.bf16.mxu1 %vm445_vm0, %v384_v51 }
  0x74   : > { %2391 = vmatmul.mubr.msk.bf16.gmra.mrb[48].mxu0 %vm445_vm0, %v388_v3 }
  0x75   : > { %704 = vmatprep.mubr.bf16.mxu0 %v3529_v2  ;;  %3203 = vmatmul.mubr.msk.bf16.gmra.mrb[48].mxu1 %vm445_vm0, %v385_v57 }
  0x76   : > { %3206 = vmatprep.mubr.msk.bf16.mxu1 %vm445_vm0, %v386_v60 }
  0x7c   : > { %2392 = vmatmul.mubr.msk.bf16.gmra.mrb[52].mxu0 %vm445_vm0, %v389_v6 }
  0x7d   : > { %714 = vmatprep.mubr.bf16.mxu0 %v3529_v2  ;;  %3207 = vmatmul.mubr.msk.bf16.gmra.mrb[52].mxu1 %vm445_vm0, %v387_v63 }
  0x7e   : > { %3210 = vmatprep.mubr.msk.bf16.mxu1 %vm445_vm0, %v388_v3 }
  0x84   : > { %2393 = vmatmul.mubr.msk.bf16.gmra.mrb[56].mxu0 %vm445_vm0, %v390_v9 }
  0x85   : > { %724 = vmatprep.mubr.bf16.mxu0 %v3529_v2  ;;  %3211 = vmatmul.mubr.msk.bf16.gmra.mrb[56].mxu1 %vm445_vm0, %v389_v6 }
  0x86   : > { %3214 = vmatprep.mubr.msk.bf16.mxu1 %vm445_vm0, %v390_v9 }
  0x8c   : > { %2394 = vmatmul.mubr.msk.bf16.gmra.mrb[60].mxu0 %vm445_vm0, %v391_v12 }
  0x8d   : > { %734 = vmatprep.mubr.bf16.mxu0 %v3529_v2  ;;  %3215 = vmatmul.mubr.msk.bf16.gmra.mrb[60].mxu1 %vm445_vm0, %v391_v12 }
  0x8e   : > { %3218 = vmatprep.mubr.msk.bf16.mxu1 %vm445_vm0, %v392_v16 }
  0x94   : > { %2395 = vmatmul.mubr.msk.bf16.gmra.mrb[64].mxu0 %vm445_vm0, %v392_v16 }
  0x95   : > { %744 = vmatprep.mubr.bf16.mxu0 %v3529_v2  ;;  %3219 = vmatmul.mubr.msk.bf16.gmra.mrb[64].mxu1 %vm445_vm0, %v393_v20 }
  0x96   : > { %3222 = vmatprep.mubr.msk.bf16.mxu1 %vm445_vm0, %v394_v23 }
  0x9c   : > { %2396 = vmatmul.mubr.msk.bf16.gmra.mrb[68].mxu0 %vm445_vm0, %v393_v20 }
  0x9d   : > { %754 = vmatprep.mubr.bf16.mxu0 %v3529_v2  ;;  %3223 = vmatmul.mubr.msk.bf16.gmra.mrb[68].mxu1 %vm445_vm0, %v395_v29 }
  0x9e   : > { %3226 = vmatprep.mubr.msk.bf16.mxu1 %vm445_vm0, %v396_v31 }
  0xa4   : > { %2397 = vmatmul.mubr.msk.bf16.gmra.mrb[72].mxu0 %vm445_vm0, %v394_v23 }
  0xa5   : > { %764 = vmatprep.mubr.bf16.mxu0 %v3529_v2  ;;  %3227 = vmatmul.mubr.msk.bf16.gmra.mrb[72].mxu1 %vm445_vm0, %v397_v37 }
  0xa6   : > { %3230 = vmatprep.mubr.msk.bf16.mxu1 %vm445_vm0, %v398_v38 }
  0xac   : > { %2398 = vmatmul.mubr.msk.bf16.gmra.mrb[76].mxu0 %vm445_vm0, %v395_v29 }
  0xad   : > { %774 = vmatprep.mubr.bf16.mxu0 %v3529_v2  ;;  %3231 = vmatmul.mubr.msk.bf16.gmra.mrb[76].mxu1 %vm445_vm0, %v399_v41 }
  0xae   : > { %3234 = vmatprep.mubr.msk.bf16.mxu1 %vm445_vm0, %v3612_v13  ;;  %v414_v13 = vlaneseq }
  0xb4   : > { %2399 = vmatmul.mubr.msk.bf16.gmra.mrb[80].mxu0 %vm445_vm0, %v396_v31 }
  0xb5   : > { %784 = vmatprep.mubr.bf16.mxu0 %v3529_v2  ;;  %3235 = vmatmul.mubr.msk.bf16.gmra.mrb[80].mxu1 %vm445_vm0, %v3624_v18  ;;  %v3807_v18 = vshrl.u32 %v414_v13, 7 }
  0xb6   : > { %3238 = vmatprep.mubr.msk.bf16.mxu1 %vm445_vm0, %v3638_v24  ;;  %v3813_v24 = vld [vmem:[%s4242_s2] sm:$0x7] }
  0xbc   : > { %2400 = vmatmul.mubr.msk.bf16.gmra.mrb[84].mxu0 %vm445_vm0, %v397_v37 }
  0xbd   : > { %794 = vmatprep.mubr.bf16.mxu0 %v3529_v2  ;;  %3239 = vmatmul.mubr.msk.bf16.gmra.mrb[84].mxu1 %vm445_vm0, %v3652_v30 }
  0xbe   : > { %3242 = vmatprep.mubr.msk.bf16.mxu1 %vm445_vm0, %v3664_v36 }
  0xc4   : > { %2401 = vmatmul.mubr.msk.bf16.gmra.mrb[88].mxu0 %vm445_vm0, %v398_v38 }
  0xc5   : > { %804 = vmatprep.mubr.bf16.mxu0 %v3529_v2  ;;  %3243 = vmatmul.mubr.msk.bf16.gmra.mrb[88].mxu1 %vm445_vm0, %v3675_v42  ;;  %v416_v2 = vsub.s32 0, %v3807_v18 }
  0xc6   : > { %3246 = vmatprep.mubr.msk.bf16.mxu1 %vm445_vm0, %v3686_v48 }
  0xc7   : > { %v3816_v30 = vrot.slane %v3813_v24, %v416_v2 }
  0xcc   : > { %2402 = vmatmul.mubr.msk.bf16.gmra.mrb[92].mxu0 %vm445_vm0, %v399_v41 }
  0xcd   : > { %3247 = vmatmul.mubr.msk.bf16.gmra.mrb[92].mxu1 %vm445_vm0, %v3697_v54 }
  0xe7   : > { %v576_v36 = vpop.f32.mrb[0].mxu0 }
  0xe8   : > { %v3818_v42 = vpop.f32.mrb[1].mxu0  ;;  %v577_v44 = vadd.f32 %v576_v36, %v3816_v30  ;;  %v816_v54 = vpop.f32.mrb[0].mxu1 }
  0xe9   : > { %v580_v43 = vpop.f32.mrb[2].mxu0  ;;  %v817_v55 = vadd.f32 %v816_v54, %v3816_v30  ;;  %v3841_v56 = vpop.f32.mrb[1].mxu1 }
  0xea   : > { %v581_v45 = vadd.f32 %v580_v43, %v3816_v30  ;;  %v3825_v46 = vpop.f32.mrb[3].mxu0  ;;  %v820_v58 = vpop.f32.mrb[2].mxu1 }
  0xeb   : > { %v821_v59 = vadd.f32 %v820_v58, %v3816_v30  ;;  %v3844_v60 = vpop.f32.mrb[3].mxu1 }
  0xec   : > { %v2772_v47 = vpack.c.bf16 %v581_v45, %v577_v44 }
  0xed   : > { %v2892_v62 = vpack.c.bf16 %v821_v59, %v817_v55 }
  0xee   : > { %2773 = vst [vmem:[%s3831_s12] sm:$0xff] %v2772_v47  }
  0xef   : > { %v586_v48 = vpop.f32.mrb[4].mxu0  ;;  %3112 = vst [vmem:[%s3831_s12 + $0xc0] sm:$0xff] %v2892_v62  }
  0xf0   : > { %v3834_v49 = vpop.f32.mrb[5].mxu0  ;;  %v587_v51 = vadd.f32 %v586_v48, %v3816_v30  ;;  %v826_v5 = vpop.f32.mrb[4].mxu1 }
  0xf1   : > { %v590_v50 = vpop.f32.mrb[6].mxu0  ;;  %v827_v6 = vadd.f32 %v826_v5, %v3816_v30  ;;  %v3855_v7 = vpop.f32.mrb[5].mxu1 }
  0xf2   : > { %v591_v52 = vadd.f32 %v590_v50, %v3816_v30  ;;  %v3838_v53 = vpop.f32.mrb[7].mxu0  ;;  %v830_v9 = vpop.f32.mrb[6].mxu1 }
  0xf3   : > { %v831_v10 = vadd.f32 %v830_v9, %v3816_v30  ;;  %v3858_v11 = vpop.f32.mrb[7].mxu1 }
  0xf4   : > { %v2777_v57 = vpack.c.bf16 %v591_v52, %v587_v51 }
  0xf5   : > { %v2897_v14 = vpack.c.bf16 %v831_v10, %v827_v6 }
  0xf6   : > { %3089 = vst [vmem:[%s3831_s12 + $0x8] sm:$0xff] %v2777_v57  }
  0xf7   : > { %v596_v61 = vpop.f32.mrb[8].mxu0  ;;  %3113 = vst [vmem:[%s3831_s12 + $0xc8] sm:$0xff] %v2897_v14  }
  0xf8   : > { %v3847_v63 = vpop.f32.mrb[9].mxu0  ;;  %v597_v1 = vadd.f32 %v596_v61, %v3816_v30  ;;  %v836_v21 = vpop.f32.mrb[8].mxu1 }
  0xf9   : > { %v600_v0 = vpop.f32.mrb[10].mxu0  ;;  %v837_v22 = vadd.f32 %v836_v21, %v3816_v30  ;;  %v3869_v23 = vpop.f32.mrb[9].mxu1 }
  0xfa   : > { %v601_v3 = vadd.f32 %v600_v0, %v3816_v30  ;;  %v3852_v4 = vpop.f32.mrb[11].mxu0  ;;  %v840_v26 = vpop.f32.mrb[10].mxu1 }
  0xfb   : > { %v841_v27 = vadd.f32 %v840_v26, %v3816_v30  ;;  %v3872_v28 = vpop.f32.mrb[11].mxu1  ;;  %v420_v26 = vsub.s32 1, %v3807_v18 }
  0xfc   : > { %v2782_v8 = vpack.c.bf16 %v601_v3, %v597_v1 }
  0xfd   : > { %v2902_v31 = vpack.c.bf16 %v841_v27, %v837_v22 }
  0xfe   : > { %3090 = vst [vmem:[%s3831_s12 + $0x10] sm:$0xff] %v2782_v8  }
  0xff   : > { %v606_v12 = vpop.f32.mrb[12].mxu0  ;;  %3114 = vst [vmem:[%s3831_s12 + $0xd0] sm:$0xff] %v2902_v31  }
 0x100   : > { %v3861_v15 = vpop.f32.mrb[13].mxu0  ;;  %v607_v17 = vadd.f32 %v606_v12, %v3816_v30  ;;  %v846_v38 = vpop.f32.mrb[12].mxu1 }
 0x101   : > { %v610_v16 = vpop.f32.mrb[14].mxu0  ;;  %v847_v39 = vadd.f32 %v846_v38, %v3816_v30  ;;  %v3883_v40 = vpop.f32.mrb[13].mxu1 }
 0x102   : > { %v611_v19 = vadd.f32 %v610_v16, %v3816_v30  ;;  %v3866_v20 = vpop.f32.mrb[15].mxu0  ;;  %v850_v13 = vpop.f32.mrb[14].mxu1 }
 0x103   : > { %v851_v2 = vadd.f32 %v850_v13, %v3816_v30  ;;  %v3886_v36 = vpop.f32.mrb[15].mxu1  ;;  %v3929_v13 = vrot.slane %v3813_v24, %v420_v26 }
 0x104   : > { %v2787_v25 = vpack.c.bf16 %v611_v19, %v607_v17 }
 0x105   : > { %v2907_v44 = vpack.c.bf16 %v851_v2, %v847_v39 }
 0x106   : > { %3091 = vst [vmem:[%s3831_s12 + $0x18] sm:$0xff] %v2787_v25  }
 0x107   : > { %v616_v29 = vpop.f32.mrb[16].mxu0  ;;  %3115 = vst [vmem:[%s3831_s12 + $0xd8] sm:$0xff] %v2907_v44  }
 0x108   : > { %v3875_v32 = vpop.f32.mrb[17].mxu0  ;;  %v617_v34 = vadd.f32 %v616_v29, %v3816_v30  ;;  %v856_v52 = vpop.f32.mrb[16].mxu1 }
 0x109   : > { %v620_v33 = vpop.f32.mrb[18].mxu0  ;;  %v857_v54 = vadd.f32 %v856_v52, %v3816_v30  ;;  %v3897_v55 = vpop.f32.mrb[17].mxu1 }
 0x10a   : > { %v621_v35 = vadd.f32 %v620_v33, %v3816_v30  ;;  %v3880_v37 = vpop.f32.mrb[19].mxu0  ;;  %v860_v58 = vpop.f32.mrb[18].mxu1 }
 0x10b   : > { %v861_v59 = vadd.f32 %v860_v58, %v3816_v30  ;;  %v3900_v61 = vpop.f32.mrb[19].mxu1 }
 0x10c   : > { %v2792_v41 = vpack.c.bf16 %v621_v35, %v617_v34 }
 0x10d   : > { %v2912_v0 = vpack.c.bf16 %v861_v59, %v857_v54 }
 0x10e   : > { %3092 = vst [vmem:[%s3831_s12 + $0x20] sm:$0xff] %v2792_v41  }
 0x10f   : > { %v626_v43 = vpop.f32.mrb[20].mxu0  ;;  %3116 = vst [vmem:[%s3831_s12 + $0xe0] sm:$0xff] %v2912_v0  }
 0x110   : > { %v3889_v45 = vpop.f32.mrb[21].mxu0  ;;  %v627_v48 = vadd.f32 %v626_v43, %v3816_v30  ;;  %v866_v9 = vpop.f32.mrb[20].mxu1 }
 0x111   : > { %v630_v47 = vpop.f32.mrb[22].mxu0  ;;  %v867_v10 = vadd.f32 %v866_v9, %v3816_v30  ;;  %v3911_v12 = vpop.f32.mrb[21].mxu1  ;;  %v424_v9 = vsub.s32 2, %v3807_v18 }
 0x112   : > { %v631_v50 = vadd.f32 %v630_v47, %v3816_v30  ;;  %v3894_v51 = vpop.f32.mrb[23].mxu0  ;;  %v870_v16 = vpop.f32.mrb[22].mxu1 }
 0x113   : > { %v871_v17 = vadd.f32 %v870_v16, %v3816_v30  ;;  %v3914_v19 = vpop.f32.mrb[23].mxu1  ;;  %v3953_v26 = vrot.slane %v3813_v24, %v424_v9  ;;  %v593_v24 = vadd.f32 %v3838_v53, %v3929_v13 }
 0x114   : > { %v2797_v57 = vpack.c.bf16 %v631_v50, %v627_v48  ;;  %v579_v50 = vadd.f32 %v3818_v42, %v3929_v13 }
 0x115   : > { %v2917_v22 = vpack.c.bf16 %v871_v17, %v867_v10 }
 0x116   : > { %3093 = vst [vmem:[%s3831_s12 + $0x28] sm:$0xff] %v2797_v57   ;;  %v583_v57 = vadd.f32 %v3825_v46, %v3929_v13 }
 0x117   : > { %v636_v62 = vpop.f32.mrb[24].mxu0  ;;  %3117 = vst [vmem:[%s3831_s12 + $0xe8] sm:$0xff] %v2917_v22  }
 0x118   : > { %v3903_v1 = vpop.f32.mrb[25].mxu0  ;;  %v637_v5 = vadd.f32 %v636_v62, %v3816_v30  ;;  %v876_v34 = vpop.f32.mrb[24].mxu1 }
 0x119   : > { %v640_v3 = vpop.f32.mrb[26].mxu0  ;;  %v877_v35 = vadd.f32 %v876_v34, %v3816_v30  ;;  %v3926_v38 = vpop.f32.mrb[25].mxu1 }
 0x11a   : > { %v641_v6 = vadd.f32 %v640_v3, %v3816_v30  ;;  %v3908_v8 = vpop.f32.mrb[27].mxu0  ;;  %v880_v41 = vpop.f32.mrb[26].mxu1 }
 0x11b   : > { %v881_v2 = vadd.f32 %v880_v41, %v3816_v30  ;;  %v3932_v43 = vpop.f32.mrb[27].mxu1 }
 0x11c   : > { %v2802_v14 = vpack.c.bf16 %v641_v6, %v637_v5 }
 0x11d   : > { %v2922_v47 = vpack.c.bf16 %v881_v2, %v877_v35 }
 0x11e   : > { %3094 = vst [vmem:[%s3831_s12 + $0x30] sm:$0xff] %v2802_v14  }
 0x11f   : > { %v646_v21 = vpop.f32.mrb[28].mxu0  ;;  %3118 = vst [vmem:[%s3831_s12 + $0xf0] sm:$0xff] %v2922_v47  }
 0x120   : > { %v3917_v25 = vpop.f32.mrb[29].mxu0  ;;  %v647_v29 = vadd.f32 %v646_v21, %v3816_v30  ;;  %v886_v0 = vpop.f32.mrb[28].mxu1 }
 0x121   : > { %v650_v27 = vpop.f32.mrb[30].mxu0  ;;  %v887_v6 = vadd.f32 %v886_v0, %v3816_v30  ;;  %v3945_v42 = vpop.f32.mrb[29].mxu1 }
 0x122   : > { %v651_v31 = vadd.f32 %v650_v27, %v3816_v30  ;;  %v3923_v33 = vpop.f32.mrb[31].mxu0  ;;  %v890_v14 = vpop.f32.mrb[30].mxu1 }
 0x123   : > { %v891_v16 = vadd.f32 %v890_v14, %v3816_v30  ;;  %v3949_v17 = vpop.f32.mrb[31].mxu1 }
 0x124   : > { %v2807_v39 = vpack.c.bf16 %v651_v31, %v647_v29  ;;  %v589_v29 = vadd.f32 %v3834_v49, %v3929_v13 }
 0x125   : > { %v2927_v22 = vpack.c.bf16 %v891_v16, %v887_v6 }
 0x126   : > { %3095 = vst [vmem:[%s3831_s12 + $0x38] sm:$0xff] %v2807_v39  }
 0x127   : > { %v656_v44 = vpop.f32.mrb[32].mxu0  ;;  %3119 = vst [vmem:[%s3831_s12 + $0xf8] sm:$0xff] %v2927_v22  }
 0x128   : > { %v658_v48 = vpop.f32.mrb[33].mxu0  ;;  %v657_v58 = vadd.f32 %v656_v44, %v3816_v30  ;;  %v3188_v41 = vpop.f32.mrb[32].mxu1 }
 0x129   : > { %v659_v52 = vadd.f32 %v658_v48, %v3929_v13  ;;  %v660_v54 = vpop.f32.mrb[34].mxu0  ;;  %v938_v49 = vadd.f32 %v3188_v41, %v3953_v26  ;;  %v929_v47 = vpop.f32.mrb[33].mxu1 }
 0x12a   : > { %v661_v59 = vadd.f32 %v660_v54, %v3816_v30  ;;  %v662_v62 = vpop.f32.mrb[35].mxu0 }
 0x12b   : > { %v663_v3 = vadd.f32 %v662_v62, %v3929_v13  ;;  %v3277_v5 = vpack.i.bf16 %v659_v52, %v579_v50  ;;  %v930_v50 = vadd.f32 %v929_v47, %v3953_v26  ;;  %v3189_v52 = vpop.f32.mrb[34].mxu1  ;;  %v609_v47 = vadd.f32 %v3861_v15, %v3929_v13 }
 0x12c   : > { %v2812_v10 = vpack.c.bf16 %v661_v59, %v657_v58  ;;  %v932_v58 = vpop.f32.mrb[35].mxu1 }
 0x12d   : > { %3278 = vxpose.xlu0.b32.start [1/16] %v3277_v5, 128  ;;  %v3279_v46 = vpack.i.bf16 %v663_v3, %v583_v57  ;;  %v941_v57 = vadd.f32 %v3189_v52, %v3953_v26  ;;  %v933_v53 = vadd.f32 %v932_v58, %v3953_v26  ;;  %v599_v5 = vadd.f32 %v3847_v63, %v3929_v13 }
 0x12e   : > { %3096 = vst [vmem:[%s3831_s12 + $0x40] sm:$0xff] %v2812_v10  }
 0x12f   : > { %v666_v21 = vpop.f32.mrb[36].mxu0  ;;  %v2937_v62 = vpack.c.bf16 %v941_v57, %v938_v49  ;;  %v2932_v3 = vpack.c.bf16 %v933_v53, %v930_v50  ;;  %v613_v53 = vadd.f32 %v3866_v20, %v3929_v13 }
 0x130   : > { %v668_v27 = vpop.f32.mrb[37].mxu0  ;;  %v667_v34 = vadd.f32 %v666_v21, %v3816_v30  ;;  %v3192_v16 = vpop.f32.mrb[36].mxu1  ;;  %v603_v21 = vadd.f32 %v3852_v4, %v3929_v13 }
 0x131   : > { %v669_v18 = vadd.f32 %v668_v27, %v3929_v13  ;;  %v670_v31 = vpop.f32.mrb[38].mxu0  ;;  %3280 = vxpose.xlu0.b32.cont [2/16] %v3279_v46, 128  ;;  %3120 = vst [vmem:[%s3972_s15 + $0x8] sm:$0xff] %v2937_v62   ;;  %2933 = vst [vmem:[%s3972_s15] sm:$0xff] %v2932_v3   ;;  %v954_v63 = vadd.f32 %v3192_v16, %v3953_v26 }
 0x132   : > { %v671_v35 = vadd.f32 %v670_v31, %v3816_v30  ;;  %v672_v39 = vpop.f32.mrb[39].mxu0 }
 0x133   : > { %v673_v2 = vadd.f32 %v672_v39, %v3929_v13  ;;  %v3281_v44 = vpack.i.bf16 %v669_v18, %v589_v29  ;;  %v945_v29 = vpop.f32.mrb[37].mxu1 }
 0x134   : > { %v2817_v48 = vpack.c.bf16 %v671_v35, %v667_v34  ;;  %v946_v31 = vadd.f32 %v945_v29, %v3953_v26  ;;  %v3193_v34 = vpop.f32.mrb[38].mxu1 }
 0x135   : > { %3282 = vxpose.xlu0.b32.cont [3/16] %v3281_v44, 128  ;;  %v3283_v54 = vpack.i.bf16 %v673_v2, %v593_v24  ;;  %v957_v39 = vadd.f32 %v3193_v34, %v3953_v26  ;;  %v948_v41 = vpop.f32.mrb[39].mxu1 }
 0x136   : > { %3097 = vst [vmem:[%s3831_s12 + $0x48] sm:$0xff] %v2817_v48   ;;  %v949_v4 = vadd.f32 %v948_v41, %v3953_v26 }
 0x137   : > { %v676_v59 = vpop.f32.mrb[40].mxu0  ;;  %v2947_v2 = vpack.c.bf16 %v957_v39, %v954_v63  ;;  %v623_v39 = vadd.f32 %v3880_v37, %v3929_v13 }
 0x138   : > { %v678_v0 = vpop.f32.mrb[41].mxu0  ;;  %v677_v10 = vadd.f32 %v676_v59, %v3816_v30  ;;  %v2942_v49 = vpack.c.bf16 %v949_v4, %v946_v31  ;;  %v3196_v58 = vpop.f32.mrb[40].mxu1 }
 0x139   : > { %v679_v6 = vadd.f32 %v678_v0, %v3929_v13  ;;  %v680_v9 = vpop.f32.mrb[42].mxu0  ;;  %3284 = vxpose.xlu0.b32.cont [4/16] %v3283_v54, 128  ;;  %3122 = vst [vmem:[%s3972_s15 + $0x18] sm:$0xff] %v2947_v2   ;;  %v970_v15 = vadd.f32 %v3196_v58, %v3953_v26  ;;  %v961_v0 = vpop.f32.mrb[41].mxu1 }
 0x13a   : > { %v681_v14 = vadd.f32 %v680_v9, %v3816_v30  ;;  %v682_v46 = vpop.f32.mrb[43].mxu0  ;;  %3121 = vst [vmem:[%s3972_s15 + $0x10] sm:$0xff] %v2942_v49  }
 0x13b   : > { %v683_v22 = vadd.f32 %v682_v46, %v3929_v13  ;;  %v3285_v27 = vpack.i.bf16 %v679_v6, %v599_v5  ;;  %v962_v5 = vadd.f32 %v961_v0, %v3953_v26  ;;  %v3197_v6 = vpop.f32.mrb[42].mxu1 }
 0x13c   : > { %v2822_v18 = vpack.c.bf16 %v681_v14, %v677_v10  ;;  %v973_v10 = vadd.f32 %v3197_v6, %v3953_v26  ;;  %v964_v14 = vpop.f32.mrb[43].mxu1  ;;  %v633_v6 = vadd.f32 %v3894_v51, %v3929_v13 }
 0x13d   : > { %3286 = vxpose.xlu0.b32.cont [5/16] %v3285_v27, 128  ;;  %v3287_v35 = vpack.i.bf16 %v683_v22, %v603_v21  ;;  %v965_v20 = vadd.f32 %v964_v14, %v3953_v26  ;;  %v619_v27 = vadd.f32 %v3875_v32, %v3929_v13 }
 0x13e   : > { %3098 = vst [vmem:[%s3831_s12 + $0x50] sm:$0xff] %v2822_v18   ;;  %v2957_v16 = vpack.c.bf16 %v973_v10, %v970_v15 }
 0x13f   : > { %v686_v24 = vpop.f32.mrb[44].mxu0  ;;  %v2952_v22 = vpack.c.bf16 %v965_v20, %v962_v5 }
 0x140   : > { %v688_v44 = vpop.f32.mrb[45].mxu0  ;;  %v687_v52 = vadd.f32 %v686_v24, %v3816_v30  ;;  %3124 = vst [vmem:[%s3972_s15 + $0x28] sm:$0xff] %v2957_v16  }
 0x141   : > { %v689_v48 = vadd.f32 %v688_v44, %v3929_v13  ;;  %v690_v50 = vpop.f32.mrb[46].mxu0  ;;  %3288 = vxpose.xlu0.b32.cont [6/16] %v3287_v35, 128  ;;  %3123 = vst [vmem:[%s3972_s15 + $0x20] sm:$0xff] %v2952_v22   ;;  %v3200_v35 = vpop.f32.mrb[44].mxu1 }
 0x142   : > { %v691_v54 = vadd.f32 %v690_v50, %v3816_v30  ;;  %v692_v57 = vpop.f32.mrb[47].mxu0  ;;  %v986_v32 = vadd.f32 %v3200_v35, %v3953_v26  ;;  %v977_v24 = vpop.f32.mrb[45].mxu1 }
 0x143   : > { %v693_v59 = vadd.f32 %v692_v57, %v3929_v13  ;;  %v3289_v62 = vpack.i.bf16 %v689_v48, %v609_v47  ;;  %v978_v44 = vadd.f32 %v977_v24, %v3953_v26  ;;  %v3201_v49 = vpop.f32.mrb[46].mxu1 }
 0x144   : > { %v2827_v3 = vpack.c.bf16 %v691_v54, %v687_v52  ;;  %v989_v48 = vadd.f32 %v3201_v49, %v3953_v26  ;;  %v980_v50 = vpop.f32.mrb[47].mxu1 }
 0x145   : > { %3290 = vxpose.xlu0.b32.cont [7/16] %v3289_v62, 128  ;;  %v3291_v9 = vpack.i.bf16 %v693_v59, %v613_v53  ;;  %v981_v37 = vadd.f32 %v980_v50, %v3953_v26  ;;  %v629_v53 = vadd.f32 %v3889_v45, %v3929_v13 }
 0x146   : > { %3099 = vst [vmem:[%s3831_s12 + $0x58] sm:$0xff] %v2827_v3   ;;  %v2967_v54 = vpack.c.bf16 %v989_v48, %v986_v32 }
 0x147   : > { %v696_v46 = vpop.f32.mrb[48].mxu0  ;;  %v2962_v58 = vpack.c.bf16 %v981_v37, %v978_v44 }
 0x148   : > { %v698_v21 = vpop.f32.mrb[49].mxu0  ;;  %v697_v18 = vadd.f32 %v696_v46, %v3816_v30  ;;  %3126 = vst [vmem:[%s3972_s15 + $0x38] sm:$0xff] %v2967_v54   ;;  %v3204_v5 = vpop.f32.mrb[48].mxu1 }
 0x149   : > { %v699_v63 = vadd.f32 %v698_v21, %v3929_v13  ;;  %v700_v29 = vpop.f32.mrb[50].mxu0  ;;  %3292 = vxpose.xlu0.b32.cont [8/16] %v3291_v9, 128  ;;  %3125 = vst [vmem:[%s3972_s15 + $0x30] sm:$0xff] %v2962_v58   ;;  %v1002_v45 = vadd.f32 %v3204_v5, %v3953_v26  ;;  %v993_v14 = vpop.f32.mrb[49].mxu1 }
 0x14a   : > { %v701_v31 = vadd.f32 %v700_v29, %v3816_v30  ;;  %v702_v34 = vpop.f32.mrb[51].mxu0  ;;  %v994_v46 = vadd.f32 %v993_v14, %v3953_v26  ;;  %v3205_v16 = vpop.f32.mrb[50].mxu1 }
 0x14b   : > { %v703_v41 = vadd.f32 %v702_v34, %v3929_v13  ;;  %v3293_v4 = vpack.i.bf16 %v699_v63, %v619_v27  ;;  %v1005_v22 = vadd.f32 %v3205_v16, %v3953_v26  ;;  %v996_v27 = vpop.f32.mrb[51].mxu1  ;;  %v639_v34 = vadd.f32 %v3903_v1, %v3929_v13 }
 0x14c   : > { %v2832_v2 = vpack.c.bf16 %v701_v31, %v697_v18  ;;  %v997_v51 = vadd.f32 %v996_v27, %v3953_v26 }
 0x14d   : > { %3294 = vxpose.xlu0.b32.cont [9/16] %v3293_v4, 128  ;;  %v3295_v47 = vpack.i.bf16 %v703_v41, %v623_v39  ;;  %v2977_v29 = vpack.c.bf16 %v1005_v22, %v1002_v45  ;;  %v653_v45 = vadd.f32 %v3923_v33, %v3929_v13 }
 0x14e   : > { %3100 = vst [vmem:[%s3831_s12 + $0x60] sm:$0xff] %v2832_v2   ;;  %v2972_v31 = vpack.c.bf16 %v997_v51, %v994_v46  ;;  %v643_v2 = vadd.f32 %v3908_v8, %v3929_v13 }
 0x14f   : > { %v706_v52 = vpop.f32.mrb[52].mxu0  ;;  %3128 = vst [vmem:[%s3972_s15 + $0x48] sm:$0xff] %v2977_v29   ;;  %v819_v29 = vadd.f32 %v3841_v56, %v3929_v13  ;;  %v823_v56 = vadd.f32 %v3844_v60, %v3929_v13 }
 0x150   : > { %v708_v57 = vpop.f32.mrb[53].mxu0  ;;  %v707_v15 = vadd.f32 %v706_v52, %v3816_v30  ;;  %3127 = vst [vmem:[%s3972_s15 + $0x40] sm:$0xff] %v2972_v31   ;;  %v3208_v24 = vpop.f32.mrb[52].mxu1 }
 0x151   : > { %v709_v59 = vadd.f32 %v708_v57, %v3929_v13  ;;  %v710_v62 = vpop.f32.mrb[54].mxu0  ;;  %3296 = vxpose.xlu0.b32.cont [10/16] %v3295_v47, 128  ;;  %v1018_v1 = vadd.f32 %v3208_v24, %v3953_v26  ;;  %v1009_v47 = vpop.f32.mrb[53].mxu1 }
 0x152   : > { %v711_v0 = vadd.f32 %v710_v62, %v3816_v30  ;;  %v712_v3 = vpop.f32.mrb[55].mxu0  ;;  %v1010_v50 = vadd.f32 %v1009_v47, %v3953_v26  ;;  %v3209_v37 = vpop.f32.mrb[54].mxu1 }
 0x153   : > { %v713_v9 = vadd.f32 %v712_v3, %v3929_v13  ;;  %v3297_v10 = vpack.i.bf16 %v709_v59, %v629_v53  ;;  %v1021_v54 = vadd.f32 %v3209_v37, %v3953_v26  ;;  %v1012_v57 = vpop.f32.mrb[55].mxu1 }
 0x154   : > { %v2837_v20 = vpack.c.bf16 %v711_v0, %v707_v15  ;;  %v1013_v8 = vadd.f32 %v1012_v57, %v3953_v26  ;;  %v649_v15 = vadd.f32 %v3917_v25, %v3929_v13 }
 0x155   : > { %3298 = vxpose.xlu0.b32.cont [11/16] %v3297_v10, 128  ;;  %v3299_v21 = vpack.i.bf16 %v713_v9, %v633_v6  ;;  %v2987_v53 = vpack.c.bf16 %v1021_v54, %v1018_v1 }
 0x156   : > { %3101 = vst [vmem:[%s3831_s12 + $0x68] sm:$0xff] %v2837_v20   ;;  %v2982_v62 = vpack.c.bf16 %v1013_v8, %v1010_v50  ;;  %v829_v8 = vadd.f32 %v3855_v7, %v3929_v13  ;;  %v833_v7 = vadd.f32 %v3858_v11, %v3929_v13 }
 0x157   : > { %v716_v63 = vpop.f32.mrb[56].mxu0  ;;  %3130 = vst [vmem:[%s3972_s15 + $0x58] sm:$0xff] %v2987_v53  }
 0x158   : > { %v718_v18 = vpop.f32.mrb[57].mxu0  ;;  %v717_v41 = vadd.f32 %v716_v63, %v3816_v30  ;;  %3129 = vst [vmem:[%s3972_s15 + $0x50] sm:$0xff] %v2982_v62   ;;  %v3212_v10 = vpop.f32.mrb[56].mxu1 }
 0x159   : > { %v719_v35 = vadd.f32 %v718_v18, %v3929_v13  ;;  %v720_v39 = vpop.f32.mrb[58].mxu0  ;;  %3300 = vxpose.xlu0.b32.cont [12/16] %v3299_v21, 128  ;;  %v1034_v25 = vadd.f32 %v3212_v10, %v3953_v26  ;;  %v1025_v46 = vpop.f32.mrb[57].mxu1 }
 0x15a   : > { %v721_v4 = vadd.f32 %v720_v39, %v3816_v30  ;;  %v722_v32 = vpop.f32.mrb[59].mxu0  ;;  %v1026_v21 = vadd.f32 %v1025_v46, %v3953_v26  ;;  %v3213_v22 = vpop.f32.mrb[58].mxu1 }
 0x15b   : > { %v723_v44 = vadd.f32 %v722_v32, %v3929_v13  ;;  %v3301_v49 = vpack.i.bf16 %v719_v35, %v639_v34  ;;  %v1037_v51 = vadd.f32 %v3213_v22, %v3953_v26  ;;  %v1028_v63 = vpop.f32.mrb[59].mxu1 }
 0x15c   : > { %v2842_v48 = vpack.c.bf16 %v721_v4, %v717_v41  ;;  %v1029_v33 = vadd.f32 %v1028_v63, %v3953_v26 }
 0x15d   : > { %3302 = vxpose.xlu0.b32.cont [13/16] %v3301_v49, 128  ;;  %v3303_v52 = vpack.i.bf16 %v723_v44, %v643_v2  ;;  %v2997_v31 = vpack.c.bf16 %v1037_v51, %v1034_v25  ;;  %v839_v51 = vadd.f32 %v3869_v23, %v3929_v13  ;;  %v843_v23 = vadd.f32 %v3872_v28, %v3929_v13 }
 0x15e   : > { %3102 = vst [vmem:[%s3831_s12 + $0x70] sm:$0xff] %v2842_v48   ;;  %v2992_v35 = vpack.c.bf16 %v1029_v33, %v1026_v21 }
 0x15f   : > { %v726_v58 = vpop.f32.mrb[60].mxu0  ;;  %3132 = vst [vmem:[%s3972_s15 + $0x68] sm:$0xff] %v2997_v31  }
 0x160   : > { %v728_v59 = vpop.f32.mrb[61].mxu0  ;;  %v727_v5 = vadd.f32 %v726_v58, %v3816_v30  ;;  %3131 = vst [vmem:[%s3972_s15 + $0x60] sm:$0xff] %v2992_v35   ;;  %v3216_v2 = vpop.f32.mrb[60].mxu1 }
 0x161   : > { %v729_v0 = vadd.f32 %v728_v59, %v3929_v13  ;;  %v730_v3 = vpop.f32.mrb[62].mxu0  ;;  %3304 = vxpose.xlu0.b32.cont [14/16] %v3303_v52, 128  ;;  %v1050_v1 = vadd.f32 %v3216_v2, %v3953_v26  ;;  %v1041_v47 = vpop.f32.mrb[61].mxu1 }
 0x162   : > { %v731_v6 = vadd.f32 %v730_v3, %v3816_v30  ;;  %v732_v9 = vpop.f32.mrb[63].mxu0  ;;  %v1042_v50 = vadd.f32 %v1041_v47, %v3953_v26  ;;  %v3217_v37 = vpop.f32.mrb[62].mxu1 }
 0x163   : > { %v733_v14 = vadd.f32 %v732_v9, %v3929_v13  ;;  %v3305_v20 = vpack.i.bf16 %v729_v0, %v649_v15  ;;  %v1053_v54 = vadd.f32 %v3217_v37, %v3953_v26  ;;  %v1044_v57 = vpop.f32.mrb[63].mxu1  ;;  %v849_v37 = vadd.f32 %v3883_v40, %v3929_v13 }
 0x164   : > { %v2847_v16 = vpack.c.bf16 %v731_v6, %v727_v5  ;;  %v1045_v60 = vadd.f32 %v1044_v57, %v3953_v26  ;;  %v853_v40 = vadd.f32 %v3886_v36, %v3929_v13 }
 0x165   : > { %3306 = vxpose.xlu0.b32.cont [15/16] %v3305_v20, 128  ;;  %v3307_v27 = vpack.i.bf16 %v733_v14, %v653_v45  ;;  %v3007_v53 = vpack.c.bf16 %v1053_v54, %v1050_v1 }
 0x166   : > { %3103 = vst [vmem:[%s3831_s12 + $0x78] sm:$0xff] %v2847_v16   ;;  %v3002_v62 = vpack.c.bf16 %v1045_v60, %v1042_v50 }
 0x167   : > { %v736_v18 = vpop.f32.mrb[64].mxu0  ;;  %3134 = vst [vmem:[%s3972_s15 + $0x78] sm:$0xff] %v3007_v53  }
 0x168   : > { %v738_v34 = vpop.f32.mrb[65].mxu0  ;;  %v737_v4 = vadd.f32 %v736_v18, %v3816_v30  ;;  %3133 = vst [vmem:[%s3972_s15 + $0x70] sm:$0xff] %v3002_v62   ;;  %v3220_v9 = vpop.f32.mrb[64].mxu1 }
 0x169   : > { %v739_v39 = vadd.f32 %v738_v34, %v3929_v13  ;;  %v740_v41 = vpop.f32.mrb[66].mxu0  ;;  %3308 = vxpose.xlu0.b32.end [16/16] %v3307_v27, 128  ;;  %v1066_v14 = vadd.f32 %v3220_v9, %v3953_v26  ;;  %v1057_v20 = vpop.f32.mrb[65].mxu1 }
 0x16a   : > { %v741_v32 = vadd.f32 %v740_v41, %v3816_v30  ;;  %v742_v24 = vpop.f32.mrb[67].mxu0  ;;  %v1058_v46 = vadd.f32 %v1057_v20, %v3953_v26  ;;  %v3221_v16 = vpop.f32.mrb[66].mxu1 }
 0x16b   : > { %v743_v44 = vadd.f32 %v742_v24, %v3929_v13  ;;  %v3389_v49 = vpack.i.bf16 %v819_v29, %v739_v39  ;;  %v1069_v22 = vadd.f32 %v3221_v16, %v3953_v26  ;;  %v1060_v27 = vpop.f32.mrb[67].mxu1 }
 0x16c   : > { %v2852_v48 = vpack.c.bf16 %v741_v32, %v737_v4  ;;  %v1061_v11 = vadd.f32 %v1060_v27, %v3953_v26 }
 0x16d   : > { %3390 = vxpose.xlu1.b32.start [1/16] %v3389_v49, 128  ;;  %v3391_v52 = vpack.i.bf16 %v823_v56, %v743_v44  ;;  %v3017_v33 = vpack.c.bf16 %v1069_v22, %v1066_v14 }
 0x16e   : > { %3104 = vst [vmem:[%s3831_s12 + $0x80] sm:$0xff] %v2852_v48   ;;  %v3012_v18 = vpack.c.bf16 %v1061_v11, %v1058_v46 }
 0x16f   : > { %v746_v58 = vpop.f32.mrb[68].mxu0  ;;  %3136 = vst [vmem:[%s3972_s15 + $0x88] sm:$0xff] %v3017_v33  }
 0x170   : > { %v748_v59 = vpop.f32.mrb[69].mxu0  ;;  %v747_v3 = vadd.f32 %v746_v58, %v3816_v30  ;;  %3135 = vst [vmem:[%s3972_s15 + $0x80] sm:$0xff] %v3012_v18   ;;  %v3224_v4 = vpop.f32.mrb[68].mxu1 }
 0x171   : > { %v749_v15 = vadd.f32 %v748_v59, %v3929_v13  ;;  %v750_v0 = vpop.f32.mrb[70].mxu0  ;;  %3392 = vxpose.xlu1.b32.cont [2/16] %v3391_v52, 128  ;;  %v1082_v2 = vadd.f32 %v3224_v4, %v3953_v26  ;;  %v1073_v56 = vpop.f32.mrb[69].mxu1 }
 0x172   : > { %v751_v5 = vadd.f32 %v750_v0, %v3816_v30  ;;  %v752_v6 = vpop.f32.mrb[71].mxu0  ;;  %v1074_v49 = vadd.f32 %v1073_v56, %v3953_v26  ;;  %v3225_v1 = vpop.f32.mrb[70].mxu1 }
 0x173   : > { %v753_v10 = vadd.f32 %v752_v6, %v3929_v13  ;;  %v3393_v45 = vpack.i.bf16 %v829_v8, %v749_v15  ;;  %v1085_v48 = vadd.f32 %v3225_v1, %v3953_v26  ;;  %v1076_v50 = vpop.f32.mrb[71].mxu1 }
 0x174   : > { %v2857_v25 = vpack.c.bf16 %v751_v5, %v747_v3  ;;  %v1077_v28 = vadd.f32 %v1076_v50, %v3953_v26 }
 0x175   : > { %3394 = vxpose.xlu1.b32.cont [3/16] %v3393_v45, 128  ;;  %v3395_v21 = vpack.i.bf16 %v833_v7, %v753_v10  ;;  %v3027_v54 = vpack.c.bf16 %v1085_v48, %v1082_v2  ;;  %v869_v2 = vadd.f32 %v3911_v12, %v3929_v13  ;;  %v873_v12 = vadd.f32 %v3914_v19, %v3929_v13 }
 0x176   : > { %3105 = vst [vmem:[%s3831_s12 + $0x88] sm:$0xff] %v2857_v25   ;;  %v3022_v60 = vpack.c.bf16 %v1077_v28, %v1074_v49  ;;  %v859_v25 = vadd.f32 %v3897_v55, %v3929_v13  ;;  %v863_v55 = vadd.f32 %v3900_v61, %v3929_v13 }
 0x177   : > { %v756_v63 = vpop.f32.mrb[72].mxu0  ;;  %3138 = vst [vmem:[%s3972_s15 + $0x98] sm:$0xff] %v3027_v54  }
 0x178   : > { %v758_v29 = vpop.f32.mrb[73].mxu0  ;;  %v757_v35 = vadd.f32 %v756_v63, %v3816_v30  ;;  %3137 = vst [vmem:[%s3972_s15 + $0x90] sm:$0xff] %v3022_v60   ;;  %v3228_v15 = vpop.f32.mrb[72].mxu1 }
 0x179   : > { %v759_v31 = vadd.f32 %v758_v29, %v3929_v13  ;;  %v760_v34 = vpop.f32.mrb[74].mxu0  ;;  %3396 = vxpose.xlu1.b32.cont [4/16] %v3395_v21, 128  ;;  %v1098_v5 = vadd.f32 %v3228_v15, %v3953_v26  ;;  %v1089_v6 = vpop.f32.mrb[73].mxu1 }
 0x17a   : > { %v761_v39 = vadd.f32 %v760_v34, %v3816_v30  ;;  %v762_v41 = vpop.f32.mrb[75].mxu0  ;;  %v1090_v7 = vadd.f32 %v1089_v6, %v3953_v26  ;;  %v3229_v10 = vpop.f32.mrb[74].mxu1 }
 0x17b   : > { %v763_v32 = vadd.f32 %v762_v41, %v3929_v13  ;;  %v3397_v24 = vpack.i.bf16 %v839_v51, %v759_v31  ;;  %v1101_v14 = vadd.f32 %v3229_v10, %v3953_v26  ;;  %v1092_v20 = vpop.f32.mrb[75].mxu1 }
 0x17c   : > { %v2862_v44 = vpack.c.bf16 %v761_v39, %v757_v35  ;;  %v1093_v36 = vadd.f32 %v1092_v20, %v3953_v26 }
 0x17d   : > { %3398 = vxpose.xlu1.b32.cont [5/16] %v3397_v24, 128  ;;  %v3399_v47 = vpack.i.bf16 %v843_v23, %v763_v32  ;;  %v3037_v16 = vpack.c.bf16 %v1101_v14, %v1098_v5 }
 0x17e   : > { %3106 = vst [vmem:[%s3831_s12 + $0x90] sm:$0xff] %v2862_v44   ;;  %v3032_v22 = vpack.c.bf16 %v1093_v36, %v1090_v7 }
 0x17f   : > { %v766_v52 = vpop.f32.mrb[76].mxu0  ;;  %3140 = vst [vmem:[%s3972_s15 + $0xa8] sm:$0xff] %v3037_v16  }
 0x180   : > { %v768_v57 = vpop.f32.mrb[77].mxu0  ;;  %v767_v53 = vadd.f32 %v766_v52, %v3816_v30  ;;  %3139 = vst [vmem:[%s3972_s15 + $0xa0] sm:$0xff] %v3032_v22   ;;  %v3232_v29 = vpop.f32.mrb[76].mxu1 }
 0x181   : > { %v769_v8 = vadd.f32 %v768_v57, %v3929_v13  ;;  %v770_v58 = vpop.f32.mrb[78].mxu0  ;;  %3400 = vxpose.xlu1.b32.cont [6/16] %v3399_v47, 128  ;;  %v1114_v34 = vadd.f32 %v3232_v29, %v3953_v26  ;;  %v1105_v35 = vpop.f32.mrb[77].mxu1  ;;  %v889_v29 = vadd.f32 %v3945_v42, %v3929_v13  ;;  %v893_v42 = vadd.f32 %v3949_v17, %v3929_v13 }
 0x182   : > { %v771_v59 = vadd.f32 %v770_v58, %v3816_v30  ;;  %v772_v62 = vpop.f32.mrb[79].mxu0  ;;  %v1106_v41 = vadd.f32 %v1105_v35, %v3953_v26  ;;  %v3233_v4 = vpop.f32.mrb[78].mxu1 }
 0x183   : > { %v773_v0 = vadd.f32 %v772_v62, %v3929_v13  ;;  %v3401_v3 = vpack.i.bf16 %v849_v37, %v769_v8  ;;  %v1117_v32 = vadd.f32 %v3233_v4, %v3953_v26  ;;  %v1108_v24 = vpop.f32.mrb[79].mxu1 }
 0x184   : > { %v2867_v9 = vpack.c.bf16 %v771_v59, %v767_v53  ;;  %v1109_v61 = vadd.f32 %v1108_v24, %v3953_v26 }
 0x185   : > { %3402 = vxpose.xlu1.b32.cont [7/16] %v3401_v3, 128  ;;  %v3403_v45 = vpack.i.bf16 %v853_v40, %v773_v0  ;;  %v3047_v44 = vpack.c.bf16 %v1117_v32, %v1114_v34  ;;  %v879_v0 = vadd.f32 %v3926_v38, %v3929_v13  ;;  %v883_v38 = vadd.f32 %v3932_v43, %v3929_v13 }
 0x186   : > { %3107 = vst [vmem:[%s3831_s12 + $0x98] sm:$0xff] %v2867_v9   ;;  %v3042_v1 = vpack.c.bf16 %v1109_v61, %v1106_v41 }
 0x187   : > { %v776_v46 = vpop.f32.mrb[80].mxu0  ;;  %3142 = vst [vmem:[%s3972_s15 + $0xb8] sm:$0xff] %v3047_v44  }
 0x188   : > { %v778_v21 = vpop.f32.mrb[81].mxu0  ;;  %v777_v51 = vadd.f32 %v776_v46, %v3816_v30  ;;  %3141 = vst [vmem:[%s3972_s15 + $0xb0] sm:$0xff] %v3042_v1   ;;  %v3236_v52 = vpop.f32.mrb[80].mxu1 }
 0x189   : > { %v779_v27 = vadd.f32 %v778_v21, %v3929_v13  ;;  %v780_v11 = vpop.f32.mrb[82].mxu0  ;;  %3404 = vxpose.xlu1.b32.cont [8/16] %v3403_v45, 128  ;;  %v1130_v60 = vadd.f32 %v3236_v52, %v3953_v26  ;;  %v1121_v8 = vpop.f32.mrb[81].mxu1 }
 0x18a   : > { %v781_v63 = vadd.f32 %v780_v11, %v3816_v30  ;;  %v782_v33 = vpop.f32.mrb[83].mxu0  ;;  %v1122_v53 = vadd.f32 %v1121_v8, %v3953_v26  ;;  %v3237_v59 = vpop.f32.mrb[82].mxu1 }
 0x18b   : > { %v783_v18 = vadd.f32 %v782_v33, %v3929_v13  ;;  %v3405_v31 = vpack.i.bf16 %v859_v25, %v779_v27  ;;  %v1133_v15 = vadd.f32 %v3237_v59, %v3953_v26  ;;  %v1124_v40 = vpop.f32.mrb[83].mxu1 }
 0x18c   : > { %v2872_v39 = vpack.c.bf16 %v781_v63, %v777_v51  ;;  %v1125_v19 = vadd.f32 %v1124_v40, %v3953_v26 }
 0x18d   : > { %3406 = vxpose.xlu1.b32.cont [9/16] %v3405_v31, 128  ;;  %v3407_v23 = vpack.i.bf16 %v863_v55, %v783_v18  ;;  %v3057_v5 = vpack.c.bf16 %v1133_v15, %v1130_v60 }
 0x18e   : > { %3108 = vst [vmem:[%s3831_s12 + $0xa0] sm:$0xff] %v2872_v39   ;;  %v3052_v9 = vpack.c.bf16 %v1125_v19, %v1122_v53 }
 0x18f   : > { %v786_v56 = vpop.f32.mrb[84].mxu0  ;;  %3144 = vst [vmem:[%s3972_s15 + $0xc8] sm:$0xff] %v3057_v5  }
 0x190   : > { %v788_v49 = vpop.f32.mrb[85].mxu0  ;;  %v787_v50 = vadd.f32 %v786_v56, %v3816_v30  ;;  %3143 = vst [vmem:[%s3972_s15 + $0xc0] sm:$0xff] %v3052_v9   ;;  %v3240_v36 = vpop.f32.mrb[84].mxu1 }
 0x191   : > { %v789_v47 = vadd.f32 %v788_v49, %v3929_v13  ;;  %v790_v48 = vpop.f32.mrb[86].mxu0  ;;  %3408 = vxpose.xlu1.b32.cont [10/16] %v3407_v23, 128  ;;  %v1146_v16 = vadd.f32 %v3240_v36, %v3953_v26  ;;  %v1137_v21 = vpop.f32.mrb[85].mxu1 }
 0x192   : > { %v791_v28 = vadd.f32 %v790_v48, %v3816_v30  ;;  %v792_v37 = vpop.f32.mrb[87].mxu0  ;;  %v1138_v27 = vadd.f32 %v1137_v21, %v3953_v26  ;;  %v3241_v11 = vpop.f32.mrb[86].mxu1 }
 0x193   : > { %v793_v54 = vadd.f32 %v792_v37, %v3929_v13  ;;  %v3409_v57 = vpack.i.bf16 %v869_v2, %v789_v47  ;;  %v1149_v63 = vadd.f32 %v3241_v11, %v3953_v26  ;;  %v1140_v33 = vpop.f32.mrb[87].mxu1 }
 0x194   : > { %v2877_v58 = vpack.c.bf16 %v791_v28, %v787_v50  ;;  %v1141_v43 = vadd.f32 %v1140_v33, %v3953_v26 }
 0x195   : > { %3410 = vxpose.xlu1.b32.cont [11/16] %v3409_v57, 128  ;;  %v3411_v62 = vpack.i.bf16 %v873_v12, %v793_v54  ;;  %v3067_v18 = vpack.c.bf16 %v1149_v63, %v1146_v16 }
 0x196   : > { %3109 = vst [vmem:[%s3831_s12 + $0xa8] sm:$0xff] %v2877_v58   ;;  %v3062_v34 = vpack.c.bf16 %v1141_v43, %v1138_v27 }
 0x197   : > { %v796_v3 = vpop.f32.mrb[88].mxu0  ;;  %3146 = vst [vmem:[%s3972_s15 + $0xd8] sm:$0xff] %v3067_v18  }
 0x198   : > { %v798_v6 = vpop.f32.mrb[89].mxu0  ;;  %v797_v45 = vadd.f32 %v796_v3, %v3816_v30  ;;  %3145 = vst [vmem:[%s3972_s15 + $0xd0] sm:$0xff] %v3062_v34   ;;  %v3244_v32 = vpop.f32.mrb[88].mxu1 }
 0x199   : > { %v799_v7 = vadd.f32 %v798_v6, %v3929_v13  ;;  %v800_v10 = vpop.f32.mrb[90].mxu0  ;;  %3412 = vxpose.xlu1.b32.cont [12/16] %v3411_v62, 128  ;;  %v1162_v2 = vadd.f32 %v3244_v32, %v3953_v26  ;;  %v1153_v56 = vpop.f32.mrb[89].mxu1 }
 0x19a   : > { %v801_v14 = vadd.f32 %v800_v10, %v3816_v30  ;;  %v802_v20 = vpop.f32.mrb[91].mxu0  ;;  %v1154_v49 = vadd.f32 %v1153_v56, %v3953_v26  ;;  %v3245_v1 = vpop.f32.mrb[90].mxu1 }
 0x19b   : > { %v803_v25 = vadd.f32 %v802_v20, %v3929_v13  ;;  %v3413_v46 = vpack.i.bf16 %v879_v0, %v799_v7  ;;  %v1165_v47 = vadd.f32 %v3245_v1, %v3953_v26  ;;  %v1156_v48 = vpop.f32.mrb[91].mxu1 }
 0x19c   : > { %v2882_v22 = vpack.c.bf16 %v801_v14, %v797_v45  ;;  %v1157_v17 = vadd.f32 %v1156_v48, %v3953_v26 }
 0x19d   : > { %3414 = vxpose.xlu1.b32.cont [13/16] %v3413_v46, 128  ;;  %v3415_v51 = vpack.i.bf16 %v883_v38, %v803_v25 }
 0x19e   : > { %3110 = vst [vmem:[%s3831_s12 + $0xb0] sm:$0xff] %v2882_v22   ;;  %v3072_v50 = vpack.c.bf16 %v1157_v17, %v1154_v49 }
 0x19f   : > { %v806_v55 = vpop.f32.mrb[92].mxu0 }
 0x1a0   : > { %v808_v31 = vpop.f32.mrb[93].mxu0  ;;  %v807_v41 = vadd.f32 %v806_v55, %v3816_v30  ;;  %3147 = vst [vmem:[%s3972_s15 + $0xe0] sm:$0xff] %v3072_v50   ;;  %v3248_v28 = vpop.f32.mrb[92].mxu1 }
 0x1a1   : > { %v809_v35 = vadd.f32 %v808_v31, %v3929_v13  ;;  %v810_v39 = vpop.f32.mrb[94].mxu0  ;;  %3416 = vxpose.xlu1.b32.cont [14/16] %v3415_v51, 128  ;;  %v1178_v37 = vadd.f32 %v3248_v28, %v3953_v26  ;;  %v1169_v52 = vpop.f32.mrb[93].mxu1 }
 0x1a2   : > { %v811_v4 = vadd.f32 %v810_v39, %v3816_v30  ;;  %v812_v23 = vpop.f32.mrb[95].mxu0  ;;  %v3249_v12 = vpop.f32.mrb[94].mxu1  ;;  %v1170_v57 = vadd.f32 %v1169_v52, %v3953_v26 }
 0x1a3   : > { %v813_v24 = vadd.f32 %v812_v23, %v3929_v13  ;;  %v3417_v61 = vpack.i.bf16 %v889_v29, %v809_v35  ;;  %v3077_v13 = vpack.c.bf16 %v1165_v47, %v1162_v2  ;;  %v1181_v60 = vadd.f32 %v3249_v12, %v3953_v26  ;;  %v1172_v8 = vpop.f32.mrb[95].mxu1 }
 0x1a4   : > { %v2887_v44 = vpack.c.bf16 %v811_v4, %v807_v41  ;;  %v1173_v62 = vadd.f32 %v1172_v8, %v3953_v26 }
 0x1a5   : > { %3418 = vxpose.xlu1.b32.cont [15/16] %v3417_v61, 128  ;;  %v3419_v30 = vpack.i.bf16 %v893_v42, %v813_v24  ;;  %3148 = vst [vmem:[%s3972_s15 + $0xe8] sm:$0xff] %v3077_v13   ;;  %v3087_v59 = vpack.c.bf16 %v1181_v60, %v1178_v37 }
 0x1a6   : > { %3111 = vst [vmem:[%s3831_s12 + $0xb8] sm:$0xff] %v2887_v44   ;;  %v3082_v19 = vpack.c.bf16 %v1173_v62, %v1170_v57 }
 0x1a7   : > { %3150 = vst [vmem:[%s3972_s15 + $0xf8] sm:$0xff] %v3087_v59  }
 0x1a8   : > { %3149 = vst [vmem:[%s3972_s15 + $0xf0] sm:$0xff] %v3082_v19  }
 0x1a9   : > { %3420 = vxpose.xlu1.b32.end [16/16] %v3419_v30, 128 }
 0x1ad   : > { %v3309_v54 = vpop.trf.xlu0 }
 0x1ae   : > { %v3313_v58 = vunpack.i.h.bf16 %v3309_v54  ;;  %v3310_v53 = vunpack.i.l.bf16 %v3309_v54 }
 0x1b0   : > { %v2673_v15 = vpack.c.bf16 %v3313_v58, %v3310_v53 }
 0x1b1   : > { %v3314_v40 = vpop.trf.xlu0 }
 0x1b2   : > { %1824 = vst [vmem:[%s4194_s18] sm:$0xff] %v2673_v15  ;;  %v3318_v0 = vunpack.i.h.bf16 %v3314_v40  ;;  %v3315_v3 = vunpack.i.l.bf16 %v3314_v40 }
 0x1b4   : > { %v2675_v5 = vpack.c.bf16 %v3318_v0, %v3315_v3 }
 0x1b5   : > { %v3319_v6 = vpop.trf.xlu0 }
 0x1b6   : > { %1826 = vst [vmem:[%s4194_s18 + $0x10] sm:$0xff] %v2675_v5  ;;  %v3323_v9 = vunpack.i.h.bf16 %v3319_v6  ;;  %v3320_v7 = vunpack.i.l.bf16 %v3319_v6 }
 0x1b8   : > { %v2677_v10 = vpack.c.bf16 %v3323_v9, %v3320_v7 }
 0x1b9   : > { %v3324_v45 = vpop.trf.xlu0 }
 0x1ba   : > { %1828 = vst [vmem:[%s4194_s18 + $0x20] sm:$0xff] %v2677_v10  ;;  %v3328_v26 = vunpack.i.h.bf16 %v3324_v45  ;;  %v3325_v14 = vunpack.i.l.bf16 %v3324_v45 }
 0x1bc   : > { %v2679_v20 = vpack.c.bf16 %v3328_v26, %v3325_v14 }
 0x1bd   : > { %v3329_v36 = vpop.trf.xlu0 }
 0x1be   : > { %1830 = vst [vmem:[%s4194_s18 + $0x30] sm:$0xff] %v2679_v20  ;;  %v3333_v38 = vunpack.i.h.bf16 %v3329_v36  ;;  %v3330_v25 = vunpack.i.l.bf16 %v3329_v36 }
 0x1c0   : > { %v2681_v46 = vpack.c.bf16 %v3333_v38, %v3330_v25 }
 0x1c1   : > { %v3334_v16 = vpop.trf.xlu0 }
 0x1c2   : > { %1832 = vst [vmem:[%s4194_s18 + $0x40] sm:$0xff] %v2681_v46  ;;  %v3338_v21 = vunpack.i.h.bf16 %v3334_v16  ;;  %v3335_v22 = vunpack.i.l.bf16 %v3334_v16 }
 0x1c4   : > { %v2683_v27 = vpack.c.bf16 %v3338_v21, %v3335_v22 }
 0x1c5   : > { %v3339_v11 = vpop.trf.xlu0 }
 0x1c6   : > { %1834 = vst [vmem:[%s4194_s18 + $0x50] sm:$0xff] %v2683_v27  ;;  %v3343_v51 = vunpack.i.h.bf16 %v3339_v11  ;;  %v3340_v63 = vunpack.i.l.bf16 %v3339_v11 }
 0x1c8   : > { %v2685_v33 = vpack.c.bf16 %v3343_v51, %v3340_v63 }
 0x1c9   : > { %v3344_v43 = vpop.trf.xlu0 }
 0x1ca   : > { %1836 = vst [vmem:[%s4194_s18 + $0x60] sm:$0xff] %v2685_v33  ;;  %v3348_v29 = vunpack.i.h.bf16 %v3344_v43  ;;  %v3345_v55 = vunpack.i.l.bf16 %v3344_v43 }
 0x1cc   : > { %v2687_v18 = vpack.c.bf16 %v3348_v29, %v3345_v55 }
 0x1cd   : > { %v3349_v31 = vpop.trf.xlu0 }
 0x1ce   : > { %1838 = vst [vmem:[%s4194_s18 + $0x70] sm:$0xff] %v2687_v18  ;;  %v3353_v34 = vunpack.i.h.bf16 %v3349_v31  ;;  %v3350_v35 = vunpack.i.l.bf16 %v3349_v31 }
 0x1d0   : > { %v2689_v39 = vpack.c.bf16 %v3353_v34, %v3350_v35 }
 0x1d1   : > { %v3354_v41 = vpop.trf.xlu0 }
 0x1d2   : > { %1840 = vst [vmem:[%s4194_s18 + $0x80] sm:$0xff] %v2689_v39  ;;  %v3358_v4 = vunpack.i.h.bf16 %v3354_v41  ;;  %v3355_v23 = vunpack.i.l.bf16 %v3354_v41 }
 0x1d4   : > { %v2691_v32 = vpack.c.bf16 %v3358_v4, %v3355_v23 }
 0x1d5   : > { %v3359_v42 = vpop.trf.xlu0 }
 0x1d6   : > { %1842 = vst [vmem:[%s4194_s18 + $0x90] sm:$0xff] %v2691_v32  ;;  %v3363_v24 = vunpack.i.h.bf16 %v3359_v42  ;;  %v3360_v61 = vunpack.i.l.bf16 %v3359_v42 }
 0x1d8   : > { %v2693_v2 = vpack.c.bf16 %v3363_v24, %v3360_v61 }
 0x1d9   : > { %v3364_v56 = vpop.trf.xlu0 }
 0x1da   : > { %1844 = vst [vmem:[%s4194_s18 + $0xa0] sm:$0xff] %v2693_v2  ;;  %v3368_v44 = vunpack.i.h.bf16 %v3364_v56  ;;  %v3365_v49 = vunpack.i.l.bf16 %v3364_v56 }
 0x1dc   : > { %v2695_v1 = vpack.c.bf16 %v3368_v44, %v3365_v49 }
 0x1dd   : > { %v3369_v30 = vpop.trf.xlu0 }
 0x1de   : > { %1846 = vst [vmem:[%s4194_s18 + $0xb0] sm:$0xff] %v2695_v1  ;;  %v3373_v47 = vunpack.i.h.bf16 %v3369_v30  ;;  %v3370_v48 = vunpack.i.l.bf16 %v3369_v30 }
 0x1e0   : > { %v2697_v17 = vpack.c.bf16 %v3373_v47, %v3370_v48 }
 0x1e1   : > { %v3374_v13 = vpop.trf.xlu0 }
 0x1e2   : > { %1848 = vst [vmem:[%s4194_s18 + $0xc0] sm:$0xff] %v2697_v17  ;;  %v3378_v50 = vunpack.i.h.bf16 %v3374_v13  ;;  %v3375_v28 = vunpack.i.l.bf16 %v3374_v13 }
 0x1e4   : > { %v2699_v37 = vpack.c.bf16 %v3378_v50, %v3375_v28 }
 0x1e5   : > { %v3379_v52 = vpop.trf.xlu0 }
 0x1e6   : > { %1850 = vst [vmem:[%s4194_s18 + $0xd0] sm:$0xff] %v2699_v37  ;;  %v3383_v12 = vunpack.i.h.bf16 %v3379_v52  ;;  %v3380_v54 = vunpack.i.l.bf16 %v3379_v52 }
 0x1e8   : > { %v2701_v57 = vpack.c.bf16 %v3383_v12, %v3380_v54 }
 0x1e9   : > { %v3384_v60 = vpop.trf.xlu0 }
 0x1ea   : > { %1852 = vst [vmem:[%s4194_s18 + $0xe0] sm:$0xff] %v2701_v57  ;;  %v3388_v8 = vunpack.i.h.bf16 %v3384_v60  ;;  %v3385_v58 = vunpack.i.l.bf16 %v3384_v60 }
 0x1ec   : > { %v2703_v53 = vpack.c.bf16 %v3388_v8, %v3385_v58 }
 0x1ed   : > { %v3421_v59 = vpop.trf.xlu1 }
 0x1ee   : > { %v3425_v62 = vunpack.i.h.bf16 %v3421_v59  ;;  %v3422_v15 = vunpack.i.l.bf16 %v3421_v59  ;;  %1854 = vst [vmem:[%s4194_s18 + $0xf0] sm:$0xff] %v2703_v53 }
 0x1f0   : > { %v2674_v40 = vpack.c.bf16 %v3425_v62, %v3422_v15 }
 0x1f1   : > { %v3426_v19 = vpop.trf.xlu1 }
 0x1f2   : > { %1825 = vst [vmem:[%s4194_s18 + $0x8] sm:$0xff] %v2674_v40  ;;  %v3430_v0 = vunpack.i.h.bf16 %v3426_v19  ;;  %v3427_v3 = vunpack.i.l.bf16 %v3426_v19 }
 0x1f4   : > { %v2676_v5 = vpack.c.bf16 %v3430_v0, %v3427_v3 }
 0x1f5   : > { %v3431_v6 = vpop.trf.xlu1 }
 0x1f6   : > { %1827 = vst [vmem:[%s4194_s18 + $0x18] sm:$0xff] %v2676_v5  ;;  %v3435_v9 = vunpack.i.h.bf16 %v3431_v6  ;;  %v3432_v7 = vunpack.i.l.bf16 %v3431_v6 }
 0x1f8   : > { %v2678_v10 = vpack.c.bf16 %v3435_v9, %v3432_v7 }
 0x1f9   : > { %v3436_v45 = vpop.trf.xlu1 }
 0x1fa   : > { %1829 = vst [vmem:[%s4194_s18 + $0x28] sm:$0xff] %v2678_v10  ;;  %v3440_v26 = vunpack.i.h.bf16 %v3436_v45  ;;  %v3437_v14 = vunpack.i.l.bf16 %v3436_v45 }
 0x1fc   : > { %v2680_v20 = vpack.c.bf16 %v3440_v26, %v3437_v14 }
 0x1fd   : > { %v3441_v36 = vpop.trf.xlu1 }
 0x1fe   : > { %1831 = vst [vmem:[%s4194_s18 + $0x38] sm:$0xff] %v2680_v20  ;;  %v3445_v38 = vunpack.i.h.bf16 %v3441_v36  ;;  %v3442_v25 = vunpack.i.l.bf16 %v3441_v36 }
 0x200   : > { %v2682_v46 = vpack.c.bf16 %v3445_v38, %v3442_v25 }
 0x201   : > { %v3446_v16 = vpop.trf.xlu1 }
 0x202   : > { %1833 = vst [vmem:[%s4194_s18 + $0x48] sm:$0xff] %v2682_v46  ;;  %v3450_v21 = vunpack.i.h.bf16 %v3446_v16  ;;  %v3447_v22 = vunpack.i.l.bf16 %v3446_v16 }
 0x204   : > { %v2684_v27 = vpack.c.bf16 %v3450_v21, %v3447_v22 }
 0x205   : > { %v3451_v11 = vpop.trf.xlu1 }
 0x206   : > { %1835 = vst [vmem:[%s4194_s18 + $0x58] sm:$0xff] %v2684_v27  ;;  %v3455_v51 = vunpack.i.h.bf16 %v3451_v11  ;;  %v3452_v63 = vunpack.i.l.bf16 %v3451_v11 }
 0x208   : > { %v2686_v33 = vpack.c.bf16 %v3455_v51, %v3452_v63 }
 0x209   : > { %v3456_v43 = vpop.trf.xlu1 }
 0x20a   : > { %1837 = vst [vmem:[%s4194_s18 + $0x68] sm:$0xff] %v2686_v33  ;;  %v3460_v29 = vunpack.i.h.bf16 %v3456_v43  ;;  %v3457_v55 = vunpack.i.l.bf16 %v3456_v43 }
 0x20c   : > { %v2688_v18 = vpack.c.bf16 %v3460_v29, %v3457_v55 }
 0x20d   : > { %v3461_v31 = vpop.trf.xlu1 }
 0x20e   : > { %1839 = vst [vmem:[%s4194_s18 + $0x78] sm:$0xff] %v2688_v18  ;;  %v3465_v34 = vunpack.i.h.bf16 %v3461_v31  ;;  %v3462_v35 = vunpack.i.l.bf16 %v3461_v31 }
 0x210   : > { %v2690_v39 = vpack.c.bf16 %v3465_v34, %v3462_v35 }
 0x211   : > { %v3466_v41 = vpop.trf.xlu1 }
 0x212   : > { %1841 = vst [vmem:[%s4194_s18 + $0x88] sm:$0xff] %v2690_v39  ;;  %v3470_v4 = vunpack.i.h.bf16 %v3466_v41  ;;  %v3467_v23 = vunpack.i.l.bf16 %v3466_v41 }
 0x214   : > { %v2692_v32 = vpack.c.bf16 %v3470_v4, %v3467_v23 }
 0x215   : > { %v3471_v42 = vpop.trf.xlu1 }
 0x216   : > { %1843 = vst [vmem:[%s4194_s18 + $0x98] sm:$0xff] %v2692_v32  ;;  %v3475_v24 = vunpack.i.h.bf16 %v3471_v42  ;;  %v3472_v61 = vunpack.i.l.bf16 %v3471_v42 }
 0x218   : > { %v2694_v2 = vpack.c.bf16 %v3475_v24, %v3472_v61 }
 0x219   : > { %v3476_v56 = vpop.trf.xlu1 }
 0x21a   : > { %1845 = vst [vmem:[%s4194_s18 + $0xa8] sm:$0xff] %v2694_v2  ;;  %v3480_v44 = vunpack.i.h.bf16 %v3476_v56  ;;  %v3477_v49 = vunpack.i.l.bf16 %v3476_v56 }
 0x21c   : > { %v2696_v1 = vpack.c.bf16 %v3480_v44, %v3477_v49 }
 0x21d   : > { %v3481_v30 = vpop.trf.xlu1 }
 0x21e   : > { %1847 = vst [vmem:[%s4194_s18 + $0xb8] sm:$0xff] %v2696_v1  ;;  %v3485_v47 = vunpack.i.h.bf16 %v3481_v30  ;;  %v3482_v48 = vunpack.i.l.bf16 %v3481_v30 }
 0x220   : > { %v2698_v17 = vpack.c.bf16 %v3485_v47, %v3482_v48 }
 0x221   : > { %v3486_v13 = vpop.trf.xlu1 }
 0x222   : > { %1849 = vst [vmem:[%s4194_s18 + $0xc8] sm:$0xff] %v2698_v17  ;;  %v3490_v50 = vunpack.i.h.bf16 %v3486_v13  ;;  %v3487_v28 = vunpack.i.l.bf16 %v3486_v13 }
 0x224   : > { %v2700_v37 = vpack.c.bf16 %v3490_v50, %v3487_v28 }
 0x225   : > { %v3491_v52 = vpop.trf.xlu1 }
 0x226   : > { %1851 = vst [vmem:[%s4194_s18 + $0xd8] sm:$0xff] %v2700_v37  ;;  %v3495_v12 = vunpack.i.h.bf16 %v3491_v52  ;;  %v3492_v54 = vunpack.i.l.bf16 %v3491_v52 }
 0x228   : > { %v2702_v57 = vpack.c.bf16 %v3495_v12, %v3492_v54 }
 0x229   : > { %v3496_v60 = vpop.trf.xlu1 }
 0x22a   : > { %1853 = vst [vmem:[%s4194_s18 + $0xe8] sm:$0xff] %v2702_v57  ;;  %v3500_v8 = vunpack.i.h.bf16 %v3496_v60  ;;  %v3497_v58 = vunpack.i.l.bf16 %v3496_v60 }
 0x22c   : > { %v2704_v53 = vpack.c.bf16 %v3500_v8, %v3497_v58 }
 0x22e   : > { %1855 = vst [vmem:[%s4194_s18 + $0xf8] sm:$0xff] %v2704_v53 }
 0x22f PF: > { %s16_s20 = sadd.s32 1, %s3527_s20   ;;  %s4246_s18 = smov %s3523_s19 }
 0x230   : > { %p13_p5 = scmp.ge.s32.totalorder %s16_s20, 4   ;;  %s4247_s19 = smov %s4249_s21 }
 0x232   :  { %15 = sbr.rel (!%p13_p5) target bundleno = 2 (0x2), region = 86 }

</bundles_post_ra>
